<compile_context>
chip_gen: v7x
topology: tpu7x:2x2x1
jax: 0.10.0
libtpu: 0.0.40
codegen_flags: <defaults>
</compile_context>

<pallas_src>
import math
import jax
import jax.numpy as jnp
from jax.experimental import pallas as pl
from jax.experimental.pallas import tpu as pltpu

# ----------------------------- hyper-parameters (small) -----------------------------
D_MODEL = 32      # d_model
D_FF = 64         # feed-forward hidden
D_K = 8           # per-head key dim
D_V = 8           # per-head value dim
N_HEADS = 4
N_LAYERS = 2
TGT_VOCAB = 16
TGT_LEN = 8
SRC_LEN = 8
BATCH = 2

NEG_INF = -1e9
LN_EPS = 1e-5                     # PyTorch nn.LayerNorm default eps
GRP = N_HEADS * BATCH             # grouped (head-major) batch dim used in-kernel = 8
SLAB_W = TGT_LEN * (TGT_LEN + SRC_LEN)   # merged attn slab lane width = 128


# ----------------------------------- kernel helpers ---------------------------------
def _layer_norm(y, eps=LN_EPS):
    # PyTorch LayerNorm with default weight=1, bias=0 (created fresh each forward).
    mu = jnp.mean(y, axis=-1, keepdims=True)
    var = jnp.mean((y - mu) ** 2, axis=-1, keepdims=True)
    return (y - mu) * jax.lax.rsqrt(var + eps)


def _mha(x_b, kv_b, mask_bias, wq, wk, wv, wo, resid, Lq, Lk):
    """Head-batched multi-head attention + residual + LayerNorm.

    x_b:  [H, B*Lq, D]  query-side activations (broadcast over heads)
    kv_b: [H, B*Lk, D]  key/value-side activations (broadcast over heads)
    mask_bias: [H*B, Lq, Lk] additive bias (0 / -1e9), pre-laid-out by the wrapper
    wq/wk: [H, D, dk]   wv: [H, D, dv]   wo: [H, dv, D]
    resid: [B*Lq, D]
    Returns (y [B*Lq, D], attn [H*B, Lq, Lk]).
    """
    scale = 1.0 / math.sqrt(D_K)
    B = BATCH
    # per-head projections as single-batch-dim batched matmuls (no lane slicing)
    q = jnp.einsum('hnd,hdk->hnk', x_b, wq, preferred_element_type=jnp.float32)
    k = jnp.einsum('hnd,hdk->hnk', kv_b, wk, preferred_element_type=jnp.float32)
    v = jnp.einsum('hnd,hdk->hnk', kv_b, wv, preferred_element_type=jnp.float32)
    # contiguous reshapes only (no transposes): [H, B*L, d] -> [H*B, L, d]
    qg = q.reshape(N_HEADS * B, Lq, D_K)
    kg = k.reshape(N_HEADS * B, Lk, D_K)
    vg = v.reshape(N_HEADS * B, Lk, D_V)

    s = jnp.einsum('gqd,gkd->gqk', qg, kg,
                   preferred_element_type=jnp.float32) * scale
    s = s + mask_bias
    # Scores are small and masked entries are exactly -1e9 (exp underflows to 0), so
    # the max-subtraction is skipped (per perf review).  Exact softmax denominator so
    # returned probabilities sum to 1 (correctness-review note on approx reciprocal).
    e = jnp.exp(s)
    attn = e / jnp.sum(e, axis=-1, keepdims=True)                      # [H*B, Lq, Lk]

    ctx = jnp.einsum('gqk,gkd->gqd', attn, vg,
                     preferred_element_type=jnp.float32)               # [H*B, Lq, dv]
    ctx_h = ctx.reshape(N_HEADS, B * Lq, D_V)                          # contiguous
    # per-head output projections summed: tiny extra matmuls (MXU has huge slack)
    # instead of lane-concatenating 8-wide head slices.
    out = jnp.dot(ctx_h[0], wo[0], preferred_element_type=jnp.float32)
    for h in range(1, N_HEADS):
        out = out + jnp.dot(ctx_h[h], wo[h], preferred_element_type=jnp.float32)
    y = _layer_norm(out + resid)                                       # residual = Q in
    return y, attn


def _decoder_kernel(x0_ref, enc_ref, smask_ref, emask_ref,
                    wq_s_ref, wk_s_ref, wv_s_ref, wo_s_ref,
                    wq_e_ref, wk_e_ref, wv_e_ref, wo_e_ref,
                    w1_ref, w2_ref,
                    x_ref, attn_ref):
    """Single invocation runs ALL decoder layers (static in-kernel layer loop)."""
    B, Lt, Ls = BATCH, TGT_LEN, SRC_LEN

    x = x0_ref[...]                                        # [B*Lt, D]
    enc = enc_ref[...]                                     # [B*Ls, D]
    smask = smask_ref[...]                                 # [H*B, Lt, Lt]
    emask = emask_ref[...]                                 # [H*B, Lt, Ls]
    # hoisted: encoder activations broadcast over heads once (reused by all layers)
    enc_b = jnp.broadcast_to(enc[None], (N_HEADS, B * Ls, D_MODEL))

    for l in range(N_LAYERS):                              # static layer loop
        # ------------------------- self-attention -------------------------
        x_b = jnp.broadcast_to(x[None], (N_HEADS, B * Lt, D_MODEL))
        y, sattn = _mha(x_b, x_b, smask,
                        wq_s_ref[l], wk_s_ref[l], wv_s_ref[l], wo_s_ref[l],
                        x, Lt, Lt)

        # ----------------------- encoder-decoder attention ----------------
        y_b = jnp.broadcast_to(y[None], (N_HEADS, B * Lt, D_MODEL))
        y2, eattn = _mha(y_b, enc_b, emask,
                         wq_e_ref[l], wk_e_ref[l], wv_e_ref[l], wo_e_ref[l],
                         y, Lt, Ls)

        # --------------- position-wise FFN + residual + LayerNorm ---------
        hdn = jnp.maximum(
            jnp.dot(y2, w1_ref[l], preferred_element_type=jnp.float32), 0.0)
        z = jnp.dot(hdn, w2_ref[l], preferred_element_type=jnp.float32) + y2
        x = _layer_norm(z)

        # one lane-dense (128-wide) store of both attention maps for this layer
        attn_ref[l] = jnp.concatenate(
            [sattn.reshape(GRP, Lt * Lt), eattn.reshape(GRP, Lt * Ls)], axis=-1)

    x_ref[...] = x                                         # single final state store


# --------------------------------- pallas_call wrapper -------------------------------
def _full_spec(shape):
    return pl.BlockSpec(shape, lambda i, _nd=len(shape): (0,) * _nd)


def decoder_pallas(x0, enc, self_bias_g, enc_bias_g, w):
    """x0:[B*Lt,D] enc:[B*Ls,D] masks:[H*B,Lq,Lk] + head-major stacked weights."""
    out_shape = (
        jax.ShapeDtypeStruct((BATCH * TGT_LEN, D_MODEL), jnp.float32),
        jax.ShapeDtypeStruct((N_LAYERS, GRP, SLAB_W), jnp.float32),
    )
    args = (x0, enc, self_bias_g, enc_bias_g,
            w["wq_s"], w["wk_s"], w["wv_s"], w["wo_s"],
            w["wq_e"], w["wk_e"], w["wv_e"], w["wo_e"],
            w["w1"], w["w2"])
    # NOTE: on v7x a 2-TensorCore batch split (parallel leading grid axis / core_map)
    # could ~2x this; intentionally not done since it only adds serial grid-step
    # overhead on single-TC v5e/v6e.
    return pl.pallas_call(
        _decoder_kernel,
        out_shape=out_shape,
        grid=(1,),
        in_specs=[_full_spec(a.shape) for a in args],
        out_specs=[
            pl.BlockSpec((BATCH * TGT_LEN, D_MODEL), lambda i: (0, 0)),
            pl.BlockSpec((N_LAYERS, GRP, SLAB_W), lambda i: (0, 0, 0)),
        ],
        compiler_params=pltpu.CompilerParams(dimension_semantics=("arbitrary",)),
    )(*args)


# ------------------------------------ plain-JAX glue ---------------------------------
def positional_encoding_table(max_len, d_model):
    pos = jnp.arange(max_len, dtype=jnp.float32)[:, None]
    i = jnp.arange(0, d_model, 2, dtype=jnp.float32)
    div = jnp.exp(-math.log(10000.0) * i / d_model)
    pe = jnp.zeros((max_len, d_model), dtype=jnp.float32)
    pe = pe.at[:, 0::2].set(jnp.sin(pos * div))
    pe = pe.at[:, 1::2].set(jnp.cos(pos * div))
    return pe


def get_attn_pad_mask(seq_q, seq_k):
    # True where the key token is padding (id == 0); expanded over query length.
    B, Lq = seq_q.shape
    Lk = seq_k.shape[1]
    pad = (seq_k == 0)[:, None, :]
    return jnp.broadcast_to(pad, (B, Lq, Lk))


def get_attn_subsequence_mask(seq):
    B, L = seq.shape
    sub = jnp.triu(jnp.ones((L, L), dtype=jnp.bool_), k=1)
    return jnp.broadcast_to(sub[None], (B, L, L))


def prepare_params(params):
    """One-time (hoisted out of the forward path): head-major weight stacks + PE."""
    layers = params["layers"]

    def qkv_stack(group, idx, d_head):
        # [D, H*dh] -> [H, D, dh], stacked over layers -> [L, H, D, dh]
        return jnp.stack([
            l[group][idx].reshape(D_MODEL, N_HEADS, d_head).transpose(1, 0, 2)
            for l in layers])

    def out_stack(group):
        # [H*dv, D] -> [H, dv, D], stacked over layers -> [L, H, dv, D]
        return jnp.stack([l[group][3].reshape(N_HEADS, D_V, D_MODEL) for l in layers])

    return {
        "tgt_emb": params["tgt_emb"],
        "pe": positional_encoding_table(TGT_LEN, D_MODEL),
        "wq_s": qkv_stack("self_attn", 0, D_K),
        "wk_s": qkv_stack("self_attn", 1, D_K),
        "wv_s": qkv_stack("self_attn", 2, D_V),
        "wo_s": out_stack("self_attn"),
        "wq_e": qkv_stack("enc_attn", 0, D_K),
        "wk_e": qkv_stack("enc_attn", 1, D_K),
        "wv_e": qkv_stack("enc_attn", 2, D_V),
        "wo_e": out_stack("enc_attn"),
        "w1": jnp.stack([l["ffn"][0] for l in layers]),
        "w2": jnp.stack([l["ffn"][1] for l in layers]),
    }


@jax.jit
def decoder_forward(dec_inputs, enc_inputs, enc_outputs, prep):
    B, Lt = dec_inputs.shape
    Ls = enc_inputs.shape[1]

    # Embedding lookup + sinusoidal positional encoding (table precomputed in prep).
    x = jnp.take(prep["tgt_emb"], dec_inputs, axis=0) + prep["pe"][None, :, :]
    # TODO(synk): PositionalEncoding's dropout(p=0.1) is a no-op in eval mode; omitted.

    self_mask = jnp.logical_or(get_attn_pad_mask(dec_inputs, dec_inputs),
                               get_attn_subsequence_mask(dec_inputs))
    enc_mask = get_attn_pad_mask(dec_inputs, enc_inputs)
    # Additive bias form of masked_fill (0 allowed / -1e9 masked), pre-laid-out to the
    # kernel's head-major grouped batch layout [H*B, Lq, Lk].
    self_bias = jnp.where(self_mask, NEG_INF, 0.0).astype(jnp.float32)
    enc_bias = jnp.where(enc_mask, NEG_INF, 0.0).astype(jnp.float32)
    self_bias_g = jnp.broadcast_to(self_bias[None], (N_HEADS, B, Lt, Lt)) \
                     .reshape(N_HEADS * B, Lt, Lt)
    enc_bias_g = jnp.broadcast_to(enc_bias[None], (N_HEADS, B, Lt, Ls)) \
                    .reshape(N_HEADS * B, Lt, Ls)

    x_out, attn_slab = decoder_pallas(
        x.reshape(B * Lt, D_MODEL),
        enc_outputs.reshape(B * Ls, D_MODEL),
        self_bias_g, enc_bias_g, prep)

    dec_out = x_out.reshape(B, Lt, D_MODEL)
    # Lane-dense slab [L, H*B, Lt*(Lt+Ls)] -> [L, B, H, Lq, Lk] (wrapper plumbing).
    slab = attn_slab.reshape(N_LAYERS, N_HEADS, B, Lt, Lt + Ls)
    sattn = slab[..., :Lt].transpose(0, 2, 1, 3, 4)     # [L, B, H, Lt, Lt]
    eattn = slab[..., Lt:].transpose(0, 2, 1, 3, 4)     # [L, B, H, Lt, Ls]
    dec_self_attns = [sattn[i] for i in range(N_LAYERS)]
    dec_enc_attns = [eattn[i] for i in range(N_LAYERS)]
    return dec_out, dec_self_attns, dec_enc_attns


# ------------------------------------ parameter init ---------------------------------
def _linear_weight(key, fan_in, fan_out):
    # nn.Linear default: U(-1/sqrt(fan_in), 1/sqrt(fan_in)); stored as [in, out].
    bound = 1.0 / math.sqrt(fan_in)
    return jax.random.uniform(key, (fan_in, fan_out), jnp.float32, -bound, bound)


def init_params(key):
    n_keys = 1 + N_LAYERS * (4 + 4 + 2)
    keys = iter(jax.random.split(key, n_keys))
    params = {
        "tgt_emb": jax.random.normal(next(keys), (TGT_VOCAB, D_MODEL), jnp.float32),
        "layers": [],
    }
    for _ in range(N_LAYERS):
        def mha_params():
            return (
                _linear_weight(next(keys), D_MODEL, N_HEADS * D_K),   # W_Q
                _linear_weight(next(keys), D_MODEL, N_HEADS * D_K),   # W_K
                _linear_weight(next(keys), D_MODEL, N_HEADS * D_V),   # W_V
                _linear_weight(next(keys), N_HEADS * D_V, D_MODEL),   # fc
            )
        layer = {
            "self_attn": mha_params(),
            "enc_attn": mha_params(),
            "ffn": (
                _linear_weight(next(keys), D_MODEL, D_FF),
                _linear_weight(next(keys), D_FF, D_MODEL),
            ),
        }
        params["layers"].append(layer)
    return params


# ----------------------------------------- main ---------------------------------------
if __name__ == "__main__":
    key = jax.random.PRNGKey(0)
    k_tok_d, k_tok_e, k_enc, k_params = jax.random.split(key, 4)

    # Token ids in [1, vocab) with trailing padding (id 0), mimicking the tutorial data.
    dec_inputs = jax.random.randint(k_tok_d, (BATCH, TGT_LEN), 1, TGT_VOCAB, jnp.int32)
    dec_inputs = dec_inputs.at[:, -1].set(0)          # pad last target position
    enc_inputs = jax.random.randint(k_tok_e, (BATCH, SRC_LEN), 1, TGT_VOCAB, jnp.int32)
    enc_inputs = enc_inputs.at[1, -1].set(0)          # pad in one source sequence
    enc_outputs = jax.random.normal(k_enc, (BATCH, SRC_LEN, D_MODEL), jnp.float32)

    params = init_params(k_params)
    prep = prepare_params(params)                     # one-time weight re-layout

    dec_out, self_attns, enc_attns = decoder_forward(
        dec_inputs, enc_inputs, enc_outputs, prep)

    jax.block_until_ready(dec_out)
    for a in self_attns + enc_attns:
        jax.block_until_ready(a)

    assert dec_out.shape == (BATCH, TGT_LEN, D_MODEL)
    assert len(self_attns) == N_LAYERS and len(enc_attns) == N_LAYERS
    assert self_attns[0].shape == (BATCH, N_HEADS, TGT_LEN, TGT_LEN)
    assert enc_attns[0].shape == (BATCH, N_HEADS, TGT_LEN, SRC_LEN)
    assert bool(jnp.all(jnp.isfinite(dec_out)))
    print("KERNEL_OK")
</pallas_src>

<mosaic_0001>
module attributes {stable_mosaic.version = 11 : i64} {
  func.func @_decoder_kernel(%arg0: i32, %arg1: memref<16x32xf32, #tpu.memory_space<vmem>>, %arg2: memref<16x32xf32, #tpu.memory_space<vmem>>, %arg3: memref<8x8x8xf32, #tpu.memory_space<vmem>>, %arg4: memref<8x8x8xf32, #tpu.memory_space<vmem>>, %arg5: memref<2x4x32x8xf32, #tpu.memory_space<vmem>>, %arg6: memref<2x4x32x8xf32, #tpu.memory_space<vmem>>, %arg7: memref<2x4x32x8xf32, #tpu.memory_space<vmem>>, %arg8: memref<2x4x8x32xf32, #tpu.memory_space<vmem>>, %arg9: memref<2x4x32x8xf32, #tpu.memory_space<vmem>>, %arg10: memref<2x4x32x8xf32, #tpu.memory_space<vmem>>, %arg11: memref<2x4x32x8xf32, #tpu.memory_space<vmem>>, %arg12: memref<2x4x8x32xf32, #tpu.memory_space<vmem>>, %arg13: memref<2x32x64xf32, #tpu.memory_space<vmem>>, %arg14: memref<2x64x32xf32, #tpu.memory_space<vmem>>, %arg15: memref<16x32xf32, #tpu.memory_space<vmem>>, %arg16: memref<2x8x128xf32, #tpu.memory_space<vmem>>) attributes {dimension_semantics = [#tpu.dimension_semantics<arbitrary>], iteration_bounds = array<i64: 1>, scalar_prefetch = 0 : i64, scratch_operands = 0 : i64, tpu.core_type = #tpu.core_type<tc>, window_params = [{pipeline_mode = #tpu.pipeline_mode<synchronous>, transform_indices = @transform_0, window_bounds = array<i64: 16, 32>}, {pipeline_mode = #tpu.pipeline_mode<synchronous>, transform_indices = @transform_1, window_bounds = array<i64: 16, 32>}, {pipeline_mode = #tpu.pipeline_mode<synchronous>, transform_indices = @transform_2, window_bounds = array<i64: 8, 8, 8>}, {pipeline_mode = #tpu.pipeline_mode<synchronous>, transform_indices = @transform_3, window_bounds = array<i64: 8, 8, 8>}, {pipeline_mode = #tpu.pipeline_mode<synchronous>, transform_indices = @transform_4, window_bounds = array<i64: 2, 4, 32, 8>}, {pipeline_mode = #tpu.pipeline_mode<synchronous>, transform_indices = @transform_5, window_bounds = array<i64: 2, 4, 32, 8>}, {pipeline_mode = #tpu.pipeline_mode<synchronous>, transform_indices = @transform_6, window_bounds = array<i64: 2, 4, 32, 8>}, {pipeline_mode = #tpu.pipeline_mode<synchronous>, transform_indices = @transform_7, window_bounds = array<i64: 2, 4, 8, 32>}, {pipeline_mode = #tpu.pipeline_mode<synchronous>, transform_indices = @transform_8, window_bounds = array<i64: 2, 4, 32, 8>}, {pipeline_mode = #tpu.pipeline_mode<synchronous>, transform_indices = @transform_9, window_bounds = array<i64: 2, 4, 32, 8>}, {pipeline_mode = #tpu.pipeline_mode<synchronous>, transform_indices = @transform_10, window_bounds = array<i64: 2, 4, 32, 8>}, {pipeline_mode = #tpu.pipeline_mode<synchronous>, transform_indices = @transform_11, window_bounds = array<i64: 2, 4, 8, 32>}, {pipeline_mode = #tpu.pipeline_mode<synchronous>, transform_indices = @transform_12, window_bounds = array<i64: 2, 32, 64>}, {pipeline_mode = #tpu.pipeline_mode<synchronous>, transform_indices = @transform_13, window_bounds = array<i64: 2, 64, 32>}, {pipeline_mode = #tpu.pipeline_mode<synchronous>, transform_indices = @transform_14, window_bounds = array<i64: 16, 32>}, {pipeline_mode = #tpu.pipeline_mode<synchronous>, transform_indices = @transform_15, window_bounds = array<i64: 2, 8, 128>}]} {
    %c0 = arith.constant 0 : index
    %c0_0 = arith.constant 0 : index
    %0 = vector.load %arg1[%c0, %c0_0] : memref<16x32xf32, #tpu.memory_space<vmem>>, vector<16x32xf32>
    %c0_1 = arith.constant 0 : index
    %c0_2 = arith.constant 0 : index
    %1 = vector.load %arg2[%c0_1, %c0_2] : memref<16x32xf32, #tpu.memory_space<vmem>>, vector<16x32xf32>
    %c0_3 = arith.constant 0 : index
    %c0_4 = arith.constant 0 : index
    %c0_5 = arith.constant 0 : index
    %2 = vector.load %arg3[%c0_3, %c0_4, %c0_5] : memref<8x8x8xf32, #tpu.memory_space<vmem>>, vector<8x8x8xf32>
    %c0_6 = arith.constant 0 : index
    %c0_7 = arith.constant 0 : index
    %c0_8 = arith.constant 0 : index
    %3 = vector.load %arg4[%c0_6, %c0_7, %c0_8] : memref<8x8x8xf32, #tpu.memory_space<vmem>>, vector<8x8x8xf32>
    %4 = vector.shape_cast %1 : vector<16x32xf32> to vector<1x16x32xf32>
    %5 = vector.shape_cast %4 : vector<1x16x32xf32> to vector<1x16x32xf32>
    %6 = vector.broadcast %5 : vector<1x16x32xf32> to vector<4x16x32xf32>
    %7 = vector.shape_cast %0 : vector<16x32xf32> to vector<1x16x32xf32>
    %8 = vector.shape_cast %7 : vector<1x16x32xf32> to vector<1x16x32xf32>
    %9 = vector.broadcast %8 : vector<1x16x32xf32> to vector<4x16x32xf32>
    %c0_9 = arith.constant 0 : index
    %c0_10 = arith.constant 0 : index
    %c0_11 = arith.constant 0 : index
    %c0_12 = arith.constant 0 : index
    %10 = vector.load %arg5[%c0_9, %c0_10, %c0_11, %c0_12] : memref<2x4x32x8xf32, #tpu.memory_space<vmem>>, vector<1x4x32x8xf32>
    %11 = vector.shape_cast %10 : vector<1x4x32x8xf32> to vector<4x32x8xf32>
    %c0_13 = arith.constant 0 : index
    %c0_14 = arith.constant 0 : index
    %c0_15 = arith.constant 0 : index
    %c0_16 = arith.constant 0 : index
    %12 = vector.load %arg6[%c0_13, %c0_14, %c0_15, %c0_16] : memref<2x4x32x8xf32, #tpu.memory_space<vmem>>, vector<1x4x32x8xf32>
    %13 = vector.shape_cast %12 : vector<1x4x32x8xf32> to vector<4x32x8xf32>
    %c0_17 = arith.constant 0 : index
    %c0_18 = arith.constant 0 : index
    %c0_19 = arith.constant 0 : index
    %c0_20 = arith.constant 0 : index
    %14 = vector.load %arg7[%c0_17, %c0_18, %c0_19, %c0_20] : memref<2x4x32x8xf32, #tpu.memory_space<vmem>>, vector<1x4x32x8xf32>
    %15 = vector.shape_cast %14 : vector<1x4x32x8xf32> to vector<4x32x8xf32>
    %c0_21 = arith.constant 0 : index
    %c0_22 = arith.constant 0 : index
    %c0_23 = arith.constant 0 : index
    %c0_24 = arith.constant 0 : index
    %16 = vector.load %arg8[%c0_21, %c0_22, %c0_23, %c0_24] : memref<2x4x8x32xf32, #tpu.memory_space<vmem>>, vector<1x4x8x32xf32>
    %17 = vector.shape_cast %16 : vector<1x4x8x32xf32> to vector<4x8x32xf32>
    "tpu.trace_start"() <{level = 10 : i32, message = "hnd,hdk->hnk"}> : () -> ()
    %cst = arith.constant dense<0.000000e+00> : vector<4x16x8xf32>
    %18 = tpu.matmul %9, %11, %cst {dimension_numbers = #tpu.dot_dimension_numbers<[2], [1], [1], [2], [0, 0, 0, 1, 1, 2], [0], [0]>} : vector<4x16x32xf32>, vector<4x32x8xf32>, vector<4x16x8xf32> -> vector<4x16x8xf32>
    %cst_25 = arith.constant dense<0.000000e+00> : vector<4x16x8xf32>
    %19 = tpu.matmul %9, %13, %cst_25 {dimension_numbers = #tpu.dot_dimension_numbers<[2], [1], [1], [2], [0, 0, 0, 1, 1, 2], [0], [0]>} : vector<4x16x32xf32>, vector<4x32x8xf32>, vector<4x16x8xf32> -> vector<4x16x8xf32>
    %cst_26 = arith.constant dense<0.000000e+00> : vector<4x16x8xf32>
    %20 = tpu.matmul %9, %15, %cst_26 {dimension_numbers = #tpu.dot_dimension_numbers<[2], [1], [1], [2], [0, 0, 0, 1, 1, 2], [0], [0]>} : vector<4x16x32xf32>, vector<4x32x8xf32>, vector<4x16x8xf32> -> vector<4x16x8xf32>
    "tpu.trace_stop"() : () -> ()
    %21 = vector.shape_cast %18 : vector<4x16x8xf32> to vector<8x8x8xf32>
    %22 = vector.shape_cast %19 : vector<4x16x8xf32> to vector<8x8x8xf32>
    %23 = vector.shape_cast %20 : vector<4x16x8xf32> to vector<8x8x8xf32>
    "tpu.trace_start"() <{level = 10 : i32, message = "gqd,gkd->gqk"}> : () -> ()
    %cst_27 = arith.constant dense<0.000000e+00> : vector<8x8x8xf32>
    %24 = tpu.matmul %21, %22, %cst_27 {dimension_numbers = #tpu.dot_dimension_numbers<[2], [2], [1], [1], [0, 0, 0, 1, 1, 1], [0], [0]>} : vector<8x8x8xf32>, vector<8x8x8xf32>, vector<8x8x8xf32> -> vector<8x8x8xf32>
    "tpu.trace_stop"() : () -> ()
    %cst_28 = arith.constant 0.353553385 : f32
    %25 = vector.broadcast %cst_28 : f32 to vector<8x8x8xf32>
    %26 = arith.mulf %24, %25 : vector<8x8x8xf32>
    %27 = arith.addf %26, %2 : vector<8x8x8xf32>
    %28 = math.exp %27 : vector<8x8x8xf32>
    %cst_29 = arith.constant dense<0.000000e+00> : vector<8x8xf32>
    %29 = vector.multi_reduction <add>, %28, %cst_29 [2] : vector<8x8x8xf32> to vector<8x8xf32>
    %30 = vector.shape_cast %29 : vector<8x8xf32> to vector<8x8x1xf32>
    %31 = vector.broadcast %30 : vector<8x8x1xf32> to vector<8x8x8xf32>
    %32 = arith.divf %28, %31 : vector<8x8x8xf32>
    "tpu.trace_start"() <{level = 10 : i32, message = "gqk,gkd->gqd"}> : () -> ()
    %cst_30 = arith.constant dense<0.000000e+00> : vector<8x8x8xf32>
    %33 = tpu.matmul %32, %23, %cst_30 {dimension_numbers = #tpu.dot_dimension_numbers<[2], [1], [1], [2], [0, 0, 0, 1, 1, 2], [0], [0]>} : vector<8x8x8xf32>, vector<8x8x8xf32>, vector<8x8x8xf32> -> vector<8x8x8xf32>
    "tpu.trace_stop"() : () -> ()
    %34 = vector.shape_cast %33 : vector<8x8x8xf32> to vector<4x16x8xf32>
    %35 = vector.extract_strided_slice %34 {offsets = [0, 0, 0], sizes = [1, 16, 8], strides = [1, 1, 1]} : vector<4x16x8xf32> to vector<1x16x8xf32>
    %36 = vector.shape_cast %35 : vector<1x16x8xf32> to vector<16x8xf32>
    %37 = vector.extract_strided_slice %17 {offsets = [0, 0, 0], sizes = [1, 8, 32], strides = [1, 1, 1]} : vector<4x8x32xf32> to vector<1x8x32xf32>
    %38 = vector.shape_cast %37 : vector<1x8x32xf32> to vector<8x32xf32>
    %cst_31 = arith.constant dense<0.000000e+00> : vector<16x32xf32>
    %39 = tpu.matmul %36, %38, %cst_31 {dimension_numbers = #tpu.dot_dimension_numbers<[1], [0], [0], [1], [0, 0, 1, 1], [], []>} : vector<16x8xf32>, vector<8x32xf32>, vector<16x32xf32> -> vector<16x32xf32>
    %40 = vector.extract_strided_slice %34 {offsets = [1, 0, 0], sizes = [1, 16, 8], strides = [1, 1, 1]} : vector<4x16x8xf32> to vector<1x16x8xf32>
    %41 = vector.shape_cast %40 : vector<1x16x8xf32> to vector<16x8xf32>
    %42 = vector.extract_strided_slice %17 {offsets = [1, 0, 0], sizes = [1, 8, 32], strides = [1, 1, 1]} : vector<4x8x32xf32> to vector<1x8x32xf32>
    %43 = vector.shape_cast %42 : vector<1x8x32xf32> to vector<8x32xf32>
    %cst_32 = arith.constant dense<0.000000e+00> : vector<16x32xf32>
    %44 = tpu.matmul %41, %43, %cst_32 {dimension_numbers = #tpu.dot_dimension_numbers<[1], [0], [0], [1], [0, 0, 1, 1], [], []>} : vector<16x8xf32>, vector<8x32xf32>, vector<16x32xf32> -> vector<16x32xf32>
    %45 = arith.addf %39, %44 : vector<16x32xf32>
    %46 = vector.extract_strided_slice %34 {offsets = [2, 0, 0], sizes = [1, 16, 8], strides = [1, 1, 1]} : vector<4x16x8xf32> to vector<1x16x8xf32>
    %47 = vector.shape_cast %46 : vector<1x16x8xf32> to vector<16x8xf32>
    %48 = vector.extract_strided_slice %17 {offsets = [2, 0, 0], sizes = [1, 8, 32], strides = [1, 1, 1]} : vector<4x8x32xf32> to vector<1x8x32xf32>
    %49 = vector.shape_cast %48 : vector<1x8x32xf32> to vector<8x32xf32>
    %cst_33 = arith.constant dense<0.000000e+00> : vector<16x32xf32>
    %50 = tpu.matmul %47, %49, %cst_33 {dimension_numbers = #tpu.dot_dimension_numbers<[1], [0], [0], [1], [0, 0, 1, 1], [], []>} : vector<16x8xf32>, vector<8x32xf32>, vector<16x32xf32> -> vector<16x32xf32>
    %51 = arith.addf %45, %50 : vector<16x32xf32>
    %52 = vector.extract_strided_slice %34 {offsets = [3, 0, 0], sizes = [1, 16, 8], strides = [1, 1, 1]} : vector<4x16x8xf32> to vector<1x16x8xf32>
    %53 = vector.shape_cast %52 : vector<1x16x8xf32> to vector<16x8xf32>
    %54 = vector.extract_strided_slice %17 {offsets = [3, 0, 0], sizes = [1, 8, 32], strides = [1, 1, 1]} : vector<4x8x32xf32> to vector<1x8x32xf32>
    %55 = vector.shape_cast %54 : vector<1x8x32xf32> to vector<8x32xf32>
    %cst_34 = arith.constant dense<0.000000e+00> : vector<16x32xf32>
    %56 = tpu.matmul %53, %55, %cst_34 {dimension_numbers = #tpu.dot_dimension_numbers<[1], [0], [0], [1], [0, 0, 1, 1], [], []>} : vector<16x8xf32>, vector<8x32xf32>, vector<16x32xf32> -> vector<16x32xf32>
    %57 = arith.addf %51, %56 : vector<16x32xf32>
    %58 = arith.addf %57, %0 : vector<16x32xf32>
    %cst_35 = arith.constant dense<0.000000e+00> : vector<16xf32>
    %59 = vector.multi_reduction <add>, %58, %cst_35 [1] : vector<16x32xf32> to vector<16xf32>
    %60 = vector.shape_cast %59 : vector<16xf32> to vector<16x1xf32>
    %cst_36 = arith.constant 3.200000e+01 : f32
    %61 = vector.broadcast %cst_36 : f32 to vector<16x1xf32>
    %62 = arith.divf %60, %61 : vector<16x1xf32>
    %63 = vector.broadcast %62 : vector<16x1xf32> to vector<16x32xf32>
    %64 = arith.subf %58, %63 : vector<16x32xf32>
    %65 = arith.mulf %64, %64 : vector<16x32xf32>
    %cst_37 = arith.constant dense<0.000000e+00> : vector<16xf32>
    %66 = vector.multi_reduction <add>, %65, %cst_37 [1] : vector<16x32xf32> to vector<16xf32>
    %67 = vector.shape_cast %66 : vector<16xf32> to vector<16x1xf32>
    %cst_38 = arith.constant 3.200000e+01 : f32
    %68 = vector.broadcast %cst_38 : f32 to vector<16x1xf32>
    %69 = arith.divf %67, %68 : vector<16x1xf32>
    %70 = vector.broadcast %62 : vector<16x1xf32> to vector<16x32xf32>
    %71 = arith.subf %58, %70 : vector<16x32xf32>
    %cst_39 = arith.constant 9.99999974E-6 : f32
    %72 = vector.broadcast %cst_39 : f32 to vector<16x1xf32>
    %73 = arith.addf %69, %72 : vector<16x1xf32>
    %74 = math.rsqrt %73 : vector<16x1xf32>
    %75 = vector.broadcast %74 : vector<16x1xf32> to vector<16x32xf32>
    %76 = arith.mulf %71, %75 : vector<16x32xf32>
    %77 = vector.shape_cast %76 : vector<16x32xf32> to vector<1x16x32xf32>
    %78 = vector.shape_cast %77 : vector<1x16x32xf32> to vector<1x16x32xf32>
    %79 = vector.broadcast %78 : vector<1x16x32xf32> to vector<4x16x32xf32>
    %c0_40 = arith.constant 0 : index
    %c0_41 = arith.constant 0 : index
    %c0_42 = arith.constant 0 : index
    %c0_43 = arith.constant 0 : index
    %80 = vector.load %arg9[%c0_40, %c0_41, %c0_42, %c0_43] : memref<2x4x32x8xf32, #tpu.memory_space<vmem>>, vector<1x4x32x8xf32>
    %81 = vector.shape_cast %80 : vector<1x4x32x8xf32> to vector<4x32x8xf32>
    %c0_44 = arith.constant 0 : index
    %c0_45 = arith.constant 0 : index
    %c0_46 = arith.constant 0 : index
    %c0_47 = arith.constant 0 : index
    %82 = vector.load %arg10[%c0_44, %c0_45, %c0_46, %c0_47] : memref<2x4x32x8xf32, #tpu.memory_space<vmem>>, vector<1x4x32x8xf32>
    %83 = vector.shape_cast %82 : vector<1x4x32x8xf32> to vector<4x32x8xf32>
    %c0_48 = arith.constant 0 : index
    %c0_49 = arith.constant 0 : index
    %c0_50 = arith.constant 0 : index
    %c0_51 = arith.constant 0 : index
    %84 = vector.load %arg11[%c0_48, %c0_49, %c0_50, %c0_51] : memref<2x4x32x8xf32, #tpu.memory_space<vmem>>, vector<1x4x32x8xf32>
    %85 = vector.shape_cast %84 : vector<1x4x32x8xf32> to vector<4x32x8xf32>
    %c0_52 = arith.constant 0 : index
    %c0_53 = arith.constant 0 : index
    %c0_54 = arith.constant 0 : index
    %c0_55 = arith.constant 0 : index
    %86 = vector.load %arg12[%c0_52, %c0_53, %c0_54, %c0_55] : memref<2x4x8x32xf32, #tpu.memory_space<vmem>>, vector<1x4x8x32xf32>
    %87 = vector.shape_cast %86 : vector<1x4x8x32xf32> to vector<4x8x32xf32>
    "tpu.trace_start"() <{level = 10 : i32, message = "hnd,hdk->hnk"}> : () -> ()
    %cst_56 = arith.constant dense<0.000000e+00> : vector<4x16x8xf32>
    %88 = tpu.matmul %79, %81, %cst_56 {dimension_numbers = #tpu.dot_dimension_numbers<[2], [1], [1], [2], [0, 0, 0, 1, 1, 2], [0], [0]>} : vector<4x16x32xf32>, vector<4x32x8xf32>, vector<4x16x8xf32> -> vector<4x16x8xf32>
    %cst_57 = arith.constant dense<0.000000e+00> : vector<4x16x8xf32>
    %89 = tpu.matmul %6, %83, %cst_57 {dimension_numbers = #tpu.dot_dimension_numbers<[2], [1], [1], [2], [0, 0, 0, 1, 1, 2], [0], [0]>} : vector<4x16x32xf32>, vector<4x32x8xf32>, vector<4x16x8xf32> -> vector<4x16x8xf32>
    %cst_58 = arith.constant dense<0.000000e+00> : vector<4x16x8xf32>
    %90 = tpu.matmul %6, %85, %cst_58 {dimension_numbers = #tpu.dot_dimension_numbers<[2], [1], [1], [2], [0, 0, 0, 1, 1, 2], [0], [0]>} : vector<4x16x32xf32>, vector<4x32x8xf32>, vector<4x16x8xf32> -> vector<4x16x8xf32>
    "tpu.trace_stop"() : () -> ()
    %91 = vector.shape_cast %88 : vector<4x16x8xf32> to vector<8x8x8xf32>
    %92 = vector.shape_cast %89 : vector<4x16x8xf32> to vector<8x8x8xf32>
    %93 = vector.shape_cast %90 : vector<4x16x8xf32> to vector<8x8x8xf32>
    "tpu.trace_start"() <{level = 10 : i32, message = "gqd,gkd->gqk"}> : () -> ()
    %cst_59 = arith.constant dense<0.000000e+00> : vector<8x8x8xf32>
    %94 = tpu.matmul %91, %92, %cst_59 {dimension_numbers = #tpu.dot_dimension_numbers<[2], [2], [1], [1], [0, 0, 0, 1, 1, 1], [0], [0]>} : vector<8x8x8xf32>, vector<8x8x8xf32>, vector<8x8x8xf32> -> vector<8x8x8xf32>
    "tpu.trace_stop"() : () -> ()
    %cst_60 = arith.constant 0.353553385 : f32
    %95 = vector.broadcast %cst_60 : f32 to vector<8x8x8xf32>
    %96 = arith.mulf %94, %95 : vector<8x8x8xf32>
    %97 = arith.addf %96, %3 : vector<8x8x8xf32>
    %98 = math.exp %97 : vector<8x8x8xf32>
    %cst_61 = arith.constant dense<0.000000e+00> : vector<8x8xf32>
    %99 = vector.multi_reduction <add>, %98, %cst_61 [2] : vector<8x8x8xf32> to vector<8x8xf32>
    %100 = vector.shape_cast %99 : vector<8x8xf32> to vector<8x8x1xf32>
    %101 = vector.broadcast %100 : vector<8x8x1xf32> to vector<8x8x8xf32>
    %102 = arith.divf %98, %101 : vector<8x8x8xf32>
    "tpu.trace_start"() <{level = 10 : i32, message = "gqk,gkd->gqd"}> : () -> ()
    %cst_62 = arith.constant dense<0.000000e+00> : vector<8x8x8xf32>
    %103 = tpu.matmul %102, %93, %cst_62 {dimension_numbers = #tpu.dot_dimension_numbers<[2], [1], [1], [2], [0, 0, 0, 1, 1, 2], [0], [0]>} : vector<8x8x8xf32>, vector<8x8x8xf32>, vector<8x8x8xf32> -> vector<8x8x8xf32>
    "tpu.trace_stop"() : () -> ()
    %104 = vector.shape_cast %103 : vector<8x8x8xf32> to vector<4x16x8xf32>
    %105 = vector.extract_strided_slice %104 {offsets = [0, 0, 0], sizes = [1, 16, 8], strides = [1, 1, 1]} : vector<4x16x8xf32> to vector<1x16x8xf32>
    %106 = vector.shape_cast %105 : vector<1x16x8xf32> to vector<16x8xf32>
    %107 = vector.extract_strided_slice %87 {offsets = [0, 0, 0], sizes = [1, 8, 32], strides = [1, 1, 1]} : vector<4x8x32xf32> to vector<1x8x32xf32>
    %108 = vector.shape_cast %107 : vector<1x8x32xf32> to vector<8x32xf32>
    %cst_63 = arith.constant dense<0.000000e+00> : vector<16x32xf32>
    %109 = tpu.matmul %106, %108, %cst_63 {dimension_numbers = #tpu.dot_dimension_numbers<[1], [0], [0], [1], [0, 0, 1, 1], [], []>} : vector<16x8xf32>, vector<8x32xf32>, vector<16x32xf32> -> vector<16x32xf32>
    %110 = vector.extract_strided_slice %104 {offsets = [1, 0, 0], sizes = [1, 16, 8], strides = [1, 1, 1]} : vector<4x16x8xf32> to vector<1x16x8xf32>
    %111 = vector.shape_cast %110 : vector<1x16x8xf32> to vector<16x8xf32>
    %112 = vector.extract_strided_slice %87 {offsets = [1, 0, 0], sizes = [1, 8, 32], strides = [1, 1, 1]} : vector<4x8x32xf32> to vector<1x8x32xf32>
    %113 = vector.shape_cast %112 : vector<1x8x32xf32> to vector<8x32xf32>
    %cst_64 = arith.constant dense<0.000000e+00> : vector<16x32xf32>
    %114 = tpu.matmul %111, %113, %cst_64 {dimension_numbers = #tpu.dot_dimension_numbers<[1], [0], [0], [1], [0, 0, 1, 1], [], []>} : vector<16x8xf32>, vector<8x32xf32>, vector<16x32xf32> -> vector<16x32xf32>
    %115 = arith.addf %109, %114 : vector<16x32xf32>
    %116 = vector.extract_strided_slice %104 {offsets = [2, 0, 0], sizes = [1, 16, 8], strides = [1, 1, 1]} : vector<4x16x8xf32> to vector<1x16x8xf32>
    %117 = vector.shape_cast %116 : vector<1x16x8xf32> to vector<16x8xf32>
    %118 = vector.extract_strided_slice %87 {offsets = [2, 0, 0], sizes = [1, 8, 32], strides = [1, 1, 1]} : vector<4x8x32xf32> to vector<1x8x32xf32>
    %119 = vector.shape_cast %118 : vector<1x8x32xf32> to vector<8x32xf32>
    %cst_65 = arith.constant dense<0.000000e+00> : vector<16x32xf32>
    %120 = tpu.matmul %117, %119, %cst_65 {dimension_numbers = #tpu.dot_dimension_numbers<[1], [0], [0], [1], [0, 0, 1, 1], [], []>} : vector<16x8xf32>, vector<8x32xf32>, vector<16x32xf32> -> vector<16x32xf32>
    %121 = arith.addf %115, %120 : vector<16x32xf32>
    %122 = vector.extract_strided_slice %104 {offsets = [3, 0, 0], sizes = [1, 16, 8], strides = [1, 1, 1]} : vector<4x16x8xf32> to vector<1x16x8xf32>
    %123 = vector.shape_cast %122 : vector<1x16x8xf32> to vector<16x8xf32>
    %124 = vector.extract_strided_slice %87 {offsets = [3, 0, 0], sizes = [1, 8, 32], strides = [1, 1, 1]} : vector<4x8x32xf32> to vector<1x8x32xf32>
    %125 = vector.shape_cast %124 : vector<1x8x32xf32> to vector<8x32xf32>
    %cst_66 = arith.constant dense<0.000000e+00> : vector<16x32xf32>
    %126 = tpu.matmul %123, %125, %cst_66 {dimension_numbers = #tpu.dot_dimension_numbers<[1], [0], [0], [1], [0, 0, 1, 1], [], []>} : vector<16x8xf32>, vector<8x32xf32>, vector<16x32xf32> -> vector<16x32xf32>
    %127 = arith.addf %121, %126 : vector<16x32xf32>
    %128 = arith.addf %127, %76 : vector<16x32xf32>
    %cst_67 = arith.constant dense<0.000000e+00> : vector<16xf32>
    %129 = vector.multi_reduction <add>, %128, %cst_67 [1] : vector<16x32xf32> to vector<16xf32>
    %130 = vector.shape_cast %129 : vector<16xf32> to vector<16x1xf32>
    %cst_68 = arith.constant 3.200000e+01 : f32
    %131 = vector.broadcast %cst_68 : f32 to vector<16x1xf32>
    %132 = arith.divf %130, %131 : vector<16x1xf32>
    %133 = vector.broadcast %132 : vector<16x1xf32> to vector<16x32xf32>
    %134 = arith.subf %128, %133 : vector<16x32xf32>
    %135 = arith.mulf %134, %134 : vector<16x32xf32>
    %cst_69 = arith.constant dense<0.000000e+00> : vector<16xf32>
    %136 = vector.multi_reduction <add>, %135, %cst_69 [1] : vector<16x32xf32> to vector<16xf32>
    %137 = vector.shape_cast %136 : vector<16xf32> to vector<16x1xf32>
    %cst_70 = arith.constant 3.200000e+01 : f32
    %138 = vector.broadcast %cst_70 : f32 to vector<16x1xf32>
    %139 = arith.divf %137, %138 : vector<16x1xf32>
    %140 = vector.broadcast %132 : vector<16x1xf32> to vector<16x32xf32>
    %141 = arith.subf %128, %140 : vector<16x32xf32>
    %cst_71 = arith.constant 9.99999974E-6 : f32
    %142 = vector.broadcast %cst_71 : f32 to vector<16x1xf32>
    %143 = arith.addf %139, %142 : vector<16x1xf32>
    %144 = math.rsqrt %143 : vector<16x1xf32>
    %145 = vector.broadcast %144 : vector<16x1xf32> to vector<16x32xf32>
    %146 = arith.mulf %141, %145 : vector<16x32xf32>
    %c0_72 = arith.constant 0 : index
    %c0_73 = arith.constant 0 : index
    %c0_74 = arith.constant 0 : index
    %147 = vector.load %arg13[%c0_72, %c0_73, %c0_74] : memref<2x32x64xf32, #tpu.memory_space<vmem>>, vector<1x32x64xf32>
    %148 = vector.shape_cast %147 : vector<1x32x64xf32> to vector<32x64xf32>
    %cst_75 = arith.constant dense<0.000000e+00> : vector<16x64xf32>
    %149 = tpu.matmul %146, %148, %cst_75 {dimension_numbers = #tpu.dot_dimension_numbers<[1], [0], [0], [1], [0, 0, 1, 1], [], []>} : vector<16x32xf32>, vector<32x64xf32>, vector<16x64xf32> -> vector<16x64xf32>
    %cst_76 = arith.constant 0.000000e+00 : f32
    %150 = vector.broadcast %cst_76 : f32 to vector<16x64xf32>
    %151 = arith.maximumf %149, %150 : vector<16x64xf32>
    %c0_77 = arith.constant 0 : index
    %c0_78 = arith.constant 0 : index
    %c0_79 = arith.constant 0 : index
    %152 = vector.load %arg14[%c0_77, %c0_78, %c0_79] : memref<2x64x32xf32, #tpu.memory_space<vmem>>, vector<1x64x32xf32>
    %153 = vector.shape_cast %152 : vector<1x64x32xf32> to vector<64x32xf32>
    %cst_80 = arith.constant dense<0.000000e+00> : vector<16x32xf32>
    %154 = tpu.matmul %151, %153, %cst_80 {dimension_numbers = #tpu.dot_dimension_numbers<[1], [0], [0], [1], [0, 0, 1, 1], [], []>} : vector<16x64xf32>, vector<64x32xf32>, vector<16x32xf32> -> vector<16x32xf32>
    %155 = arith.addf %154, %146 : vector<16x32xf32>
    %cst_81 = arith.constant dense<0.000000e+00> : vector<16xf32>
    %156 = vector.multi_reduction <add>, %155, %cst_81 [1] : vector<16x32xf32> to vector<16xf32>
    %157 = vector.shape_cast %156 : vector<16xf32> to vector<16x1xf32>
    %cst_82 = arith.constant 3.200000e+01 : f32
    %158 = vector.broadcast %cst_82 : f32 to vector<16x1xf32>
    %159 = arith.divf %157, %158 : vector<16x1xf32>
    %160 = vector.broadcast %159 : vector<16x1xf32> to vector<16x32xf32>
    %161 = arith.subf %155, %160 : vector<16x32xf32>
    %162 = arith.mulf %161, %161 : vector<16x32xf32>
    %cst_83 = arith.constant dense<0.000000e+00> : vector<16xf32>
    %163 = vector.multi_reduction <add>, %162, %cst_83 [1] : vector<16x32xf32> to vector<16xf32>
    %164 = vector.shape_cast %163 : vector<16xf32> to vector<16x1xf32>
    %cst_84 = arith.constant 3.200000e+01 : f32
    %165 = vector.broadcast %cst_84 : f32 to vector<16x1xf32>
    %166 = arith.divf %164, %165 : vector<16x1xf32>
    %167 = vector.broadcast %159 : vector<16x1xf32> to vector<16x32xf32>
    %168 = arith.subf %155, %167 : vector<16x32xf32>
    %cst_85 = arith.constant 9.99999974E-6 : f32
    %169 = vector.broadcast %cst_85 : f32 to vector<16x1xf32>
    %170 = arith.addf %166, %169 : vector<16x1xf32>
    %171 = math.rsqrt %170 : vector<16x1xf32>
    %172 = vector.broadcast %171 : vector<16x1xf32> to vector<16x32xf32>
    %173 = arith.mulf %168, %172 : vector<16x32xf32>
    %174 = vector.shape_cast %32 : vector<8x8x8xf32> to vector<8x64xf32>
    %175 = vector.shape_cast %102 : vector<8x8x8xf32> to vector<8x64xf32>
    %176 = tpu.concatenate %174, %175 in 1 : vector<8x64xf32>, vector<8x64xf32> -> vector<8x128xf32>
    %c0_86 = arith.constant 0 : index
    %c0_87 = arith.constant 0 : index
    %c0_88 = arith.constant 0 : index
    %177 = vector.load %arg16[%c0_86, %c0_87, %c0_88] : memref<2x8x128xf32, #tpu.memory_space<vmem>>, vector<1x8x128xf32>
    %178 = vector.shape_cast %177 : vector<1x8x128xf32> to vector<8x128xf32>
    %179 = vector.shape_cast %176 : vector<8x128xf32> to vector<1x8x128xf32>
    tpu.vector_store %arg16[%c0_86, %c0_87, %c0_88], %179 {strides = array<i32>} : memref<2x8x128xf32, #tpu.memory_space<vmem>>, vector<1x8x128xf32>,
    %180 = vector.shape_cast %173 : vector<16x32xf32> to vector<1x16x32xf32>
    %181 = vector.shape_cast %180 : vector<1x16x32xf32> to vector<1x16x32xf32>
    %182 = vector.broadcast %181 : vector<1x16x32xf32> to vector<4x16x32xf32>
    %c1 = arith.constant 1 : index
    %c0_89 = arith.constant 0 : index
    %c0_90 = arith.constant 0 : index
    %c0_91 = arith.constant 0 : index
    %183 = vector.load %arg5[%c1, %c0_89, %c0_90, %c0_91] : memref<2x4x32x8xf32, #tpu.memory_space<vmem>>, vector<1x4x32x8xf32>
    %184 = vector.shape_cast %183 : vector<1x4x32x8xf32> to vector<4x32x8xf32>
    %c1_92 = arith.constant 1 : index
    %c0_93 = arith.constant 0 : index
    %c0_94 = arith.constant 0 : index
    %c0_95 = arith.constant 0 : index
    %185 = vector.load %arg6[%c1_92, %c0_93, %c0_94, %c0_95] : memref<2x4x32x8xf32, #tpu.memory_space<vmem>>, vector<1x4x32x8xf32>
    %186 = vector.shape_cast %185 : vector<1x4x32x8xf32> to vector<4x32x8xf32>
    %c1_96 = arith.constant 1 : index
    %c0_97 = arith.constant 0 : index
    %c0_98 = arith.constant 0 : index
    %c0_99 = arith.constant 0 : index
    %187 = vector.load %arg7[%c1_96, %c0_97, %c0_98, %c0_99] : memref<2x4x32x8xf32, #tpu.memory_space<vmem>>, vector<1x4x32x8xf32>
    %188 = vector.shape_cast %187 : vector<1x4x32x8xf32> to vector<4x32x8xf32>
    %c1_100 = arith.constant 1 : index
    %c0_101 = arith.constant 0 : index
    %c0_102 = arith.constant 0 : index
    %c0_103 = arith.constant 0 : index
    %189 = vector.load %arg8[%c1_100, %c0_101, %c0_102, %c0_103] : memref<2x4x8x32xf32, #tpu.memory_space<vmem>>, vector<1x4x8x32xf32>
    %190 = vector.shape_cast %189 : vector<1x4x8x32xf32> to vector<4x8x32xf32>
    "tpu.trace_start"() <{level = 10 : i32, message = "hnd,hdk->hnk"}> : () -> ()
    %cst_104 = arith.constant dense<0.000000e+00> : vector<4x16x8xf32>
    %191 = tpu.matmul %182, %184, %cst_104 {dimension_numbers = #tpu.dot_dimension_numbers<[2], [1], [1], [2], [0, 0, 0, 1, 1, 2], [0], [0]>} : vector<4x16x32xf32>, vector<4x32x8xf32>, vector<4x16x8xf32> -> vector<4x16x8xf32>
    %cst_105 = arith.constant dense<0.000000e+00> : vector<4x16x8xf32>
    %192 = tpu.matmul %182, %186, %cst_105 {dimension_numbers = #tpu.dot_dimension_numbers<[2], [1], [1], [2], [0, 0, 0, 1, 1, 2], [0], [0]>} : vector<4x16x32xf32>, vector<4x32x8xf32>, vector<4x16x8xf32> -> vector<4x16x8xf32>
    %cst_106 = arith.constant dense<0.000000e+00> : vector<4x16x8xf32>
    %193 = tpu.matmul %182, %188, %cst_106 {dimension_numbers = #tpu.dot_dimension_numbers<[2], [1], [1], [2], [0, 0, 0, 1, 1, 2], [0], [0]>} : vector<4x16x32xf32>, vector<4x32x8xf32>, vector<4x16x8xf32> -> vector<4x16x8xf32>
    "tpu.trace_stop"() : () -> ()
    %194 = vector.shape_cast %191 : vector<4x16x8xf32> to vector<8x8x8xf32>
    %195 = vector.shape_cast %192 : vector<4x16x8xf32> to vector<8x8x8xf32>
    %196 = vector.shape_cast %193 : vector<4x16x8xf32> to vector<8x8x8xf32>
    "tpu.trace_start"() <{level = 10 : i32, message = "gqd,gkd->gqk"}> : () -> ()
    %cst_107 = arith.constant dense<0.000000e+00> : vector<8x8x8xf32>
    %197 = tpu.matmul %194, %195, %cst_107 {dimension_numbers = #tpu.dot_dimension_numbers<[2], [2], [1], [1], [0, 0, 0, 1, 1, 1], [0], [0]>} : vector<8x8x8xf32>, vector<8x8x8xf32>, vector<8x8x8xf32> -> vector<8x8x8xf32>
    "tpu.trace_stop"() : () -> ()
    %cst_108 = arith.constant 0.353553385 : f32
    %198 = vector.broadcast %cst_108 : f32 to vector<8x8x8xf32>
    %199 = arith.mulf %197, %198 : vector<8x8x8xf32>
    %200 = arith.addf %199, %2 : vector<8x8x8xf32>
    %201 = math.exp %200 : vector<8x8x8xf32>
    %cst_109 = arith.constant dense<0.000000e+00> : vector<8x8xf32>
    %202 = vector.multi_reduction <add>, %201, %cst_109 [2] : vector<8x8x8xf32> to vector<8x8xf32>
    %203 = vector.shape_cast %202 : vector<8x8xf32> to vector<8x8x1xf32>
    %204 = vector.broadcast %203 : vector<8x8x1xf32> to vector<8x8x8xf32>
    %205 = arith.divf %201, %204 : vector<8x8x8xf32>
    "tpu.trace_start"() <{level = 10 : i32, message = "gqk,gkd->gqd"}> : () -> ()
    %cst_110 = arith.constant dense<0.000000e+00> : vector<8x8x8xf32>
    %206 = tpu.matmul %205, %196, %cst_110 {dimension_numbers = #tpu.dot_dimension_numbers<[2], [1], [1], [2], [0, 0, 0, 1, 1, 2], [0], [0]>} : vector<8x8x8xf32>, vector<8x8x8xf32>, vector<8x8x8xf32> -> vector<8x8x8xf32>
    "tpu.trace_stop"() : () -> ()
    %207 = vector.shape_cast %206 : vector<8x8x8xf32> to vector<4x16x8xf32>
    %208 = vector.extract_strided_slice %207 {offsets = [0, 0, 0], sizes = [1, 16, 8], strides = [1, 1, 1]} : vector<4x16x8xf32> to vector<1x16x8xf32>
    %209 = vector.shape_cast %208 : vector<1x16x8xf32> to vector<16x8xf32>
    %210 = vector.extract_strided_slice %190 {offsets = [0, 0, 0], sizes = [1, 8, 32], strides = [1, 1, 1]} : vector<4x8x32xf32> to vector<1x8x32xf32>
    %211 = vector.shape_cast %210 : vector<1x8x32xf32> to vector<8x32xf32>
    %cst_111 = arith.constant dense<0.000000e+00> : vector<16x32xf32>
    %212 = tpu.matmul %209, %211, %cst_111 {dimension_numbers = #tpu.dot_dimension_numbers<[1], [0], [0], [1], [0, 0, 1, 1], [], []>} : vector<16x8xf32>, vector<8x32xf32>, vector<16x32xf32> -> vector<16x32xf32>
    %213 = vector.extract_strided_slice %207 {offsets = [1, 0, 0], sizes = [1, 16, 8], strides = [1, 1, 1]} : vector<4x16x8xf32> to vector<1x16x8xf32>
    %214 = vector.shape_cast %213 : vector<1x16x8xf32> to vector<16x8xf32>
    %215 = vector.extract_strided_slice %190 {offsets = [1, 0, 0], sizes = [1, 8, 32], strides = [1, 1, 1]} : vector<4x8x32xf32> to vector<1x8x32xf32>
    %216 = vector.shape_cast %215 : vector<1x8x32xf32> to vector<8x32xf32>
    %cst_112 = arith.constant dense<0.000000e+00> : vector<16x32xf32>
    %217 = tpu.matmul %214, %216, %cst_112 {dimension_numbers = #tpu.dot_dimension_numbers<[1], [0], [0], [1], [0, 0, 1, 1], [], []>} : vector<16x8xf32>, vector<8x32xf32>, vector<16x32xf32> -> vector<16x32xf32>
    %218 = arith.addf %212, %217 : vector<16x32xf32>
    %219 = vector.extract_strided_slice %207 {offsets = [2, 0, 0], sizes = [1, 16, 8], strides = [1, 1, 1]} : vector<4x16x8xf32> to vector<1x16x8xf32>
    %220 = vector.shape_cast %219 : vector<1x16x8xf32> to vector<16x8xf32>
    %221 = vector.extract_strided_slice %190 {offsets = [2, 0, 0], sizes = [1, 8, 32], strides = [1, 1, 1]} : vector<4x8x32xf32> to vector<1x8x32xf32>
    %222 = vector.shape_cast %221 : vector<1x8x32xf32> to vector<8x32xf32>
    %cst_113 = arith.constant dense<0.000000e+00> : vector<16x32xf32>
    %223 = tpu.matmul %220, %222, %cst_113 {dimension_numbers = #tpu.dot_dimension_numbers<[1], [0], [0], [1], [0, 0, 1, 1], [], []>} : vector<16x8xf32>, vector<8x32xf32>, vector<16x32xf32> -> vector<16x32xf32>
    %224 = arith.addf %218, %223 : vector<16x32xf32>
    %225 = vector.extract_strided_slice %207 {offsets = [3, 0, 0], sizes = [1, 16, 8], strides = [1, 1, 1]} : vector<4x16x8xf32> to vector<1x16x8xf32>
    %226 = vector.shape_cast %225 : vector<1x16x8xf32> to vector<16x8xf32>
    %227 = vector.extract_strided_slice %190 {offsets = [3, 0, 0], sizes = [1, 8, 32], strides = [1, 1, 1]} : vector<4x8x32xf32> to vector<1x8x32xf32>
    %228 = vector.shape_cast %227 : vector<1x8x32xf32> to vector<8x32xf32>
    %cst_114 = arith.constant dense<0.000000e+00> : vector<16x32xf32>
    %229 = tpu.matmul %226, %228, %cst_114 {dimension_numbers = #tpu.dot_dimension_numbers<[1], [0], [0], [1], [0, 0, 1, 1], [], []>} : vector<16x8xf32>, vector<8x32xf32>, vector<16x32xf32> -> vector<16x32xf32>
    %230 = arith.addf %224, %229 : vector<16x32xf32>
    %231 = arith.addf %230, %173 : vector<16x32xf32>
    %cst_115 = arith.constant dense<0.000000e+00> : vector<16xf32>
    %232 = vector.multi_reduction <add>, %231, %cst_115 [1] : vector<16x32xf32> to vector<16xf32>
    %233 = vector.shape_cast %232 : vector<16xf32> to vector<16x1xf32>
    %cst_116 = arith.constant 3.200000e+01 : f32
    %234 = vector.broadcast %cst_116 : f32 to vector<16x1xf32>
    %235 = arith.divf %233, %234 : vector<16x1xf32>
    %236 = vector.broadcast %235 : vector<16x1xf32> to vector<16x32xf32>
    %237 = arith.subf %231, %236 : vector<16x32xf32>
    %238 = arith.mulf %237, %237 : vector<16x32xf32>
    %cst_117 = arith.constant dense<0.000000e+00> : vector<16xf32>
    %239 = vector.multi_reduction <add>, %238, %cst_117 [1] : vector<16x32xf32> to vector<16xf32>
    %240 = vector.shape_cast %239 : vector<16xf32> to vector<16x1xf32>
    %cst_118 = arith.constant 3.200000e+01 : f32
    %241 = vector.broadcast %cst_118 : f32 to vector<16x1xf32>
    %242 = arith.divf %240, %241 : vector<16x1xf32>
    %243 = vector.broadcast %235 : vector<16x1xf32> to vector<16x32xf32>
    %244 = arith.subf %231, %243 : vector<16x32xf32>
    %cst_119 = arith.constant 9.99999974E-6 : f32
    %245 = vector.broadcast %cst_119 : f32 to vector<16x1xf32>
    %246 = arith.addf %242, %245 : vector<16x1xf32>
    %247 = math.rsqrt %246 : vector<16x1xf32>
    %248 = vector.broadcast %247 : vector<16x1xf32> to vector<16x32xf32>
    %249 = arith.mulf %244, %248 : vector<16x32xf32>
    %250 = vector.shape_cast %249 : vector<16x32xf32> to vector<1x16x32xf32>
    %251 = vector.shape_cast %250 : vector<1x16x32xf32> to vector<1x16x32xf32>
    %252 = vector.broadcast %251 : vector<1x16x32xf32> to vector<4x16x32xf32>
    %c1_120 = arith.constant 1 : index
    %c0_121 = arith.constant 0 : index
    %c0_122 = arith.constant 0 : index
    %c0_123 = arith.constant 0 : index
    %253 = vector.load %arg9[%c1_120, %c0_121, %c0_122, %c0_123] : memref<2x4x32x8xf32, #tpu.memory_space<vmem>>, vector<1x4x32x8xf32>
    %254 = vector.shape_cast %253 : vector<1x4x32x8xf32> to vector<4x32x8xf32>
    %c1_124 = arith.constant 1 : index
    %c0_125 = arith.constant 0 : index
    %c0_126 = arith.constant 0 : index
    %c0_127 = arith.constant 0 : index
    %255 = vector.load %arg10[%c1_124, %c0_125, %c0_126, %c0_127] : memref<2x4x32x8xf32, #tpu.memory_space<vmem>>, vector<1x4x32x8xf32>
    %256 = vector.shape_cast %255 : vector<1x4x32x8xf32> to vector<4x32x8xf32>
    %c1_128 = arith.constant 1 : index
    %c0_129 = arith.constant 0 : index
    %c0_130 = arith.constant 0 : index
    %c0_131 = arith.constant 0 : index
    %257 = vector.load %arg11[%c1_128, %c0_129, %c0_130, %c0_131] : memref<2x4x32x8xf32, #tpu.memory_space<vmem>>, vector<1x4x32x8xf32>
    %258 = vector.shape_cast %257 : vector<1x4x32x8xf32> to vector<4x32x8xf32>
    %c1_132 = arith.constant 1 : index
    %c0_133 = arith.constant 0 : index
    %c0_134 = arith.constant 0 : index
    %c0_135 = arith.constant 0 : index
    %259 = vector.load %arg12[%c1_132, %c0_133, %c0_134, %c0_135] : memref<2x4x8x32xf32, #tpu.memory_space<vmem>>, vector<1x4x8x32xf32>
    %260 = vector.shape_cast %259 : vector<1x4x8x32xf32> to vector<4x8x32xf32>
    "tpu.trace_start"() <{level = 10 : i32, message = "hnd,hdk->hnk"}> : () -> ()
    %cst_136 = arith.constant dense<0.000000e+00> : vector<4x16x8xf32>
    %261 = tpu.matmul %252, %254, %cst_136 {dimension_numbers = #tpu.dot_dimension_numbers<[2], [1], [1], [2], [0, 0, 0, 1, 1, 2], [0], [0]>} : vector<4x16x32xf32>, vector<4x32x8xf32>, vector<4x16x8xf32> -> vector<4x16x8xf32>
    %cst_137 = arith.constant dense<0.000000e+00> : vector<4x16x8xf32>
    %262 = tpu.matmul %6, %256, %cst_137 {dimension_numbers = #tpu.dot_dimension_numbers<[2], [1], [1], [2], [0, 0, 0, 1, 1, 2], [0], [0]>} : vector<4x16x32xf32>, vector<4x32x8xf32>, vector<4x16x8xf32> -> vector<4x16x8xf32>
    %cst_138 = arith.constant dense<0.000000e+00> : vector<4x16x8xf32>
    %263 = tpu.matmul %6, %258, %cst_138 {dimension_numbers = #tpu.dot_dimension_numbers<[2], [1], [1], [2], [0, 0, 0, 1, 1, 2], [0], [0]>} : vector<4x16x32xf32>, vector<4x32x8xf32>, vector<4x16x8xf32> -> vector<4x16x8xf32>
    "tpu.trace_stop"() : () -> ()
    %264 = vector.shape_cast %261 : vector<4x16x8xf32> to vector<8x8x8xf32>
    %265 = vector.shape_cast %262 : vector<4x16x8xf32> to vector<8x8x8xf32>
    %266 = vector.shape_cast %263 : vector<4x16x8xf32> to vector<8x8x8xf32>
    "tpu.trace_start"() <{level = 10 : i32, message = "gqd,gkd->gqk"}> : () -> ()
    %cst_139 = arith.constant dense<0.000000e+00> : vector<8x8x8xf32>
    %267 = tpu.matmul %264, %265, %cst_139 {dimension_numbers = #tpu.dot_dimension_numbers<[2], [2], [1], [1], [0, 0, 0, 1, 1, 1], [0], [0]>} : vector<8x8x8xf32>, vector<8x8x8xf32>, vector<8x8x8xf32> -> vector<8x8x8xf32>
    "tpu.trace_stop"() : () -> ()
    %cst_140 = arith.constant 0.353553385 : f32
    %268 = vector.broadcast %cst_140 : f32 to vector<8x8x8xf32>
    %269 = arith.mulf %267, %268 : vector<8x8x8xf32>
    %270 = arith.addf %269, %3 : vector<8x8x8xf32>
    %271 = math.exp %270 : vector<8x8x8xf32>
    %cst_141 = arith.constant dense<0.000000e+00> : vector<8x8xf32>
    %272 = vector.multi_reduction <add>, %271, %cst_141 [2] : vector<8x8x8xf32> to vector<8x8xf32>
    %273 = vector.shape_cast %272 : vector<8x8xf32> to vector<8x8x1xf32>
    %274 = vector.broadcast %273 : vector<8x8x1xf32> to vector<8x8x8xf32>
    %275 = arith.divf %271, %274 : vector<8x8x8xf32>
    "tpu.trace_start"() <{level = 10 : i32, message = "gqk,gkd->gqd"}> : () -> ()
    %cst_142 = arith.constant dense<0.000000e+00> : vector<8x8x8xf32>
    %276 = tpu.matmul %275, %266, %cst_142 {dimension_numbers = #tpu.dot_dimension_numbers<[2], [1], [1], [2], [0, 0, 0, 1, 1, 2], [0], [0]>} : vector<8x8x8xf32>, vector<8x8x8xf32>, vector<8x8x8xf32> -> vector<8x8x8xf32>
    "tpu.trace_stop"() : () -> ()
    %277 = vector.shape_cast %276 : vector<8x8x8xf32> to vector<4x16x8xf32>
    %278 = vector.extract_strided_slice %277 {offsets = [0, 0, 0], sizes = [1, 16, 8], strides = [1, 1, 1]} : vector<4x16x8xf32> to vector<1x16x8xf32>
    %279 = vector.shape_cast %278 : vector<1x16x8xf32> to vector<16x8xf32>
    %280 = vector.extract_strided_slice %260 {offsets = [0, 0, 0], sizes = [1, 8, 32], strides = [1, 1, 1]} : vector<4x8x32xf32> to vector<1x8x32xf32>
    %281 = vector.shape_cast %280 : vector<1x8x32xf32> to vector<8x32xf32>
    %cst_143 = arith.constant dense<0.000000e+00> : vector<16x32xf32>
    %282 = tpu.matmul %279, %281, %cst_143 {dimension_numbers = #tpu.dot_dimension_numbers<[1], [0], [0], [1], [0, 0, 1, 1], [], []>} : vector<16x8xf32>, vector<8x32xf32>, vector<16x32xf32> -> vector<16x32xf32>
    %283 = vector.extract_strided_slice %277 {offsets = [1, 0, 0], sizes = [1, 16, 8], strides = [1, 1, 1]} : vector<4x16x8xf32> to vector<1x16x8xf32>
    %284 = vector.shape_cast %283 : vector<1x16x8xf32> to vector<16x8xf32>
    %285 = vector.extract_strided_slice %260 {offsets = [1, 0, 0], sizes = [1, 8, 32], strides = [1, 1, 1]} : vector<4x8x32xf32> to vector<1x8x32xf32>
    %286 = vector.shape_cast %285 : vector<1x8x32xf32> to vector<8x32xf32>
    %cst_144 = arith.constant dense<0.000000e+00> : vector<16x32xf32>
    %287 = tpu.matmul %284, %286, %cst_144 {dimension_numbers = #tpu.dot_dimension_numbers<[1], [0], [0], [1], [0, 0, 1, 1], [], []>} : vector<16x8xf32>, vector<8x32xf32>, vector<16x32xf32> -> vector<16x32xf32>
    %288 = arith.addf %282, %287 : vector<16x32xf32>
    %289 = vector.extract_strided_slice %277 {offsets = [2, 0, 0], sizes = [1, 16, 8], strides = [1, 1, 1]} : vector<4x16x8xf32> to vector<1x16x8xf32>
    %290 = vector.shape_cast %289 : vector<1x16x8xf32> to vector<16x8xf32>
    %291 = vector.extract_strided_slice %260 {offsets = [2, 0, 0], sizes = [1, 8, 32], strides = [1, 1, 1]} : vector<4x8x32xf32> to vector<1x8x32xf32>
    %292 = vector.shape_cast %291 : vector<1x8x32xf32> to vector<8x32xf32>
    %cst_145 = arith.constant dense<0.000000e+00> : vector<16x32xf32>
    %293 = tpu.matmul %290, %292, %cst_145 {dimension_numbers = #tpu.dot_dimension_numbers<[1], [0], [0], [1], [0, 0, 1, 1], [], []>} : vector<16x8xf32>, vector<8x32xf32>, vector<16x32xf32> -> vector<16x32xf32>
    %294 = arith.addf %288, %293 : vector<16x32xf32>
    %295 = vector.extract_strided_slice %277 {offsets = [3, 0, 0], sizes = [1, 16, 8], strides = [1, 1, 1]} : vector<4x16x8xf32> to vector<1x16x8xf32>
    %296 = vector.shape_cast %295 : vector<1x16x8xf32> to vector<16x8xf32>
    %297 = vector.extract_strided_slice %260 {offsets = [3, 0, 0], sizes = [1, 8, 32], strides = [1, 1, 1]} : vector<4x8x32xf32> to vector<1x8x32xf32>
    %298 = vector.shape_cast %297 : vector<1x8x32xf32> to vector<8x32xf32>
    %cst_146 = arith.constant dense<0.000000e+00> : vector<16x32xf32>
    %299 = tpu.matmul %296, %298, %cst_146 {dimension_numbers = #tpu.dot_dimension_numbers<[1], [0], [0], [1], [0, 0, 1, 1], [], []>} : vector<16x8xf32>, vector<8x32xf32>, vector<16x32xf32> -> vector<16x32xf32>
    %300 = arith.addf %294, %299 : vector<16x32xf32>
    %301 = arith.addf %300, %249 : vector<16x32xf32>
    %cst_147 = arith.constant dense<0.000000e+00> : vector<16xf32>
    %302 = vector.multi_reduction <add>, %301, %cst_147 [1] : vector<16x32xf32> to vector<16xf32>
    %303 = vector.shape_cast %302 : vector<16xf32> to vector<16x1xf32>
    %cst_148 = arith.constant 3.200000e+01 : f32
    %304 = vector.broadcast %cst_148 : f32 to vector<16x1xf32>
    %305 = arith.divf %303, %304 : vector<16x1xf32>
    %306 = vector.broadcast %305 : vector<16x1xf32> to vector<16x32xf32>
    %307 = arith.subf %301, %306 : vector<16x32xf32>
    %308 = arith.mulf %307, %307 : vector<16x32xf32>
    %cst_149 = arith.constant dense<0.000000e+00> : vector<16xf32>
    %309 = vector.multi_reduction <add>, %308, %cst_149 [1] : vector<16x32xf32> to vector<16xf32>
    %310 = vector.shape_cast %309 : vector<16xf32> to vector<16x1xf32>
    %cst_150 = arith.constant 3.200000e+01 : f32
    %311 = vector.broadcast %cst_150 : f32 to vector<16x1xf32>
    %312 = arith.divf %310, %311 : vector<16x1xf32>
    %313 = vector.broadcast %305 : vector<16x1xf32> to vector<16x32xf32>
    %314 = arith.subf %301, %313 : vector<16x32xf32>
    %cst_151 = arith.constant 9.99999974E-6 : f32
    %315 = vector.broadcast %cst_151 : f32 to vector<16x1xf32>
    %316 = arith.addf %312, %315 : vector<16x1xf32>
    %317 = math.rsqrt %316 : vector<16x1xf32>
    %318 = vector.broadcast %317 : vector<16x1xf32> to vector<16x32xf32>
    %319 = arith.mulf %314, %318 : vector<16x32xf32>
    %c1_152 = arith.constant 1 : index
    %c0_153 = arith.constant 0 : index
    %c0_154 = arith.constant 0 : index
    %320 = vector.load %arg13[%c1_152, %c0_153, %c0_154] : memref<2x32x64xf32, #tpu.memory_space<vmem>>, vector<1x32x64xf32>
    %321 = vector.shape_cast %320 : vector<1x32x64xf32> to vector<32x64xf32>
    %cst_155 = arith.constant dense<0.000000e+00> : vector<16x64xf32>
    %322 = tpu.matmul %319, %321, %cst_155 {dimension_numbers = #tpu.dot_dimension_numbers<[1], [0], [0], [1], [0, 0, 1, 1], [], []>} : vector<16x32xf32>, vector<32x64xf32>, vector<16x64xf32> -> vector<16x64xf32>
    %cst_156 = arith.constant 0.000000e+00 : f32
    %323 = vector.broadcast %cst_156 : f32 to vector<16x64xf32>
    %324 = arith.maximumf %322, %323 : vector<16x64xf32>
    %c1_157 = arith.constant 1 : index
    %c0_158 = arith.constant 0 : index
    %c0_159 = arith.constant 0 : index
    %325 = vector.load %arg14[%c1_157, %c0_158, %c0_159] : memref<2x64x32xf32, #tpu.memory_space<vmem>>, vector<1x64x32xf32>
    %326 = vector.shape_cast %325 : vector<1x64x32xf32> to vector<64x32xf32>
    %cst_160 = arith.constant dense<0.000000e+00> : vector<16x32xf32>
    %327 = tpu.matmul %324, %326, %cst_160 {dimension_numbers = #tpu.dot_dimension_numbers<[1], [0], [0], [1], [0, 0, 1, 1], [], []>} : vector<16x64xf32>, vector<64x32xf32>, vector<16x32xf32> -> vector<16x32xf32>
    %328 = arith.addf %327, %319 : vector<16x32xf32>
    %cst_161 = arith.constant dense<0.000000e+00> : vector<16xf32>
    %329 = vector.multi_reduction <add>, %328, %cst_161 [1] : vector<16x32xf32> to vector<16xf32>
    %330 = vector.shape_cast %329 : vector<16xf32> to vector<16x1xf32>
    %cst_162 = arith.constant 3.200000e+01 : f32
    %331 = vector.broadcast %cst_162 : f32 to vector<16x1xf32>
    %332 = arith.divf %330, %331 : vector<16x1xf32>
    %333 = vector.broadcast %332 : vector<16x1xf32> to vector<16x32xf32>
    %334 = arith.subf %328, %333 : vector<16x32xf32>
    %335 = arith.mulf %334, %334 : vector<16x32xf32>
    %cst_163 = arith.constant dense<0.000000e+00> : vector<16xf32>
    %336 = vector.multi_reduction <add>, %335, %cst_163 [1] : vector<16x32xf32> to vector<16xf32>
    %337 = vector.shape_cast %336 : vector<16xf32> to vector<16x1xf32>
    %cst_164 = arith.constant 3.200000e+01 : f32
    %338 = vector.broadcast %cst_164 : f32 to vector<16x1xf32>
    %339 = arith.divf %337, %338 : vector<16x1xf32>
    %340 = vector.broadcast %332 : vector<16x1xf32> to vector<16x32xf32>
    %341 = arith.subf %328, %340 : vector<16x32xf32>
    %cst_165 = arith.constant 9.99999974E-6 : f32
    %342 = vector.broadcast %cst_165 : f32 to vector<16x1xf32>
    %343 = arith.addf %339, %342 : vector<16x1xf32>
    %344 = math.rsqrt %343 : vector<16x1xf32>
    %345 = vector.broadcast %344 : vector<16x1xf32> to vector<16x32xf32>
    %346 = arith.mulf %341, %345 : vector<16x32xf32>
    %347 = vector.shape_cast %205 : vector<8x8x8xf32> to vector<8x64xf32>
    %348 = vector.shape_cast %275 : vector<8x8x8xf32> to vector<8x64xf32>
    %349 = tpu.concatenate %347, %348 in 1 : vector<8x64xf32>, vector<8x64xf32> -> vector<8x128xf32>
    %c1_166 = arith.constant 1 : index
    %c0_167 = arith.constant 0 : index
    %c0_168 = arith.constant 0 : index
    %350 = vector.load %arg16[%c1_166, %c0_167, %c0_168] : memref<2x8x128xf32, #tpu.memory_space<vmem>>, vector<1x8x128xf32>
    %351 = vector.shape_cast %350 : vector<1x8x128xf32> to vector<8x128xf32>
    %352 = vector.shape_cast %349 : vector<8x128xf32> to vector<1x8x128xf32>
    tpu.vector_store %arg16[%c1_166, %c0_167, %c0_168], %352 {strides = array<i32>} : memref<2x8x128xf32, #tpu.memory_space<vmem>>, vector<1x8x128xf32>,
    %c0_169 = arith.constant 0 : index
    %c0_170 = arith.constant 0 : index
    %353 = vector.load %arg15[%c0_169, %c0_170] : memref<16x32xf32, #tpu.memory_space<vmem>>, vector<16x32xf32>
    tpu.vector_store %arg15[%c0_169, %c0_170], %346 {strides = array<i32>} : memref<16x32xf32, #tpu.memory_space<vmem>>, vector<16x32xf32>,
    return
  }
  func.func @transform_0(%arg0: i32) -> (i32, i32) {
    %c0_i32 = arith.constant 0 : i32
    %c0_i32_0 = arith.constant 0 : i32
    %c0_i32_1 = arith.constant 0 : i32
    return %c0_i32, %c0_i32_0 : i32, i32
  }
  func.func @transform_1(%arg0: i32) -> (i32, i32) {
    %c0_i32 = arith.constant 0 : i32
    %c0_i32_0 = arith.constant 0 : i32
    %c0_i32_1 = arith.constant 0 : i32
    return %c0_i32, %c0_i32_0 : i32, i32
  }
  func.func @transform_2(%arg0: i32) -> (i32, i32, i32) {
    %c0_i32 = arith.constant 0 : i32
    %c0_i32_0 = arith.constant 0 : i32
    %c0_i32_1 = arith.constant 0 : i32
    %c0_i32_2 = arith.constant 0 : i32
    return %c0_i32, %c0_i32_0, %c0_i32_1 : i32, i32, i32
  }
  func.func @transform_3(%arg0: i32) -> (i32, i32, i32) {
    %c0_i32 = arith.constant 0 : i32
    %c0_i32_0 = arith.constant 0 : i32
    %c0_i32_1 = arith.constant 0 : i32
    %c0_i32_2 = arith.constant 0 : i32
    return %c0_i32, %c0_i32_0, %c0_i32_1 : i32, i32, i32
  }
  func.func @transform_4(%arg0: i32) -> (i32, i32, i32, i32) {
    %c0_i32 = arith.constant 0 : i32
    %c0_i32_0 = arith.constant 0 : i32
    %c0_i32_1 = arith.constant 0 : i32
    %c0_i32_2 = arith.constant 0 : i32
    %c0_i32_3 = arith.constant 0 : i32
    return %c0_i32, %c0_i32_0, %c0_i32_1, %c0_i32_2 : i32, i32, i32, i32
  }
  func.func @transform_5(%arg0: i32) -> (i32, i32, i32, i32) {
    %c0_i32 = arith.constant 0 : i32
    %c0_i32_0 = arith.constant 0 : i32
    %c0_i32_1 = arith.constant 0 : i32
    %c0_i32_2 = arith.constant 0 : i32
    %c0_i32_3 = arith.constant 0 : i32
    return %c0_i32, %c0_i32_0, %c0_i32_1, %c0_i32_2 : i32, i32, i32, i32
  }
  func.func @transform_6(%arg0: i32) -> (i32, i32, i32, i32) {
    %c0_i32 = arith.constant 0 : i32
    %c0_i32_0 = arith.constant 0 : i32
    %c0_i32_1 = arith.constant 0 : i32
    %c0_i32_2 = arith.constant 0 : i32
    %c0_i32_3 = arith.constant 0 : i32
    return %c0_i32, %c0_i32_0, %c0_i32_1, %c0_i32_2 : i32, i32, i32, i32
  }
  func.func @transform_7(%arg0: i32) -> (i32, i32, i32, i32) {
    %c0_i32 = arith.constant 0 : i32
    %c0_i32_0 = arith.constant 0 : i32
    %c0_i32_1 = arith.constant 0 : i32
    %c0_i32_2 = arith.constant 0 : i32
    %c0_i32_3 = arith.constant 0 : i32
    return %c0_i32, %c0_i32_0, %c0_i32_1, %c0_i32_2 : i32, i32, i32, i32
  }
  func.func @transform_8(%arg0: i32) -> (i32, i32, i32, i32) {
    %c0_i32 = arith.constant 0 : i32
    %c0_i32_0 = arith.constant 0 : i32
    %c0_i32_1 = arith.constant 0 : i32
    %c0_i32_2 = arith.constant 0 : i32
    %c0_i32_3 = arith.constant 0 : i32
    return %c0_i32, %c0_i32_0, %c0_i32_1, %c0_i32_2 : i32, i32, i32, i32
  }
  func.func @transform_9(%arg0: i32) -> (i32, i32, i32, i32) {
    %c0_i32 = arith.constant 0 : i32
    %c0_i32_0 = arith.constant 0 : i32
    %c0_i32_1 = arith.constant 0 : i32
    %c0_i32_2 = arith.constant 0 : i32
    %c0_i32_3 = arith.constant 0 : i32
    return %c0_i32, %c0_i32_0, %c0_i32_1, %c0_i32_2 : i32, i32, i32, i32
  }
  func.func @transform_10(%arg0: i32) -> (i32, i32, i32, i32) {
    %c0_i32 = arith.constant 0 : i32
    %c0_i32_0 = arith.constant 0 : i32
    %c0_i32_1 = arith.constant 0 : i32
    %c0_i32_2 = arith.constant 0 : i32
    %c0_i32_3 = arith.constant 0 : i32
    return %c0_i32, %c0_i32_0, %c0_i32_1, %c0_i32_2 : i32, i32, i32, i32
  }
  func.func @transform_11(%arg0: i32) -> (i32, i32, i32, i32) {
    %c0_i32 = arith.constant 0 : i32
    %c0_i32_0 = arith.constant 0 : i32
    %c0_i32_1 = arith.constant 0 : i32
    %c0_i32_2 = arith.constant 0 : i32
    %c0_i32_3 = arith.constant 0 : i32
    return %c0_i32, %c0_i32_0, %c0_i32_1, %c0_i32_2 : i32, i32, i32, i32
  }
  func.func @transform_12(%arg0: i32) -> (i32, i32, i32) {
    %c0_i32 = arith.constant 0 : i32
    %c0_i32_0 = arith.constant 0 : i32
    %c0_i32_1 = arith.constant 0 : i32
    %c0_i32_2 = arith.constant 0 : i32
    return %c0_i32, %c0_i32_0, %c0_i32_1 : i32, i32, i32
  }
  func.func @transform_13(%arg0: i32) -> (i32, i32, i32) {
    %c0_i32 = arith.constant 0 : i32
    %c0_i32_0 = arith.constant 0 : i32
    %c0_i32_1 = arith.constant 0 : i32
    %c0_i32_2 = arith.constant 0 : i32
    return %c0_i32, %c0_i32_0, %c0_i32_1 : i32, i32, i32
  }
  func.func @transform_14(%arg0: i32) -> (i32, i32) {
    %c0_i32 = arith.constant 0 : i32
    %c0_i32_0 = arith.constant 0 : i32
    %c0_i32_1 = arith.constant 0 : i32
    return %c0_i32, %c0_i32_0 : i32, i32
  }
  func.func @transform_15(%arg0: i32) -> (i32, i32, i32) {
    %c0_i32 = arith.constant 0 : i32
    %c0_i32_0 = arith.constant 0 : i32
    %c0_i32_1 = arith.constant 0 : i32
    %c0_i32_2 = arith.constant 0 : i32
    return %c0_i32, %c0_i32_0, %c0_i32_1 : i32, i32, i32
  }
}

</mosaic_0001>

<bundles_post_ra>
// kernel: decoder_forward.1
= control target key start
LH: loop header
LB: loop body
LE: loop exit
PB: predicated region body
PF: predicated region fallthrough
CT: control target
= control target key end

     0   :  { %vm122_vm0 = vcmask 261120   ;;  %s16044_s0 = inlined_call_operand.vmem [shape: f32[16,32], index: 0, kind: input, shape index: {}]   ;;  %s16045_s1 = inlined_call_operand.vmem [shape: f32[16,32], index: 1, kind: input, shape index: {}]   ;;  %s16046_s2 = inlined_call_operand.vmem [shape: f32[8,8,8], index: 2, kind: input, shape index: {}]   ;;  %s16047_s3 = inlined_call_operand.vmem [shape: f32[8,8,8], index: 3, kind: input, shape index: {}]   ;;  %s16048_s4 = inlined_call_operand.vmem [shape: f32[2,4,32,8], index: 4, kind: input, shape index: {}]   ;;  %s16049_s5 = inlined_call_operand.vmem [shape: f32[2,4,32,8], index: 5, kind: input, shape index: {}]   ;;  %s16050_s6 = inlined_call_operand.vmem [shape: f32[2,4,32,8], index: 6, kind: input, shape index: {}]   ;;  %s16051_s7 = inlined_call_operand.vmem [shape: f32[2,4,8,32], index: 7, kind: input, shape index: {}]   ;;  %s16052_s8 = inlined_call_operand.vmem [shape: f32[2,4,32,8], index: 8, kind: input, shape index: {}]   ;;  %s16053_s9 = inlined_call_operand.vmem [shape: f32[2,4,32,8], index: 9, kind: input, shape index: {}]   ;;  %s16054_s10 = inlined_call_operand.vmem [shape: f32[2,4,32,8], index: 10, kind: input, shape index: {}]   ;;  %s16055_s11 = inlined_call_operand.vmem [shape: f32[2,4,8,32], index: 11, kind: input, shape index: {}]   ;;  %s16056_s12 = inlined_call_operand.vmem [shape: f32[2,32,64], index: 12, kind: input, shape index: {}]   ;;  %s16057_s13 = inlined_call_operand.vmem [shape: f32[2,64,32], index: 13, kind: input, shape index: {}]   ;;  %s16058_s14 = inlined_call_operand.hbm [shape: f32[16,32], index: 14, kind: output, shape index: {0}]   ;;  %s16059_s15 = inlined_call_operand.vmem [shape: f32[2,8,128], index: 15, kind: output, shape index: {1}]  }
   0x1   :  { %v70_v0 = vld [vmem:[%s16048_s4] sm:$0xff]  ;;  %v71_v1 = vld [vmem:[%s16048_s4 + $0x8] sm:$0xff]  ;;  %v72_v5 = vld [vmem:[%s16048_s4 + $0x10] sm:$0xff] }
   0x2   :  { %v74_v2 = vld [vmem:[%s16048_s4 + $0x20] sm:$0xff]  ;;  %v13363_v3 = vpack.c.bf16 %v71_v1, %v70_v0  ;;  %v75_v4 = vld [vmem:[%s16048_s4 + $0x28] sm:$0xff]  ;;  %v73_v6 = vld [vmem:[%s16048_s4 + $0x18] sm:$0xff] }
   0x3   :  { %v13371_v7 = vpack.c.bf16 %v75_v4, %v74_v2  ;;  %v13367_v8 = vpack.c.bf16 %v73_v6, %v72_v5  ;;  %v76_v9 = vld [vmem:[%s16048_s4 + $0x30] sm:$0xff]  ;;  %v77_v10 = vld [vmem:[%s16048_s4 + $0x38] sm:$0xff]  ;;  %v14148_v11 = vld [vmem:[%s16044_s0] sm:$0xff] }
   0x4   :  { %13364 = vmatprep.subr.bf16.mxu0 %v13363_v3  ;;  %v13375_v12 = vpack.c.bf16 %v77_v10, %v76_v9  ;;  %12383 = vmatprep.mubr.msk.f32.mxu0 %vm122_vm0, %v14148_v11  ;;  %v78_v13 = vld [vmem:[%s16048_s4 + $0x40] sm:$0xff]  ;;  %v79_v14 = vld [vmem:[%s16048_s4 + $0x48] sm:$0xff]  ;;  %v80_v19 = vld [vmem:[%s16048_s4 + $0x50] sm:$0xff] }
   0x5   :  { %13372 = vmatprep.subr.bf16.mxu1 %v13371_v7  ;;  %13366 = vmatpush3.bf16.msra.mxu0 %v13363_v3  ;;  %v82_v15 = vld [vmem:[%s16048_s4 + $0x60] sm:$0xff]  ;;  %v83_v16 = vld [vmem:[%s16048_s4 + $0x68] sm:$0xff]  ;;  %v13379_v17 = vpack.c.bf16 %v79_v14, %v78_v13  ;;  %v81_v20 = vld [vmem:[%s16048_s4 + $0x58] sm:$0xff] }
   0x6   :  { %13374 = vmatpush3.bf16.msra.mxu1 %v13371_v7  ;;  %13368 = vmatprep.subr.bf16.mxu0 %v13367_v8  ;;  %v13387_v18 = vpack.c.bf16 %v83_v16, %v82_v15  ;;  %v84_v21 = vld [vmem:[%s16048_s4 + $0x70] sm:$0xff]  ;;  %v85_v22 = vld [vmem:[%s16048_s4 + $0x78] sm:$0xff]  ;;  %v14181_v23 = vld [vmem:[%s16044_s0 + $0x8] sm:$0xff]  ;;  %v13383_v24 = vpack.c.bf16 %v81_v20, %v80_v19 }
   0x7   :  { %13376 = vmatprep.subr.bf16.mxu1 %v13375_v12  ;;  %12394 = vmatprep.mubr.msk.f32.mxu1 %vm122_vm0, %v14148_v11  ;;  %v13391_v25 = vpack.c.bf16 %v85_v22, %v84_v21  ;;  %v86_v26 = vld [vmem:[%s16049_s5] sm:$0xff]  ;;  %v87_v27 = vld [vmem:[%s16049_s5 + $0x8] sm:$0xff] }
   0x8   :  { %v90_v28 = vld [vmem:[%s16049_s5 + $0x20] sm:$0xff]  ;;  %v91_v29 = vld [vmem:[%s16049_s5 + $0x28] sm:$0xff]  ;;  %v13395_v30 = vpack.c.bf16 %v87_v27, %v86_v26 }
   0x9   :  { %13370 = vmatpush3.bf16.msra.mxu0 %v13367_v8 }
   0xa   :  { %13378 = vmatpush3.bf16.msra.mxu1 %v13375_v12  ;;  %13380 = vmatprep.subr.bf16.mxu0 %v13379_v17 }
   0xb   :  { %13388 = vmatprep.subr.bf16.mxu1 %v13387_v18 }
   0xc   :  { %12384 = vmatmul.mubr.msk.f32.vlgmr.msra.gmra.mrb[0].mxu0 %vm122_vm0, %v14181_v23 }
   0xd   :  { %12395 = vmatmul.mubr.msk.f32.vlgmr.msra.gmra.mrb[0].mxu1 %vm122_vm0, %v14181_v23  ;;  %13382 = vmatpush3.bf16.msra.mxu0 %v13379_v17 }
   0xe   :  { %13390 = vmatpush3.bf16.msra.mxu1 %v13387_v18  ;;  %13384 = vmatprep.subr.bf16.mxu0 %v13383_v24 }
   0xf   :  { %21 = vsyncpa [#allocation3], 0  ;;  %13392 = vmatprep.subr.bf16.mxu1 %v13391_v25  ;;  %12405 = vmatprep.mubr.msk.f32.mxu0 %vm122_vm0, %v14148_v11  ;;  %v13403_v31 = vpack.c.bf16 %v91_v29, %v90_v28  ;;  %v88_v32 = vld [vmem:[%s16049_s5 + $0x10] sm:$0xff]  ;;  %v89_v33 = vld [vmem:[%s16049_s5 + $0x18] sm:$0xff]  ;;  %v14027_v10 = vmov 0.0   ;;  %vm14028_vm1 = vmmov 0  }
  0x10   :  { %12416 = vmatprep.mubr.msk.f32.mxu1 %vm122_vm0, %v14148_v11  ;;  %v92_v34 = vld [vmem:[%s16049_s5 + $0x30] sm:$0xff]  ;;  %v93_v35 = vld [vmem:[%s16049_s5 + $0x38] sm:$0xff]  ;;  %v13399_v36 = vpack.c.bf16 %v89_v33, %v88_v32  ;;  %v94_v38 = vld [vmem:[%s16049_s5 + $0x40] sm:$0xff]  ;;  %vm1029_vm2 = vcmask 64512   ;;  %vm5330_vm3 = vcmask 523264   ;;  %s14032_s25 = smov 16  }
  0x11   :  { %13386 = vmatpush3.bf16.msra.mxu0 %v13383_v24  ;;  %v13407_v37 = vpack.c.bf16 %v93_v35, %v92_v34  ;;  %v95_v39 = vld [vmem:[%s16049_s5 + $0x48] sm:$0xff]  ;;  %v98_v40 = vld [vmem:[%s16049_s5 + $0x60] sm:$0xff]  ;;  %v96_v43 = vld [vmem:[%s16049_s5 + $0x50] sm:$0xff]  ;;  %s14033_s28 = smov 24   ;;  %vm5603_vm4 = vcmask 130048   ;;  %vm5605_vm5 = vcmask 195584  }
  0x12   :  { %13394 = vmatpush3.bf16.msra.mxu1 %v13391_v25  ;;  %13396 = vmatprep.subr.bf16.mxu0 %v13395_v30  ;;  %v99_v41 = vld [vmem:[%s16049_s5 + $0x68] sm:$0xff]  ;;  %v13411_v42 = vpack.c.bf16 %v95_v39, %v94_v38  ;;  %v97_v44 = vld [vmem:[%s16049_s5 + $0x58] sm:$0xff]  ;;  %v100_v46 = vld [vmem:[%s16049_s5 + $0x70] sm:$0xff]  ;;  %vm5608_vm6 = vcmask 326656   ;;  %vm5612_vm7 = vcmask 457728   ;;  %vm5610_vm8 = vcmask 392192  }
  0x13   :  { %13404 = vmatprep.subr.bf16.mxu1 %v13403_v31  ;;  %v13419_v45 = vpack.c.bf16 %v99_v41, %v98_v40  ;;  %v101_v47 = vld [vmem:[%s16049_s5 + $0x78] sm:$0xff]  ;;  %v13415_v48 = vpack.c.bf16 %v97_v44, %v96_v43  ;;  %v102_v50 = vld [vmem:[%s16050_s6] sm:$0xff]  ;;  %v103_v51 = vld [vmem:[%s16050_s6 + $0x8] sm:$0xff]  ;;  %s14039_s29 = smov [#allocation2]  }
  0x14   :  { %12406 = vmatmul.mubr.msk.f32.vlgmr.msra.gmra.mrb[2].mxu0 %vm122_vm0, %v14181_v23  ;;  %v13423_v49 = vpack.c.bf16 %v101_v47, %v100_v46  ;;  %v106_v52 = vld [vmem:[%s16050_s6 + $0x20] sm:$0xff]  ;;  %v107_v53 = vld [vmem:[%s16050_s6 + $0x28] sm:$0xff]  ;;  %v13427_v54 = vpack.c.bf16 %v103_v51, %v102_v50  ;;  %v108_v56 = vld [vmem:[%s16050_s6 + $0x30] sm:$0xff]  ;;  %s11515_s0 = sshll.u32 %s14039_s29, 4  ;;  %s11516_s0 = int_to_ptr.vmem [resolvable:$true] %s11515_s0 }
  0x15   :  { %12417 = vmatmul.mubr.msk.f32.vlgmr.msra.gmra.mrb[2].mxu1 %vm122_vm0, %v14181_v23  ;;  %13398 = vmatpush3.bf16.msra.mxu0 %v13395_v30  ;;  %v13435_v55 = vpack.c.bf16 %v107_v53, %v106_v52  ;;  %v109_v57 = vld [vmem:[%s16050_s6 + $0x38] sm:$0xff]  ;;  %v104_v59 = vld [vmem:[%s16050_s6 + $0x10] sm:$0xff]  ;;  %v114_v62 = vld [vmem:[%s16050_s6 + $0x60] sm:$0xff]  ;;  %s14003_s30 = scalar_lea.vmem %s11516_s0, 256  ;;  %p14008_p1 = scmp.lt.s32.totalorder %s11516_s0, %s11516_s0 }
  0x16   :  { %13406 = vmatpush3.bf16.msra.mxu1 %v13403_v31  ;;  %13400 = vmatprep.subr.bf16.mxu0 %v13399_v36  ;;  %v13439_v58 = vpack.c.bf16 %v109_v57, %v108_v56  ;;  %v105_v60 = vld [vmem:[%s16050_s6 + $0x18] sm:$0xff]  ;;  %v115_v63 = vld [vmem:[%s16050_s6 + $0x68] sm:$0xff]  ;;  %v110_v0 = vld [vmem:[%s16050_s6 + $0x40] sm:$0xff]  ;;  %p14004_p0 = scmp.ne.s32.totalorder %s11516_s0, %s14003_s30  ;;  %p14009_p2 = scmp.lt.s32.totalorder %s14003_s30, %s14003_s30 }
  0x17   :  { %13408 = vmatprep.subr.bf16.mxu1 %v13407_v37  ;;  %12427 = vmatprep.mubr.msk.f32.mxu0 %vm122_vm0, %v14148_v11  ;;  %v13431_v61 = vpack.c.bf16 %v105_v60, %v104_v59  ;;  %v13451_v1 = vpack.c.bf16 %v115_v63, %v114_v62  ;;  %v111_v2 = vld [vmem:[%s16050_s6 + $0x48] sm:$0xff]  ;;  %v116_v3 = vld [vmem:[%s16050_s6 + $0x70] sm:$0xff]  ;;  %v117_v4 = vld [vmem:[%s16050_s6 + $0x78] sm:$0xff] }
  0x18   :  { %12438 = vmatprep.mubr.msk.f32.mxu1 %vm122_vm0, %v14148_v11  ;;  %v13443_v5 = vpack.c.bf16 %v111_v2, %v110_v0  ;;  %v13455_v6 = vpack.c.bf16 %v117_v4, %v116_v3  ;;  %v112_v7 = vld [vmem:[%s16050_s6 + $0x50] sm:$0xff]  ;;  %v113_v8 = vld [vmem:[%s16050_s6 + $0x58] sm:$0xff]  ;;  %v54_v38 = vld [vmem:[%s16046_s2] sm:$0xff]  ;;  %p14010_p3 = por %p14009_p2, %p14008_p1 }
  0x19   :  { %13402 = vmatpush3.bf16.msra.mxu0 %v13399_v36  ;;  %v13447_v9 = vpack.c.bf16 %v113_v8, %v112_v7  ;;  %v57_v47 = vld [vmem:[%s16046_s2 + $0x18] sm:$0xff]  ;;  %v59_v59 = vld [vmem:[%s16046_s2 + $0x28] sm:$0xff]  ;;  %v58_v0 = vld [vmem:[%s16046_s2 + $0x20] sm:$0xff] }
  0x1a   :  { %13410 = vmatpush3.bf16.msra.mxu1 %v13407_v37  ;;  %13412 = vmatprep.subr.bf16.mxu0 %v13411_v42  ;;  %p14011_p4 = pnand %p14010_p3, %p14004_p0 }
  0x1b   :  { %13420 = vmatprep.subr.bf16.mxu1 %v13419_v45 }
  0x1c   :  { %12428 = vmatmul.mubr.msk.f32.vlgmr.msra.gmra.mrb[4].mxu0 %vm122_vm0, %v14181_v23 }
  0x1d   :  { %12439 = vmatmul.mubr.msk.f32.vlgmr.msra.gmra.mrb[4].mxu1 %vm122_vm0, %v14181_v23  ;;  %13414 = vmatpush3.bf16.msra.mxu0 %v13411_v42 }
  0x1e   :  { %13416 = vmatprep.subr.bf16.mxu0 %v13415_v48  ;;  %13422 = vmatpush3.bf16.msra.mxu1 %v13419_v45  ;;  %v55_v45 = vld [vmem:[%s16046_s2 + $0x8] sm:$0xff] }
  0x1f   :  { %12449 = vmatprep.mubr.msk.f32.mxu0 %vm122_vm0, %v14148_v11  ;;  %13424 = vmatprep.subr.bf16.mxu1 %v13423_v49 }
  0x20   :  { %12460 = vmatprep.mubr.msk.f32.mxu1 %vm122_vm0, %v14148_v11 }
  0x21   :  { %13418 = vmatpush3.bf16.msra.mxu0 %v13415_v48 }
  0x22   :  { %13426 = vmatpush3.bf16.msra.mxu1 %v13423_v49  ;;  %13428 = vmatprep.subr.bf16.mxu0 %v13427_v54 }
  0x23   :  { %13436 = vmatprep.subr.bf16.mxu1 %v13435_v55 }
  0x24   :  { %12450 = vmatmul.mubr.msk.f32.vlgmr.msra.gmra.mrb[6].mxu0 %vm122_vm0, %v14181_v23 }
  0x25   :  { %12461 = vmatmul.mubr.msk.f32.vlgmr.msra.gmra.mrb[6].mxu1 %vm122_vm0, %v14181_v23  ;;  %13430 = vmatpush3.bf16.msra.mxu0 %v13427_v54 }
  0x26   :  { %13438 = vmatpush3.bf16.msra.mxu1 %v13435_v55  ;;  %12471 = vmatprep.mubr.msk.f32.mxu0 %vm122_vm0, %v14148_v11  ;;  %v56_v55 = vld [vmem:[%s16046_s2 + $0x10] sm:$0xff] }
  0x27   :  { %13440 = vmatprep.subr.bf16.mxu1 %v13439_v58  ;;  %12482 = vmatprep.mubr.msk.f32.mxu1 %vm122_vm0, %v14148_v11 }
  0x28   :  { %13432 = vmatprep.subr.bf16.mxu0 %v13431_v61 }
  0x29   :  { %13434 = vmatpush3.bf16.msra.mxu0 %v13431_v61 }
  0x2a   :  { %13442 = vmatpush3.bf16.msra.mxu1 %v13439_v58  ;;  %13444 = vmatprep.subr.bf16.mxu0 %v13443_v5 }
  0x2b   :  { %13452 = vmatprep.subr.bf16.mxu1 %v13451_v1 }
  0x2c   :  { %12472 = vmatmul.mubr.msk.f32.vlgmr.msra.gmra.mrb[8].mxu0 %vm122_vm0, %v14181_v23 }
  0x2d   :  { %12483 = vmatmul.mubr.msk.f32.vlgmr.msra.gmra.mrb[8].mxu1 %vm122_vm0, %v14181_v23  ;;  %13446 = vmatpush3.bf16.msra.mxu0 %v13443_v5 }
  0x2e   :  { %12504 = vmatprep.mubr.msk.f32.mxu1 %vm122_vm0, %v14148_v11  ;;  %13454 = vmatpush3.bf16.msra.mxu1 %v13451_v1 }
  0x2f   :  { %13456 = vmatprep.subr.bf16.mxu1 %v13455_v6  ;;  %12493 = vmatprep.mubr.msk.f32.mxu0 %vm122_vm0, %v14148_v11 }
  0x30   :  { %13448 = vmatprep.subr.bf16.mxu0 %v13447_v9 }
  0x31   :  { %13450 = vmatpush3.bf16.msra.mxu0 %v13447_v9  ;;  %v61_v9 = vld [vmem:[%s16046_s2 + $0x38] sm:$0xff] }
  0x32   :  { %13458 = vmatpush3.bf16.msra.mxu1 %v13455_v6  ;;  %12507 = vmatprep.subr.mxu0 %v14027_v10 }
  0x33   :  { %12522 = vmatprep.subr.mxu1 %v14027_v10 }
  0x34   :  { %12494 = vmatmul.mubr.msk.f32.vlgmr.msra.gmra.mrb[10].mxu0 %vm122_vm0, %v14181_v23 }
  0x35   :  { %12505 = vmatmul.mubr.msk.f32.vlgmr.msra.gmra.mrb[10].mxu1 %vm122_vm0, %v14181_v23  ;;  %12509 = vmatprep.mubr.msk.f32.mxu0 %vm14028_vm1, %v14027_v10 }
  0x36   :  { %12524 = vmatprep.mubr.msk.f32.mxu1 %vm14028_vm1, %v14027_v10 }
  0xdf   :  { %v12385_v12 = vpop.f32.mrb[0].mxu0 }
  0xe0   :  { %v195_v13 = vpop.f32.mrb[1].mxu0  ;;  %v12396_v14 = vpop.f32.mrb[0].mxu1 }
  0xe1   :  { %v270_v15 = vpop.f32.mrb[1].mxu1 }
  0xe7   :  { %v12407_v16 = vpop.f32.mrb[2].mxu0 }
  0xe8   :  { %v345_v17 = vpop.f32.mrb[3].mxu0  ;;  %v12418_v18 = vpop.f32.mrb[2].mxu1 }
  0xe9   :  { %v420_v19 = vpop.f32.mrb[3].mxu1 }
  0xef   :  { %v12429_v20 = vpop.f32.mrb[4].mxu0 }
  0xf0   :  { %v12440_v21 = vpop.f32.mrb[4].mxu1  ;;  %v495_v22 = vpop.f32.mrb[5].mxu0 }
  0xf1   :  { %12523 = vmatpush3.xpose.msk.msra.mxu1 %vm1029_vm2, %v12440_v21  ;;  %12508 = vmatpush3.xpose.msk.msra.mxu0 %vm1029_vm2, %v495_v22  ;;  %v570_v24 = vpop.f32.mrb[5].mxu1 }
  0xf2   :  { %12512 = vmatprep.subr.mxu0 %v14027_v10  ;;  %12532 = vmatprep.subr.mxu1 %v14027_v10 }
  0xf4   :  { %12525 = vmatmul.mubr.msk.f32.vlgmr.msra.gmra.mrb[12].mxu1 %vm1029_vm2, %v12396_v14  ;;  %12510 = vmatmul.mubr.msk.f32.vlgmr.msra.gmra.mrb[12].mxu0 %vm1029_vm2, %v195_v13  ;;  %v60_v14 = vld [vmem:[%s16046_s2 + $0x30] sm:$0xff] }
  0xf5   :  { %12513 = vmatpush3.xpose.msk.msra.mxu0 %vm1029_vm2, %v12429_v20  ;;  %12514 = vmatprep.mubr.msk.f32.mxu0 %vm14028_vm1, %v14027_v10 }
  0xf6   :  { %12517 = vmatprep.subr.mxu0 %v14027_v10  ;;  %12534 = vmatprep.mubr.msk.f32.mxu1 %vm14028_vm1, %v14027_v10 }
  0xf7   :  { %v12451_v25 = vpop.f32.mrb[6].mxu0 }
  0xf8   :  { %12515 = vmatmul.mubr.msk.f32.vlgmr.msra.gmra.mrb[14].mxu0 %vm1029_vm2, %v12385_v12  ;;  %12533 = vmatpush3.xpose.msk.msra.mxu1 %vm1029_vm2, %v12451_v25  ;;  %v12462_v26 = vpop.f32.mrb[6].mxu1  ;;  %v645_v27 = vpop.f32.mrb[7].mxu0 }
  0xf9   :  { %12518 = vmatpush3.xpose.msk.msra.mxu0 %vm1029_vm2, %v570_v24  ;;  %12519 = vmatprep.mubr.msk.f32.mxu0 %vm14028_vm1, %v14027_v10  ;;  %v720_v28 = vpop.f32.mrb[7].mxu1 }
  0xfa   :  { %12542 = vmatprep.subr.mxu1 %v14027_v10  ;;  %12527 = vmatprep.subr.mxu0 %v14027_v10 }
  0xfb   :  { %12535 = vmatmul.mubr.msk.f32.vlgmr.msra.gmra.mrb[14].mxu1 %vm1029_vm2, %v12407_v16 }
  0xfc   :  { %12520 = vmatmul.mubr.msk.f32.vlgmr.msra.gmra.mrb[16].mxu0 %vm1029_vm2, %v270_v15  ;;  %12543 = vmatpush3.xpose.msk.msra.mxu1 %vm1029_vm2, %v12462_v26 }
  0xfd   :  { %12528 = vmatpush3.xpose.msk.msra.mxu0 %vm1029_vm2, %v645_v27  ;;  %12544 = vmatprep.mubr.msk.f32.mxu1 %vm14028_vm1, %v14027_v10 }
  0xfe   :  { %12529 = vmatprep.mubr.msk.f32.mxu0 %vm14028_vm1, %v14027_v10  ;;  %12537 = vmatprep.subr.mxu0 %v14027_v10 }
  0xff   :  { %12545 = vmatmul.mubr.msk.f32.vlgmr.msra.gmra.mrb[16].mxu1 %vm1029_vm2, %v12418_v18  ;;  %12552 = vmatprep.subr.mxu1 %v14027_v10  ;;  %v12473_v31 = vpop.f32.mrb[8].mxu0 }
 0x100   :  { %12530 = vmatmul.mubr.msk.f32.vlgmr.msra.gmra.mrb[18].mxu0 %vm1029_vm2, %v345_v17  ;;  %v14360_v29 = vpop.f32.mrb[8].mxu1  ;;  %12554 = vmatprep.mubr.msk.f32.mxu1 %vm14028_vm1, %v14027_v10  ;;  %v795_v32 = vpop.f32.mrb[9].mxu0 }
 0x101   :  { %12538 = vmatpush3.xpose.msk.msra.mxu0 %vm1029_vm2, %v720_v28  ;;  %12539 = vmatprep.mubr.msk.f32.mxu0 %vm14028_vm1, %v14027_v10  ;;  %v14367_v30 = vpop.f32.mrb[9].mxu1 }
 0x102   :  { %12547 = vmatprep.subr.mxu0 %v14027_v10  ;;  %12553 = vmatpush3.msra.mxu1 %v12473_v31 }
 0x103   :  { %12562 = vmatprep.subr.mxu1 %v14027_v10 }
 0x104   :  { %12540 = vmatmul.mubr.msk.f32.vlgmr.msra.gmra.mrb[20].mxu0 %vm1029_vm2, %v420_v19 }
 0x105   :  { %12549 = vmatprep.mubr.msk.f32.mxu0 %vm14028_vm1, %v14027_v10  ;;  %12548 = vmatpush3.msra.mxu0 %v795_v32 }
 0x106   :  { %12557 = vmatprep.subr.mxu0 %v14027_v10 }
 0x107   :  { %v14375_v33 = vpop.f32.mrb[10].mxu0 }
 0x108   :  { %v14377_v34 = vpop.f32.mrb[10].mxu1  ;;  %v14379_v35 = vpop.f32.mrb[11].mxu0 }
 0x109   :  { %v14381_v36 = vpop.f32.mrb[11].mxu1 }
 0x1c7   :  { %v1330_v37 = vpop.f32.mrb[12].mxu1  ;;  %v1102_v39 = vpop.f32.mrb[12].mxu0 }
 0x1c8   :  { %v1638_v40 = vmul.f32 0.35355338, %v1102_v39  ;;  %v12526_v41 = vpop.f32.mrb[13].mxu1  ;;  %v12511_v42 = vpop.f32.mrb[13].mxu0  ;;  %v1641_v44 = vmul.f32 0.35355338, %v1330_v37 }
 0x1ca   :  { %v1646_v43 = vadd.f32 %v1638_v40, %v54_v38  ;;  %v1649_v53 = vadd.f32 %v1641_v44, %v57_v47 }
 0x1cb   :  { %v1178_v46 = vpop.f32.mrb[14].mxu0 }
 0x1cc   :  { %v1654_v48 = vmul.f32 1.442695, %v1646_v43  ;;  %v1639_v49 = vmul.f32 0.35355338, %v1178_v46  ;;  %v12516_v50 = vpop.f32.mrb[15].mxu0 }
 0x1cd   :  { %v1660_v1 = vmul.f32 1.442695, %v1649_v53  ;;  %v14029_v53 = vmov 1983009808  }
 0x1ce   :  { %v1647_v51 = vadd.f32 %v1639_v49, %v55_v45  ;;  %v1482_v52 = vpop.f32.mrb[14].mxu1  ;;  %13833 = vpow2.f32 %v1654_v48 }
 0x1cf   :  { %v1643_v54 = vmul.f32 0.35355338, %v1482_v52  ;;  %v1254_v56 = vpop.f32.mrb[16].mxu0  ;;  %v12536_v57 = vpop.f32.mrb[15].mxu1 }
 0x1d0   :  { %v1656_v58 = vmul.f32 1.442695, %v1647_v51  ;;  %v1640_v60 = vmul.f32 0.35355338, %v1254_v56  ;;  %v12521_v61 = vpop.f32.mrb[17].mxu0 }
 0x1d1   :  { %v1651_v2 = vadd.f32 %v1643_v54, %v59_v59  ;;  %v5441_v54 = vunpack.c.l.s4 %v14029_v53 }
 0x1d2   :  { %13835 = vpow2.f32 %v1656_v58  ;;  %v1648_v62 = vadd.f32 %v1640_v60, %v56_v55  ;;  %v1634_v63 = vpop.f32.mrb[16].mxu1  ;;  %v5443_v55 = vlaneseq }
 0x1d3   :  { %v1645_v3 = vmul.f32 0.35355338, %v1634_v63  ;;  %v1406_v4 = vpop.f32.mrb[18].mxu0  ;;  %v12546_v5 = vpop.f32.mrb[17].mxu1  ;;  %v1664_v13 = vmul.f32 1.442695, %v1651_v2  ;;  %v5442_v61 = vunpack.c.0.s8 %v5441_v54 }
 0x1d4   :  { %v1658_v6 = vmul.f32 1.442695, %v1648_v62  ;;  %v1642_v7 = vmul.f32 0.35355338, %v1406_v4  ;;  %v12531_v8 = vpop.f32.mrb[19].mxu0  ;;  %v5444_v62 = vshrl.u32 %v5443_v55, 7 }
 0x1d5   :  { %v1653_v16 = vadd.f32 %v1645_v3, %v61_v9 }
 0x1d6   :  { %13837 = vpow2.f32 %v1658_v6  ;;  %v1650_v12 = vadd.f32 %v1642_v7, %v58_v0  ;;  %v14438_v3 = vsub.s32 %v5442_v61, %v5444_v62 }
 0x1d7   :  { %v1558_v15 = vpop.f32.mrb[20].mxu0  ;;  %13839 = vpow2.f32 %v1660_v1  ;;  %v1668_v25 = vmul.f32 1.442695, %v1653_v16 }
 0x1d8   :  { %v1662_v17 = vmul.f32 1.442695, %v1650_v12  ;;  %v1644_v18 = vmul.f32 0.35355338, %v1558_v15  ;;  %v12541_v19 = vpop.f32.mrb[21].mxu0  ;;  %v13834_v20 = vpop.eup %13833 }
 0x1d9   :  { %v1670_v22 = vsel %vm1029_vm2, %v13834_v20, 0.0 }
 0x1da   :  { %13841 = vpow2.f32 %v1662_v17  ;;  %v1652_v21 = vadd.f32 %v1644_v18, %v60_v14  ;;  %1671 = vadd.xlane.f32.xlu0 %v1670_v22 }
 0x1db   :  { %13843 = vpow2.f32 %v1664_v13 }
 0x1dc   :  { %v13836_v24 = vpop.eup %13835  ;;  %v1666_v26 = vmul.f32 1.442695, %v1652_v21 }
 0x1dd   :  { %v1673_v27 = vsel %vm1029_vm2, %v13836_v24, 0.0 }
 0x1de   :  { %13845 = vpow2.f32 %v1666_v26  ;;  %1674 = vadd.xlane.f32.xlu0 %v1673_v27 }
 0x1df   :  { %13847 = vpow2.f32 %v1668_v25 }
 0x1e0   :  { %v13838_v28 = vpop.eup %13837 }
 0x1e1   :  { %v1676_v31 = vsel %vm1029_vm2, %v13838_v28, 0.0  ;;  %v13840_v32 = vpop.eup %13839 }
 0x1e2   :  { %1677 = vadd.xlane.f32.xlu1 %v1676_v31  ;;  %v1679_v38 = vsel %vm1029_vm2, %v13840_v32, 0.0 }
 0x1e4   :  { %v13842_v37 = vpop.eup %13841 }
 0x1e5   :  { %v1682_v39 = vsel %vm1029_vm2, %v13842_v37, 0.0  ;;  %v14412_v40 = vpop.eup %13843 }
 0x1e6   :  { %1680 = vadd.xlane.f32.xlu1 %v1679_v38  ;;  %1683 = vadd.xlane.f32.xlu0 %v1682_v39  ;;  %v1685_v42 = vsel %vm1029_vm2, %v14412_v40, 0.0 }
 0x1e8   :  { %v14414_v41 = vpop.eup %13845 }
 0x1e9   :  { %v1688_v43 = vsel %vm1029_vm2, %v14414_v41, 0.0  ;;  %v14420_v44 = vpop.eup %13847 }
 0x1ea   :  { %1686 = vadd.xlane.f32.xlu1 %v1685_v42  ;;  %1689 = vadd.xlane.f32.xlu0 %v1688_v43  ;;  %v1691_v45 = vsel %vm1029_vm2, %v14420_v44, 0.0 }
 0x1ee   :  { %1692 = vadd.xlane.f32.xlu1 %v1691_v45 }
 0x267   :  { %v1672_v46 = vpop.xlane.xlu0 %1671 }
 0x268   :  { %13849 = vrcp.f32 %v1672_v46 }
 0x26b   :  { %v1675_v47 = vpop.xlane.xlu0 %1674 }
 0x26c   :  { %13851 = vrcp.f32 %v1675_v47 }
 0x26f   :  { %v1678_v48 = vpop.xlane.xlu1 %1677 }
 0x270   :  { %13853 = vrcp.f32 %v1678_v48 }
 0x272   :  { %v13850_v49 = vpop.eup %13849 }
 0x273   :  { %v1681_v50 = vpop.xlane.xlu1 %1680  ;;  %v1684_v51 = vpop.xlane.xlu0 %1683  ;;  %v1695_v52 = vmul.f32 %v13850_v49, %v13834_v20 }
 0x274   :  { %13855 = vrcp.f32 %v1681_v50 }
 0x275   :  { %13857 = vrcp.f32 %v1684_v51  ;;  %12550 = vmatmul.mubr.msk.f32.vlgmr.msra.gmra.mrb[22].mxu0 %vm1029_vm2, %v1695_v52 }
 0x276   :  { %v13852_v56 = vpop.eup %13851  ;;  %12558 = vmatpush3.msra.mxu0 %v14367_v30  ;;  %12559 = vmatprep.mubr.msk.f32.mxu0 %vm14028_vm1, %v14027_v10 }
 0x277   :  { %v1687_v57 = vpop.xlane.xlu1 %1686  ;;  %v1690_v58 = vpop.xlane.xlu0 %1689  ;;  %v1697_v59 = vmul.f32 %v13852_v56, %v13836_v24  ;;  %12567 = vmatprep.subr.mxu0 %v14027_v10 }
 0x278   :  { %13859 = vrcp.f32 %v1687_v57 }
 0x279   :  { %13861 = vrcp.f32 %v1690_v58  ;;  %12555 = vmatmul.mubr.msk.f32.vlgmr.msra.gmra.mrb[18].mxu1 %vm1029_vm2, %v1697_v59 }
 0x27a   :  { %v13854_v60 = vpop.eup %13853  ;;  %12563 = vmatpush3.msra.mxu1 %v14360_v29  ;;  %12564 = vmatprep.mubr.msk.f32.mxu1 %vm14028_vm1, %v14027_v10 }
 0x27b   :  { %v1699_v63 = vmul.f32 %v13854_v60, %v13838_v28  ;;  %v1693_v0 = vpop.xlane.xlu1 %1692  ;;  %12572 = vmatprep.subr.mxu1 %v14027_v10  ;;  %v118_v60 = vld [vmem:[%s16051_s7] sm:$0xff] }
 0x27c   :  { %13863 = vrcp.f32 %v1693_v0 }
 0x27d   :  { %12560 = vmatmul.mubr.msk.f32.vlgmr.msra.gmra.mrb[24].mxu0 %vm1029_vm2, %v1699_v63  ;;  %v5438_v30 = vcombine.low %v1695_v52, %v1699_v63  ;;  %v5439_v1 = vcombine.high %v1695_v52, %v1699_v63 }
 0x27e   :  { %v13856_v2 = vpop.eup %13855  ;;  %12568 = vmatpush3.msra.mxu0 %v14379_v35  ;;  %12569 = vmatprep.mubr.msk.f32.mxu0 %vm14028_vm1, %v14027_v10  ;;  %v14030_v35 = vmov 1934713408  }
 0x27f   :  { %v13858_v29 = vpop.eup %13857  ;;  %v1701_v4 = vmul.f32 %v13856_v2, %v13840_v32  ;;  %12577 = vmatprep.subr.mxu0 %v14027_v10  ;;  %v5505_v9 = vunpack.c.l.s4 %v14030_v35  ;;  %v5446_v12 = vrot.slane %v5438_v30, %v14438_v3  ;;  %v5453_v13 = vrot.slane %v5439_v1, %v14438_v3 }
 0x280   :  { %v1703_v5 = vmul.f32 %v13858_v29, %v13842_v37  ;;  %v120_v29 = vld [vmem:[%s16051_s7 + $0x10] sm:$0xff] }
 0x281   :  { %12565 = vmatmul.mubr.msk.f32.vlgmr.msra.gmra.mrb[20].mxu1 %vm1029_vm2, %v1701_v4  ;;  %v5454_v6 = vcombine.low %v1697_v59, %v1701_v4  ;;  %v5455_v7 = vcombine.high %v1697_v59, %v1701_v4  ;;  %v5506_v22 = vunpack.c.0.s8 %v5505_v9  ;;  %v119_v59 = vld [vmem:[%s16051_s7 + $0x8] sm:$0xff] }
 0x282   :  { %v13860_v8 = vpop.eup %13859  ;;  %12570 = vmatmul.mubr.msk.f32.vlgmr.msra.gmra.mrb[26].mxu0 %vm1029_vm2, %v1703_v5  ;;  %12573 = vmatpush3.msra.mxu1 %v14375_v33 }
 0x283   :  { %v13862_v14 = vpop.eup %13861  ;;  %v1705_v15 = vmul.f32 %v13860_v8, %v14412_v40  ;;  %12578 = vmatpush3.msra.mxu0 %v14381_v36  ;;  %12574 = vmatprep.mubr.msk.f32.mxu1 %vm14028_vm1, %v14027_v10  ;;  %v5462_v16 = vrot.slane %v5454_v6, %v14438_v3  ;;  %v5469_v17 = vrot.slane %v5455_v7, %v14438_v3 }
 0x284   :  { %v1707_v33 = vmul.f32 %v13862_v14, %v14414_v41  ;;  %12579 = vmatprep.mubr.msk.f32.mxu0 %vm14028_vm1, %v14027_v10  ;;  %12582 = vmatprep.subr.mxu1 %v14027_v10  ;;  %v14463_v31 = vsub.s32 %v5506_v22, %v5444_v62 }
 0x285   :  { %12575 = vmatmul.mubr.msk.f32.vlgmr.msra.gmra.mrb[22].mxu1 %vm1029_vm2, %v1705_v15  ;;  %v5502_v18 = vcombine.low %v5446_v12, %v5462_v16  ;;  %v5503_v19 = vcombine.high %v5446_v12, %v5462_v16  ;;  %v5518_v20 = vcombine.low %v5453_v13, %v5469_v17  ;;  %v5519_v36 = vcombine.high %v5453_v13, %v5469_v17  ;;  %v121_v13 = vld [vmem:[%s16051_s7 + $0x18] sm:$0xff] }
 0x286   :  { %v13864_v21 = vpop.eup %13863  ;;  %12580 = vmatmul.mubr.msk.f32.vlgmr.msra.gmra.mrb[28].mxu0 %vm1029_vm2, %v1707_v33  ;;  %12583 = vmatpush3.msra.mxu1 %v14377_v34  ;;  %v5470_v24 = vcombine.low %v1703_v5, %v1707_v33  ;;  %v5471_v25 = vcombine.high %v1703_v5, %v1707_v33 }
 0x287   :  { %v1709_v26 = vmul.f32 %v13864_v21, %v14420_v44  ;;  %12584 = vmatprep.mubr.msk.f32.mxu1 %vm14028_vm1, %v14027_v10  ;;  %v14470_v43 = vrot.slane %v5502_v18, %v14463_v31  ;;  %v14473_v44 = vrot.slane %v5503_v19, %v14463_v31  ;;  %v14476_v45 = vrot.slane %v5518_v20, %v14463_v31 }
 0x288   :  { %v5478_v32 = vrot.slane %v5470_v24, %v14438_v3  ;;  %v5485_v34 = vrot.slane %v5471_v25, %v14438_v3  ;;  %v14491_v50 = vrot.slane %v5519_v36, %v14463_v31  ;;  %12587 = vmatprep.subr.mxu0 %v119_v59 }
 0x289   :  { %12585 = vmatmul.mubr.msk.f32.vlgmr.msra.gmra.mrb[24].mxu1 %vm1029_vm2, %v1709_v26  ;;  %v5486_v27 = vcombine.low %v1705_v15, %v1709_v26  ;;  %v5487_v28 = vcombine.high %v1705_v15, %v1709_v26  ;;  %12588 = vmatpush3.msra.mxu0 %v119_v59  ;;  %v2661_v59 = vld [vmem:[%s16052_s8 + $0x50] sm:$0xff] }
 0x28a   :  { %12592 = vmatprep.subr.mxu0 %v118_v60 }
 0x28b   :  { %v5494_v37 = vrot.slane %v5486_v27, %v14438_v3  ;;  %v5501_v38 = vrot.slane %v5487_v28, %v14438_v3 }
 0x28d   :  { %v5534_v39 = vcombine.low %v5478_v32, %v5494_v37  ;;  %v5535_v40 = vcombine.high %v5478_v32, %v5494_v37  ;;  %v5550_v41 = vcombine.low %v5485_v34, %v5501_v38  ;;  %v5551_v42 = vcombine.high %v5485_v34, %v5501_v38  ;;  %v2652_v32 = vld [vmem:[%s16052_s8 + $0x8] sm:$0xff]  ;;  %v2659_v37 = vld [vmem:[%s16052_s8 + $0x40] sm:$0xff] }
 0x28e   :  { %v2660_v38 = vld [vmem:[%s16052_s8 + $0x48] sm:$0xff] }
 0x28f   :  { %v14479_v46 = vrot.slane %v5534_v39, %v14463_v31  ;;  %v14482_v47 = vrot.slane %v5535_v40, %v14463_v31  ;;  %v14485_v48 = vrot.slane %v5550_v41, %v14463_v31  ;;  %v14488_v49 = vrot.slane %v5551_v42, %v14463_v31  ;;  %v2653_v39 = vld [vmem:[%s16052_s8 + $0x10] sm:$0xff]  ;;  %v2654_v40 = vld [vmem:[%s16052_s8 + $0x18] sm:$0xff] }
 0x290   :  { %v13475_v41 = vpack.c.bf16 %v2660_v38, %v2659_v37  ;;  %v13463_v42 = vpack.c.bf16 %v2654_v40, %v2653_v39  ;;  %v2671_v37 = vld [vmem:[%s16053_s9 + $0x20] sm:$0xff]  ;;  %v2684_v40 = vld [vmem:[%s16054_s10 + $0x8] sm:$0xff] }
 0x291   :  { %v2683_v39 = vld [vmem:[%s16054_s10] sm:$0xff] }
 0x348   :  { %v1779_v61 = vpop.f32.mrb[22].mxu0 }
 0x349   :  { %v12551_v62 = vpop.f32.mrb[23].mxu0 }
 0x34a   :  { %v2655_v62 = vld [vmem:[%s16052_s8 + $0x20] sm:$0xff] }
 0x34c   :  { %v1852_v63 = vpop.f32.mrb[18].mxu1 }
 0x34d   :  { %v12556_v0 = vpop.f32.mrb[19].mxu1 }
 0x34e   :  { %v2667_v0 = vld [vmem:[%s16053_s9] sm:$0xff] }
 0x350   :  { %v1925_v30 = vpop.f32.mrb[24].mxu0 }
 0x351   :  { %v12561_v1 = vpop.f32.mrb[25].mxu0  ;;  %12589 = vmatprep.mubr.msk.f32.mxu0 %vm1029_vm2, %v1925_v30 }
 0x352   :  { %v2668_v1 = vld [vmem:[%s16053_s9 + $0x8] sm:$0xff] }
 0x354   :  { %v1998_v2 = vpop.f32.mrb[20].mxu1 }
 0x355   :  { %v2071_v4 = vpop.f32.mrb[26].mxu0  ;;  %v12566_v5 = vpop.f32.mrb[21].mxu1  ;;  %12590 = vmatmul.mubr.msk.f32.vlgmr.msra.gmra.mrb[30].mxu0 %vm1029_vm2, %v1998_v2  ;;  %v13491_v2 = vpack.c.bf16 %v2668_v1, %v2667_v0  ;;  %v2679_v0 = vld [vmem:[%s16053_s9 + $0x60] sm:$0xff] }
 0x356   :  { %v12571_v6 = vpop.f32.mrb[27].mxu0  ;;  %12593 = vmatpush3.msra.mxu0 %v118_v60  ;;  %12594 = vmatprep.mubr.msk.f32.mxu0 %vm1029_vm2, %v1779_v61  ;;  %v2662_v60 = vld [vmem:[%s16052_s8 + $0x58] sm:$0xff] }
 0x357   :  { %12597 = vmatprep.subr.mxu0 %v120_v29  ;;  %v13479_v61 = vpack.c.bf16 %v2662_v60, %v2661_v59  ;;  %v2674_v59 = vld [vmem:[%s16053_s9 + $0x38] sm:$0xff]  ;;  %v13523_v60 = vpack.c.bf16 %v2684_v40, %v2683_v39 }
 0x358   :  { %v2144_v7 = vpop.f32.mrb[22].mxu1 }
 0x359   :  { %v2217_v8 = vpop.f32.mrb[28].mxu0  ;;  %v12576_v35 = vpop.f32.mrb[23].mxu1 }
 0x35a   :  { %v12581_v9 = vpop.f32.mrb[29].mxu0 }
 0x35b   :  { %v2657_v9 = vld [vmem:[%s16052_s8 + $0x30] sm:$0xff] }
 0x35c   :  { %v2290_v12 = vpop.f32.mrb[24].mxu1 }
 0x35d   :  { %v12586_v14 = vpop.f32.mrb[25].mxu1  ;;  %12595 = vmatmul.mubr.msk.f32.vlgmr.msra.gmra.mrb[30].mxu0 %vm1029_vm2, %v1852_v63  ;;  %v2656_v63 = vld [vmem:[%s16052_s8 + $0x28] sm:$0xff] }
 0x35e   :  { %12598 = vmatpush3.msra.mxu0 %v120_v29  ;;  %12599 = vmatprep.mubr.msk.f32.mxu0 %vm1029_vm2, %v2071_v4  ;;  %v13467_v30 = vpack.c.bf16 %v2656_v63, %v2655_v62  ;;  %v2669_v14 = vld [vmem:[%s16053_s9 + $0x10] sm:$0xff]  ;;  %v2686_v62 = vld [vmem:[%s16054_s10 + $0x18] sm:$0xff] }
 0x35f   :  { %12602 = vmatprep.subr.mxu0 %v121_v13 }
 0x365   :  { %12600 = vmatmul.mubr.msk.f32.vlgmr.msra.gmra.mrb[30].mxu0 %vm1029_vm2, %v2144_v7 }
 0x366   :  { %12603 = vmatpush3.msra.mxu0 %v121_v13  ;;  %12604 = vmatprep.mubr.msk.f32.mxu0 %vm1029_vm2, %v2217_v8 }
 0x367   :  { %13476 = vmatprep.subr.bf16.mxu0 %v13475_v41 }
 0x36d   :  { %12605 = vmatmul.mubr.msk.f32.vlgmr.msra.gmra.mrb[30].mxu0 %vm1029_vm2, %v2290_v12  ;;  %v2658_v12 = vld [vmem:[%s16052_s8 + $0x38] sm:$0xff] }
 0x36e   :  { %13478 = vmatpush3.bf16.msra.mxu0 %v13475_v41 }
 0x36f   :  { %13480 = vmatprep.subr.bf16.mxu0 %v13479_v61 }
 0x372   :  { %13482 = vmatpush3.bf16.msra.mxu0 %v13479_v61  ;;  %v2685_v61 = vld [vmem:[%s16054_s10 + $0x10] sm:$0xff] }
 0x373   :  { %13492 = vmatprep.subr.bf16.mxu0 %v13491_v2  ;;  %v13527_v1 = vpack.c.bf16 %v2686_v62, %v2685_v61 }
 0x440   :  { %v12606_v15 = vpop.f32.mrb[30].mxu0 }
 0x441   :  { %v2623_v16 = vadd.f32 %v12606_v15, %v14181_v23  ;;  %v2611_v17 = vpop.f32.mrb[31].mxu0  ;;  %v2670_v15 = vld [vmem:[%s16053_s9 + $0x18] sm:$0xff] }
 0x442   :  { %v2622_v33 = vadd.f32 %v2611_v17, %v14148_v11  ;;  %v2651_v11 = vld [vmem:[%s16052_s8] sm:$0xff] }
 0x443   :  { %v2627_v18 = vsel %vm122_vm0, %v2623_v16, 0.0  ;;  %v13459_v34 = vpack.c.bf16 %v2652_v32, %v2651_v11  ;;  %v14631_v11 = vld [vmem:[%s16045_s1 + $0x8] sm:$0xff] }
 0x444   :  { %2628 = vadd.xlane.f32.xlu1 %v2627_v18  ;;  %v2624_v19 = vsel %vm122_vm0, %v2622_v33, 0.0  ;;  %v2663_v18 = vld [vmem:[%s16052_s8 + $0x60] sm:$0xff] }
 0x445   :  { %2625 = vadd.xlane.f32.xlu0 %v2624_v19  ;;  %13460 = vmatprep.subr.bf16.mxu1 %v13459_v34  ;;  %v13495_v19 = vpack.c.bf16 %v2670_v15, %v2669_v14 }
 0x446   :  { %13462 = vmatpush3.bf16.msra.mxu1 %v13459_v34  ;;  %v2672_v34 = vld [vmem:[%s16053_s9 + $0x28] sm:$0xff] }
 0x447   :  { %13464 = vmatprep.subr.bf16.mxu1 %v13463_v42  ;;  %v13499_v41 = vpack.c.bf16 %v2672_v34, %v2671_v37 }
 0x44a   :  { %13466 = vmatpush3.bf16.msra.mxu1 %v13463_v42  ;;  %v2673_v42 = vld [vmem:[%s16053_s9 + $0x30] sm:$0xff] }
 0x44b   :  { %13468 = vmatprep.subr.bf16.mxu1 %v13467_v30  ;;  %v13503_v63 = vpack.c.bf16 %v2674_v59, %v2673_v42 }
 0x4d1   :  { %v2629_v20 = vpop.xlane.xlu1 %2628 }
 0x4d2   :  { %v2632_v36 = vmul.f32 0.03125, %v2629_v20  ;;  %v2626_v21 = vpop.xlane.xlu0 %2625  ;;  %v2664_v20 = vld [vmem:[%s16052_s8 + $0x68] sm:$0xff] }
 0x4d3   :  { %v2631_v22 = vmul.f32 0.03125, %v2626_v21  ;;  %v2676_v21 = vld [vmem:[%s16053_s9 + $0x48] sm:$0xff] }
 0x4d4   :  { %v2634_v24 = vsub.f32 %v2623_v16, %v2632_v36  ;;  %v2675_v36 = vld [vmem:[%s16053_s9 + $0x40] sm:$0xff] }
 0x4d5   :  { %v2633_v25 = vsub.f32 %v2622_v33, %v2631_v22  ;;  %v13471_v33 = vpack.c.bf16 %v2658_v12, %v2657_v9  ;;  %v14610_v22 = vld [vmem:[%s16045_s1] sm:$0xff] }
 0x4d6   :  { %v2636_v26 = vmul.f32 %v2634_v24, %v2634_v24  ;;  %v2687_v12 = vld [vmem:[%s16054_s10 + $0x20] sm:$0xff] }
 0x4d7   :  { %v2635_v27 = vmul.f32 %v2633_v25, %v2633_v25 }
 0x4d8   :  { %v2640_v28 = vsel %vm122_vm0, %v2636_v26, 0.0  ;;  %v2665_v26 = vld [vmem:[%s16052_s8 + $0x70] sm:$0xff] }
 0x4d9   :  { %2641 = vadd.xlane.f32.xlu1 %v2640_v28  ;;  %v2637_v23 = vsel %vm122_vm0, %v2635_v27, 0.0  ;;  %v2666_v27 = vld [vmem:[%s16052_s8 + $0x78] sm:$0xff]  ;;  %v2677_v28 = vld [vmem:[%s16053_s9 + $0x50] sm:$0xff] }
 0x4da   :  { %2638 = vadd.xlane.f32.xlu0 %v2637_v23  ;;  %v2678_v23 = vld [vmem:[%s16053_s9 + $0x58] sm:$0xff]  ;;  %v13487_v32 = vpack.c.bf16 %v2666_v27, %v2665_v26 }
 0x4db   :  { %v13511_v38 = vpack.c.bf16 %v2678_v23, %v2677_v28 }
 0x566   :  { %v2642_v29 = vpop.xlane.xlu1 %2641 }
 0x567   :  { %v2644_v4 = vmul.f32 0.03125, %v2642_v29  ;;  %v2639_v5 = vpop.xlane.xlu0 %2638  ;;  %v2692_v29 = vld [vmem:[%s16054_s10 + $0x48] sm:$0xff] }
 0x568   :  { %v2643_v6 = vmul.f32 0.03125, %v2639_v5  ;;  %v2681_v5 = vld [vmem:[%s16053_s9 + $0x70] sm:$0xff] }
 0x569   :  { %v2646_v7 = vadd.f32 1e-05, %v2644_v4 }
 0x56a   :  { %v2645_v8 = vadd.f32 1e-05, %v2643_v6  ;;  %v2682_v6 = vld [vmem:[%s16053_s9 + $0x78] sm:$0xff] }
 0x56b   :  { %13865 = vrsqrt.f32 %v2646_v7  ;;  %v13519_v9 = vpack.c.bf16 %v2682_v6, %v2681_v5  ;;  %v63_v5 = vld [vmem:[%s16047_s3 + $0x8] sm:$0xff] }
 0x56c   :  { %13867 = vrsqrt.f32 %v2645_v8  ;;  %v2693_v8 = vld [vmem:[%s16054_s10 + $0x50] sm:$0xff] }
 0x575   :  { %v13866_v35 = vpop.eup %13865 }
 0x576   :  { %v13868_v13 = vpop.eup %13867  ;;  %v14585_v17 = vmul.f32 %v13866_v35, %v2634_v24  ;;  %v13483_v24 = vpack.c.bf16 %v2664_v20, %v2663_v18  ;;  %v2694_v35 = vld [vmem:[%s16054_s10 + $0x58] sm:$0xff]  ;;  %v2695_v20 = vld [vmem:[%s16054_s10 + $0x60] sm:$0xff] }
 0x577   :  { %v14583_v16 = vmul.f32 %v13868_v13, %v2633_v25  ;;  %v13507_v25 = vpack.c.bf16 %v2676_v21, %v2675_v36  ;;  %v2688_v13 = vld [vmem:[%s16054_s10 + $0x28] sm:$0xff]  ;;  %v13543_v14 = vpack.c.bf16 %v2694_v35, %v2693_v8  ;;  %v2690_v18 = vld [vmem:[%s16054_s10 + $0x38] sm:$0xff]  ;;  %v62_v8 = vld [vmem:[%s16047_s3] sm:$0xff] }
 0x578   :  { %v13531_v15 = vpack.c.bf16 %v2688_v13, %v2687_v12  ;;  %v2696_v36 = vld [vmem:[%s16054_s10 + $0x68] sm:$0xff] }
 0x579   :  { %12615 = vmatprep.mubr.msk.f32.mxu1 %vm122_vm0, %v14583_v16  ;;  %12637 = vmatprep.mubr.msk.f32.mxu0 %vm122_vm0, %v14583_v16  ;;  %v13547_v21 = vpack.c.bf16 %v2696_v36, %v2695_v20 }
 0x57a   :  { %12616 = vmatmul.mubr.msk.f32.vlgmr.msra.gmra.mrb[26].mxu1 %vm122_vm0, %v14585_v17  ;;  %12638 = vmatmul.mubr.msk.f32.vlgmr.msra.gmra.mrb[32].mxu0 %vm122_vm0, %v14585_v17 }
 0x57b   :  { %13470 = vmatpush3.bf16.msra.mxu1 %v13467_v30  ;;  %13494 = vmatpush3.bf16.msra.mxu0 %v13491_v2  ;;  %v2680_v30 = vld [vmem:[%s16053_s9 + $0x68] sm:$0xff]  ;;  %v2691_v2 = vld [vmem:[%s16054_s10 + $0x40] sm:$0xff] }
 0x57c   :  { %12626 = vmatprep.mubr.msk.f32.mxu1 %vm122_vm0, %v14583_v16  ;;  %13472 = vmatprep.subr.bf16.mxu1 %v13471_v33  ;;  %v13515_v4 = vpack.c.bf16 %v2680_v30, %v2679_v0  ;;  %v13539_v7 = vpack.c.bf16 %v2692_v29, %v2691_v2 }
 0x57d   :  { %13496 = vmatprep.subr.bf16.mxu0 %v13495_v19  ;;  %12659 = vmatprep.mubr.msk.f32.mxu0 %vm122_vm0, %v14610_v22 }
 0x57f   :  { %13474 = vmatpush3.bf16.msra.mxu1 %v13471_v33  ;;  %13498 = vmatpush3.bf16.msra.mxu0 %v13495_v19  ;;  %v2689_v33 = vld [vmem:[%s16054_s10 + $0x30] sm:$0xff] }
 0x580   :  { %13484 = vmatprep.subr.bf16.mxu1 %v13483_v24  ;;  %13508 = vmatprep.subr.bf16.mxu0 %v13507_v25  ;;  %v13535_v19 = vpack.c.bf16 %v2690_v18, %v2689_v33 }
 0x582   :  { %12627 = vmatmul.mubr.msk.f32.vlgmr.msra.gmra.mrb[28].mxu1 %vm122_vm0, %v14585_v17  ;;  %12660 = vmatmul.mubr.msk.f32.vlgmr.msra.gmra.mrb[34].mxu0 %vm122_vm0, %v14631_v11 }
 0x583   :  { %13486 = vmatpush3.bf16.msra.mxu1 %v13483_v24  ;;  %12648 = vmatprep.mubr.msk.f32.mxu1 %vm122_vm0, %v14583_v16  ;;  %v2697_v24 = vld [vmem:[%s16054_s10 + $0x70] sm:$0xff] }
 0x584   :  { %13488 = vmatprep.subr.bf16.mxu1 %v13487_v32  ;;  %13510 = vmatpush3.bf16.msra.mxu0 %v13507_v25  ;;  %v2698_v25 = vld [vmem:[%s16054_s10 + $0x78] sm:$0xff] }
 0x585   :  { %13512 = vmatprep.subr.bf16.mxu0 %v13511_v38  ;;  %12681 = vmatprep.mubr.msk.f32.mxu0 %vm122_vm0, %v14610_v22  ;;  %v13551_v26 = vpack.c.bf16 %v2698_v25, %v2697_v24  ;;  %v64_v24 = vld [vmem:[%s16047_s3 + $0x10] sm:$0xff] }
 0x587   :  { %13490 = vmatpush3.bf16.msra.mxu1 %v13487_v32 }
 0x588   :  { %13500 = vmatprep.subr.bf16.mxu1 %v13499_v41  ;;  %13514 = vmatpush3.bf16.msra.mxu0 %v13511_v38 }
 0x589   :  { %13524 = vmatprep.subr.bf16.mxu0 %v13523_v60 }
 0x58a   :  { %12649 = vmatmul.mubr.msk.f32.vlgmr.msra.gmra.mrb[30].mxu1 %vm122_vm0, %v14585_v17 }
 0x58b   :  { %13502 = vmatpush3.bf16.msra.mxu1 %v13499_v41  ;;  %12670 = vmatprep.mubr.msk.f32.mxu1 %vm122_vm0, %v14610_v22 }
 0x58c   :  { %13504 = vmatprep.subr.bf16.mxu1 %v13503_v63  ;;  %12682 = vmatmul.mubr.msk.f32.vlgmr.msra.gmra.mrb[36].mxu0 %vm122_vm0, %v14631_v11 }
 0x58d   :  { %13526 = vmatpush3.bf16.msra.mxu0 %v13523_v60  ;;  %12703 = vmatprep.mubr.msk.f32.mxu0 %vm122_vm0, %v14610_v22 }
 0x58e   :  { %13528 = vmatprep.subr.bf16.mxu0 %v13527_v1 }
 0x58f   :  { %13506 = vmatpush3.bf16.msra.mxu1 %v13503_v63 }
 0x590   :  { %13516 = vmatprep.subr.bf16.mxu1 %v13515_v4 }
 0x591   :  { %13530 = vmatpush3.bf16.msra.mxu0 %v13527_v1 }
 0x592   :  { %12671 = vmatmul.mubr.msk.f32.vlgmr.msra.gmra.mrb[32].mxu1 %vm122_vm0, %v14631_v11  ;;  %13540 = vmatprep.subr.bf16.mxu0 %v13539_v7 }
 0x593   :  { %13518 = vmatpush3.bf16.msra.mxu1 %v13515_v4  ;;  %12692 = vmatprep.mubr.msk.f32.mxu1 %vm122_vm0, %v14610_v22 }
 0x594   :  { %13520 = vmatprep.subr.bf16.mxu1 %v13519_v9  ;;  %12704 = vmatmul.mubr.msk.f32.vlgmr.msra.gmra.mrb[38].mxu0 %vm122_vm0, %v14631_v11 }
 0x595   :  { %13542 = vmatpush3.bf16.msra.mxu0 %v13539_v7  ;;  %12725 = vmatprep.mubr.msk.f32.mxu0 %vm122_vm0, %v14610_v22 }
 0x596   :  { %13544 = vmatprep.subr.bf16.mxu0 %v13543_v14 }
 0x597   :  { %13522 = vmatpush3.bf16.msra.mxu1 %v13519_v9 }
 0x598   :  { %13532 = vmatprep.subr.bf16.mxu1 %v13531_v15 }
 0x599   :  { %13546 = vmatpush3.bf16.msra.mxu0 %v13543_v14 }
 0x59a   :  { %12693 = vmatmul.mubr.msk.f32.vlgmr.msra.gmra.mrb[34].mxu1 %vm122_vm0, %v14631_v11  ;;  %12739 = vmatprep.subr.mxu0 %v14027_v10 }
 0x59b   :  { %13534 = vmatpush3.bf16.msra.mxu1 %v13531_v15  ;;  %12714 = vmatprep.mubr.msk.f32.mxu1 %vm122_vm0, %v14610_v22 }
 0x59c   :  { %13536 = vmatprep.subr.bf16.mxu1 %v13535_v19  ;;  %12726 = vmatmul.mubr.msk.f32.vlgmr.msra.gmra.mrb[40].mxu0 %vm122_vm0, %v14631_v11 }
 0x59d   :  { %12741 = vmatprep.mubr.msk.f32.mxu0 %vm14028_vm1, %v14027_v10 }
 0x59f   :  { %13538 = vmatpush3.bf16.msra.mxu1 %v13535_v19  ;;  %v65_v19 = vld [vmem:[%s16047_s3 + $0x18] sm:$0xff] }
 0x5a0   :  { %13548 = vmatprep.subr.bf16.mxu1 %v13547_v21 }
 0x5a2   :  { %12715 = vmatmul.mubr.msk.f32.vlgmr.msra.gmra.mrb[36].mxu1 %vm122_vm0, %v14631_v11 }
 0x5a3   :  { %13550 = vmatpush3.bf16.msra.mxu1 %v13547_v21  ;;  %12736 = vmatprep.mubr.msk.f32.mxu1 %vm122_vm0, %v14610_v22 }
 0x5a4   :  { %13552 = vmatprep.subr.bf16.mxu1 %v13551_v26 }
 0x5a7   :  { %13554 = vmatpush3.bf16.msra.mxu1 %v13551_v26 }
 0x5a8   :  { %12744 = vmatprep.subr.mxu1 %v14027_v10 }
 0x5aa   :  { %12737 = vmatmul.mubr.msk.f32.vlgmr.msra.gmra.mrb[38].mxu1 %vm122_vm0, %v14631_v11 }
 0x5ab   :  { %12746 = vmatprep.mubr.msk.f32.mxu1 %vm14028_vm1, %v14027_v10 }
 0x64d   :  { %v12617_v27 = vpop.f32.mrb[26].mxu1  ;;  %v12639_v28 = vpop.f32.mrb[32].mxu0 }
 0x64e   :  { %v2775_v23 = vpop.f32.mrb[27].mxu1  ;;  %v2925_v32 = vpop.f32.mrb[33].mxu0 }
 0x655   :  { %v12628_v37 = vpop.f32.mrb[28].mxu1  ;;  %v12661_v34 = vpop.f32.mrb[34].mxu0 }
 0x656   :  { %v2850_v38 = vpop.f32.mrb[29].mxu1  ;;  %v3081_v39 = vpop.f32.mrb[35].mxu0  ;;  %12745 = vmatpush3.xpose.msk.msra.mxu1 %vm1029_vm2, %v12661_v34 }
 0x657   :  { %12740 = vmatpush3.xpose.msk.msra.mxu0 %vm1029_vm2, %v3081_v39  ;;  %12754 = vmatprep.subr.mxu1 %v14027_v10  ;;  %v67_v39 = vld [vmem:[%s16047_s3 + $0x28] sm:$0xff] }
 0x658   :  { %12749 = vmatprep.subr.mxu0 %v14027_v10 }
 0x659   :  { %12747 = vmatmul.mubr.msk.f32.vlgmr.msra.gmra.mrb[40].mxu1 %vm1029_vm2, %v12617_v27 }
 0x65a   :  { %12742 = vmatmul.mubr.msk.f32.vlgmr.msra.gmra.mrb[42].mxu0 %vm1029_vm2, %v2775_v23  ;;  %12756 = vmatprep.mubr.msk.f32.mxu1 %vm14028_vm1, %v14027_v10 }
 0x65b   :  { %12751 = vmatprep.mubr.msk.f32.mxu0 %vm14028_vm1, %v14027_v10 }
 0x65d   :  { %v12650_v22 = vpop.f32.mrb[30].mxu1 }
 0x65e   :  { %v3000_v11 = vpop.f32.mrb[31].mxu1 }
 0x65f   :  { %v12683_v40 = vpop.f32.mrb[36].mxu0 }
 0x660   :  { %v3231_v41 = vpop.f32.mrb[37].mxu0 }
 0x665   :  { %v12672_v42 = vpop.f32.mrb[32].mxu1 }
 0x666   :  { %v3156_v59 = vpop.f32.mrb[33].mxu1  ;;  %12755 = vmatpush3.xpose.msk.msra.mxu1 %vm1029_vm2, %v12672_v42 }
 0x667   :  { %12750 = vmatpush3.xpose.msk.msra.mxu0 %vm1029_vm2, %v3156_v59  ;;  %12764 = vmatprep.subr.mxu1 %v14027_v10  ;;  %v12705_v60 = vpop.f32.mrb[38].mxu0 }
 0x668   :  { %12759 = vmatprep.subr.mxu0 %v14027_v10  ;;  %v3381_v61 = vpop.f32.mrb[39].mxu0 }
 0x669   :  { %12757 = vmatmul.mubr.msk.f32.vlgmr.msra.gmra.mrb[42].mxu1 %vm1029_vm2, %v12628_v37 }
 0x66a   :  { %12752 = vmatmul.mubr.msk.f32.vlgmr.msra.gmra.mrb[44].mxu0 %vm1029_vm2, %v2850_v38  ;;  %12765 = vmatpush3.xpose.msk.msra.mxu1 %vm1029_vm2, %v12683_v40 }
 0x66b   :  { %12760 = vmatpush3.xpose.msk.msra.mxu0 %vm1029_vm2, %v3231_v41  ;;  %12766 = vmatprep.mubr.msk.f32.mxu1 %vm14028_vm1, %v14027_v10 }
 0x66c   :  { %12761 = vmatprep.mubr.msk.f32.mxu0 %vm14028_vm1, %v14027_v10  ;;  %12774 = vmatprep.subr.mxu1 %v14027_v10 }
 0x66d   :  { %v12694_v62 = vpop.f32.mrb[34].mxu1  ;;  %12767 = vmatmul.mubr.msk.f32.vlgmr.msra.gmra.mrb[44].mxu1 %vm1029_vm2, %v12639_v28  ;;  %12769 = vmatprep.subr.mxu0 %v14027_v10 }
 0x66e   :  { %v3306_v63 = vpop.f32.mrb[35].mxu1  ;;  %12762 = vmatmul.mubr.msk.f32.vlgmr.msra.gmra.mrb[46].mxu0 %vm1029_vm2, %v2925_v32  ;;  %12775 = vmatpush3.xpose.msk.msra.mxu1 %vm1029_vm2, %v12694_v62 }
 0x66f   :  { %12770 = vmatpush3.xpose.msk.msra.mxu0 %vm1029_vm2, %v3306_v63  ;;  %12776 = vmatprep.mubr.msk.f32.mxu1 %vm14028_vm1, %v14027_v10  ;;  %v14777_v0 = vpop.f32.mrb[40].mxu0 }
 0x670   :  { %12771 = vmatprep.mubr.msk.f32.mxu0 %vm14028_vm1, %v14027_v10  ;;  %12779 = vmatprep.subr.mxu0 %v14027_v10  ;;  %v14782_v30 = vpop.f32.mrb[41].mxu0 }
 0x671   :  { %12777 = vmatmul.mubr.msk.f32.vlgmr.msra.gmra.mrb[46].mxu1 %vm1029_vm2, %v12650_v22  ;;  %12784 = vmatprep.subr.mxu1 %v14027_v10 }
 0x672   :  { %12772 = vmatmul.mubr.msk.f32.vlgmr.msra.gmra.mrb[48].mxu0 %vm1029_vm2, %v3000_v11  ;;  %12785 = vmatpush3.msra.mxu1 %v12705_v60  ;;  %v66_v11 = vld [vmem:[%s16047_s3 + $0x20] sm:$0xff] }
 0x673   :  { %12780 = vmatpush3.msra.mxu0 %v3381_v61  ;;  %12786 = vmatprep.mubr.msk.f32.mxu1 %vm14028_vm1, %v14027_v10 }
 0x674   :  { %12794 = vmatprep.subr.mxu1 %v14027_v10  ;;  %12781 = vmatprep.mubr.msk.f32.mxu0 %vm14028_vm1, %v14027_v10 }
 0x675   :  { %v14792_v1 = vpop.f32.mrb[36].mxu1  ;;  %12789 = vmatprep.subr.mxu0 %v14027_v10 }
 0x676   :  { %v14795_v2 = vpop.f32.mrb[37].mxu1 }
 0x67d   :  { %v14797_v29 = vpop.f32.mrb[38].mxu1 }
 0x67e   :  { %v14799_v4 = vpop.f32.mrb[39].mxu1 }
 0x72c   :  { %v3763_v6 = vpop.f32.mrb[40].mxu1 }
 0x72d   :  { %v4224_v7 = vmul.f32 0.35355338, %v3763_v6  ;;  %v3687_v35 = vpop.f32.mrb[42].mxu0  ;;  %v12748_v9 = vpop.f32.mrb[41].mxu1  ;;  %v69_v6 = vld [vmem:[%s16047_s3 + $0x38] sm:$0xff] }
 0x72e   :  { %v4223_v12 = vmul.f32 0.35355338, %v3687_v35  ;;  %v12743_v13 = vpop.f32.mrb[43].mxu0 }
 0x72f   :  { %v4232_v14 = vadd.f32 %v4224_v7, %v63_v5 }
 0x730   :  { %v4231_v15 = vadd.f32 %v4223_v12, %v62_v8  ;;  %v68_v8 = vld [vmem:[%s16047_s3 + $0x30] sm:$0xff] }
 0x731   :  { %v4241_v33 = vmul.f32 1.442695, %v4232_v14 }
 0x732   :  { %v4239_v18 = vmul.f32 1.442695, %v4231_v15 }
 0x733   :  { %13869 = vpow2.f32 %v4241_v33 }
 0x734   :  { %13871 = vpow2.f32 %v4239_v18 }
 0x73c   :  { %v3915_v20 = vpop.f32.mrb[42].mxu1 }
 0x73d   :  { %v14810_v36 = vpop.eup %13869  ;;  %v4226_v21 = vmul.f32 0.35355338, %v3915_v20  ;;  %v3839_v25 = vpop.f32.mrb[44].mxu0 }
 0x73e   :  { %v12758_v26 = vpop.f32.mrb[43].mxu1  ;;  %v14815_v27 = vpop.eup %13871  ;;  %v4225_v28 = vmul.f32 0.35355338, %v3839_v25  ;;  %v4258_v32 = vsel %vm1029_vm2, %v14810_v36, 0.0 }
 0x73f   :  { %v12753_v23 = vpop.f32.mrb[45].mxu0  ;;  %v4234_v37 = vadd.f32 %v4226_v21, %v65_v19  ;;  %4259 = vadd.xlane.f32.xlu1 %v4258_v32  ;;  %v4255_v34 = vsel %vm1029_vm2, %v14815_v27, 0.0 }
 0x740   :  { %v4233_v38 = vadd.f32 %v4225_v28, %v64_v24  ;;  %4256 = vadd.xlane.f32.xlu0 %v4255_v34  ;;  %v4067_v22 = vpop.f32.mrb[44].mxu1 }
 0x741   :  { %v4245_v40 = vmul.f32 1.442695, %v4234_v37  ;;  %v4228_v41 = vmul.f32 0.35355338, %v4067_v22  ;;  %v3991_v42 = vpop.f32.mrb[46].mxu0  ;;  %v12768_v59 = vpop.f32.mrb[45].mxu1 }
 0x742   :  { %v4243_v60 = vmul.f32 1.442695, %v4233_v38  ;;  %v4227_v61 = vmul.f32 0.35355338, %v3991_v42  ;;  %v12763_v62 = vpop.f32.mrb[47].mxu0 }
 0x743   :  { %13873 = vpow2.f32 %v4245_v40  ;;  %v4236_v63 = vadd.f32 %v4228_v41, %v67_v39 }
 0x744   :  { %13875 = vpow2.f32 %v4243_v60  ;;  %v4235_v5 = vadd.f32 %v4227_v61, %v66_v11  ;;  %v4219_v7 = vpop.f32.mrb[46].mxu1 }
 0x745   :  { %v4249_v35 = vmul.f32 1.442695, %v4236_v63  ;;  %v4230_v9 = vmul.f32 0.35355338, %v4219_v7  ;;  %v4143_v12 = vpop.f32.mrb[48].mxu0  ;;  %v12778_v13 = vpop.f32.mrb[47].mxu1 }
 0x746   :  { %v4247_v14 = vmul.f32 1.442695, %v4235_v5  ;;  %v4229_v15 = vmul.f32 0.35355338, %v4143_v12  ;;  %v12773_v33 = vpop.f32.mrb[49].mxu0 }
 0x747   :  { %13877 = vpow2.f32 %v4249_v35  ;;  %v4238_v18 = vadd.f32 %v4230_v9, %v69_v6 }
 0x748   :  { %13879 = vpow2.f32 %v4247_v14  ;;  %v4237_v19 = vadd.f32 %v4229_v15, %v68_v8 }
 0x749   :  { %v4253_v20 = vmul.f32 1.442695, %v4238_v18 }
 0x74a   :  { %v4251_v21 = vmul.f32 1.442695, %v4237_v19 }
 0x74b   :  { %13881 = vpow2.f32 %v4253_v20 }
 0x74c   :  { %13883 = vpow2.f32 %v4251_v21 }
 0x74d   :  { %v13874_v24 = vpop.eup %13873 }
 0x74e   :  { %v13876_v25 = vpop.eup %13875  ;;  %v4264_v26 = vsel %vm1029_vm2, %v13874_v24, 0.0 }
 0x74f   :  { %4265 = vadd.xlane.f32.xlu1 %v4264_v26  ;;  %v4261_v28 = vsel %vm1029_vm2, %v13876_v25, 0.0 }
 0x750   :  { %4262 = vadd.xlane.f32.xlu0 %v4261_v28 }
 0x751   :  { %v13878_v23 = vpop.eup %13877 }
 0x752   :  { %v13880_v32 = vpop.eup %13879  ;;  %v4270_v37 = vsel %vm1029_vm2, %v13878_v23, 0.0 }
 0x753   :  { %4271 = vadd.xlane.f32.xlu1 %v4270_v37  ;;  %v4267_v34 = vsel %vm1029_vm2, %v13880_v32, 0.0 }
 0x754   :  { %4268 = vadd.xlane.f32.xlu0 %v4267_v34 }
 0x755   :  { %v14837_v38 = vpop.eup %13881 }
 0x756   :  { %v14839_v39 = vpop.eup %13883  ;;  %v4276_v22 = vsel %vm1029_vm2, %v14837_v38, 0.0 }
 0x757   :  { %4277 = vadd.xlane.f32.xlu1 %v4276_v22  ;;  %v4273_v11 = vsel %vm1029_vm2, %v14839_v39, 0.0 }
 0x758   :  { %4274 = vadd.xlane.f32.xlu0 %v4273_v11 }
 0x7cc   :  { %v4260_v40 = vpop.xlane.xlu1 %4259 }
 0x7cd   :  { %13885 = vrcp.f32 %v4260_v40  ;;  %v4257_v41 = vpop.xlane.xlu0 %4256 }
 0x7ce   :  { %13887 = vrcp.f32 %v4257_v41 }
 0x7d7   :  { %v13886_v42 = vpop.eup %13885 }
 0x7d8   :  { %v13888_v59 = vpop.eup %13887  ;;  %v4282_v60 = vmul.f32 %v13886_v42, %v14810_v36 }
 0x7d9   :  { %v4280_v61 = vmul.f32 %v13888_v59, %v14815_v27 }
 0x7da   :  { %12787 = vmatmul.mubr.msk.f32.vlgmr.msra.gmra.mrb[48].mxu1 %vm1029_vm2, %v4282_v60 }
 0x7db   :  { %12795 = vmatpush3.msra.mxu1 %v14792_v1  ;;  %12782 = vmatmul.mubr.msk.f32.vlgmr.msra.gmra.mrb[50].mxu0 %vm1029_vm2, %v4280_v61 }
 0x7dc   :  { %12790 = vmatpush3.msra.mxu0 %v14795_v2  ;;  %v4266_v62 = vpop.xlane.xlu1 %4265  ;;  %12796 = vmatprep.mubr.msk.f32.mxu1 %vm14028_vm1, %v14027_v10 }
 0x7dd   :  { %13889 = vrcp.f32 %v4266_v62  ;;  %v4263_v63 = vpop.xlane.xlu0 %4262  ;;  %12804 = vmatprep.subr.mxu1 %v14027_v10  ;;  %12791 = vmatprep.mubr.msk.f32.mxu0 %vm14028_vm1, %v14027_v10 }
 0x7de   :  { %13891 = vrcp.f32 %v4263_v63  ;;  %12799 = vmatprep.subr.mxu0 %v14027_v10 }
 0x7e0   :  { %v4272_v36 = vpop.xlane.xlu1 %4271 }
 0x7e1   :  { %13893 = vrcp.f32 %v4272_v36  ;;  %v4269_v1 = vpop.xlane.xlu0 %4268 }
 0x7e2   :  { %13895 = vrcp.f32 %v4269_v1 }
 0x7e4   :  { %v4278_v27 = vpop.xlane.xlu1 %4277 }
 0x7e5   :  { %13897 = vrcp.f32 %v4278_v27  ;;  %v4275_v2 = vpop.xlane.xlu0 %4274 }
 0x7e6   :  { %13899 = vrcp.f32 %v4275_v2 }
 0x7e7   :  { %v13890_v5 = vpop.eup %13889 }
 0x7e8   :  { %v13892_v6 = vpop.eup %13891  ;;  %v4286_v7 = vmul.f32 %v13890_v5, %v13874_v24 }
 0x7e9   :  { %v4284_v8 = vmul.f32 %v13892_v6, %v13876_v25 }
 0x7ea   :  { %12797 = vmatmul.mubr.msk.f32.vlgmr.msra.gmra.mrb[50].mxu1 %vm1029_vm2, %v4286_v7  ;;  %v5630_v35 = vcombine.low %v4282_v60, %v4286_v7  ;;  %v5631_v9 = vcombine.high %v4282_v60, %v4286_v7 }
 0x7eb   :  { %v13894_v12 = vpop.eup %13893  ;;  %12805 = vmatpush3.msra.mxu1 %v14777_v0  ;;  %12792 = vmatmul.mubr.msk.f32.vlgmr.msra.gmra.mrb[52].mxu0 %vm1029_vm2, %v4284_v8  ;;  %v5614_v13 = vcombine.low %v4280_v61, %v4284_v8  ;;  %v5615_v14 = vcombine.high %v4280_v61, %v4284_v8 }
 0x7ec   :  { %v13896_v15 = vpop.eup %13895  ;;  %v4290_v33 = vmul.f32 %v13894_v12, %v13878_v23  ;;  %12800 = vmatpush3.msra.mxu0 %v14782_v30  ;;  %12806 = vmatprep.mubr.msk.f32.mxu1 %vm14028_vm1, %v14027_v10  ;;  %v5638_v18 = vrot.slane %v5630_v35, %v14438_v3  ;;  %v5645_v19 = vrot.slane %v5631_v9, %v14438_v3 }
 0x7ed   :  { %v4288_v20 = vmul.f32 %v13896_v15, %v13880_v32  ;;  %12814 = vmatprep.subr.mxu1 %v14027_v10  ;;  %12801 = vmatprep.mubr.msk.f32.mxu0 %vm14028_vm1, %v14027_v10  ;;  %v5622_v0 = vrot.slane %v5614_v13, %v14438_v3  ;;  %v5629_v21 = vrot.slane %v5615_v14, %v14438_v3  ;;  %v2700_v15 = vld [vmem:[%s16055_s11 + $0x8] sm:$0xff] }
 0x7ee   :  { %12807 = vmatmul.mubr.msk.f32.vlgmr.msra.gmra.mrb[52].mxu1 %vm1029_vm2, %v4290_v33  ;;  %12809 = vmatprep.subr.mxu0 %v14027_v10 }
 0x7ef   :  { %v13898_v30 = vpop.eup %13897  ;;  %12815 = vmatpush3.msra.mxu1 %v14797_v29  ;;  %12802 = vmatmul.mubr.msk.f32.vlgmr.msra.gmra.mrb[54].mxu0 %vm1029_vm2, %v4288_v20  ;;  %v5679_v24 = vcombine.high %v5622_v0, %v5638_v18  ;;  %v5678_v25 = vcombine.low %v5622_v0, %v5638_v18  ;;  %v5694_v26 = vcombine.low %v5629_v21, %v5645_v19 }
 0x7f0   :  { %v13900_v28 = vpop.eup %13899  ;;  %v4294_v23 = vmul.f32 %v13898_v30, %v14837_v38  ;;  %12810 = vmatpush3.msra.mxu0 %v14799_v4  ;;  %12816 = vmatprep.mubr.msk.f32.mxu1 %vm14028_vm1, %v14027_v10  ;;  %v5695_v32 = vcombine.high %v5629_v21, %v5645_v19 }
 0x7f1   :  { %v4292_v37 = vmul.f32 %v13900_v28, %v14839_v39  ;;  %12811 = vmatprep.mubr.msk.f32.mxu0 %vm14028_vm1, %v14027_v10  ;;  %v14888_v61 = vrot.slane %v5679_v24, %v14463_v31  ;;  %v14891_v62 = vrot.slane %v5678_v25, %v14463_v31  ;;  %v14894_v63 = vrot.slane %v5694_v26, %v14463_v31  ;;  %v2701_v26 = vld [vmem:[%s16055_s11 + $0x10] sm:$0xff] }
 0x7f2   :  { %12817 = vmatmul.mubr.msk.f32.vlgmr.msra.gmra.mrb[54].mxu1 %vm1029_vm2, %v4294_v23  ;;  %v5662_v29 = vcombine.low %v4290_v33, %v4294_v23  ;;  %v5663_v34 = vcombine.high %v4290_v33, %v4294_v23  ;;  %v14909_v5 = vrot.slane %v5695_v32, %v14463_v31  ;;  %12819 = vmatprep.subr.mxu0 %v2700_v15  ;;  %v2699_v33 = vld [vmem:[%s16055_s11] sm:$0xff] }
 0x7f3   :  { %12812 = vmatmul.mubr.msk.f32.vlgmr.msra.gmra.mrb[56].mxu0 %vm1029_vm2, %v4292_v37  ;;  %v5646_v22 = vcombine.low %v4288_v20, %v4292_v37  ;;  %v5647_v11 = vcombine.high %v4288_v20, %v4292_v37 }
 0x7f4   :  { %v5670_v38 = vrot.slane %v5662_v29, %v14438_v3  ;;  %v5677_v4 = vrot.slane %v5663_v34, %v14438_v3  ;;  %12820 = vmatpush3.msra.mxu0 %v2700_v15 }
 0x7f5   :  { %v5654_v40 = vrot.slane %v5646_v22, %v14438_v3  ;;  %v5661_v41 = vrot.slane %v5647_v11, %v14438_v3  ;;  %12824 = vmatprep.subr.mxu0 %v2699_v33 }
 0x7f7   :  { %v5711_v39 = vcombine.high %v5654_v40, %v5670_v38  ;;  %v5710_v42 = vcombine.low %v5654_v40, %v5670_v38  ;;  %v5726_v59 = vcombine.low %v5661_v41, %v5677_v4  ;;  %v5727_v60 = vcombine.high %v5661_v41, %v5677_v4  ;;  %v2702_v38 = vld [vmem:[%s16055_s11 + $0x18] sm:$0xff] }
 0x7f9   :  { %v14897_v36 = vrot.slane %v5711_v39, %v14463_v31  ;;  %v14900_v1 = vrot.slane %v5710_v42, %v14463_v31  ;;  %v14903_v27 = vrot.slane %v5726_v59, %v14463_v31  ;;  %v14906_v2 = vrot.slane %v5727_v60, %v14463_v31 }
 0x7fb   :  { %v5744_v6 = vcombine.low %v14888_v61, %v14897_v36  ;;  %v5743_v7 = vcombine.high %v14891_v62, %v14900_v1  ;;  %v5745_v8 = vcombine.high %v14888_v61, %v14897_v36  ;;  %v5746_v35 = vcombine.low %v14894_v63, %v14903_v27  ;;  %v11868_v61 = vld [vmem:[%s16057_s13 + $0x40] sm:$0xff] }
 0x7fc   :  { %v5747_v9 = vcombine.high %v14894_v63, %v14903_v27  ;;  %v5748_v12 = vcombine.low %v14909_v5, %v14906_v2  ;;  %v5749_v14 = vcombine.high %v14909_v5, %v14906_v2  ;;  %v11869_v63 = vld [vmem:[%s16057_s13 + $0x48] sm:$0xff]  ;;  %v16063_v2 = vcombine.low %v14473_v44, %v14482_v47 }
 0x7fd   :  { %v13779_v36 = vpack.c.bf16 %v11869_v63, %v11868_v61 }
 0x8ad   :  { %v4437_v18 = vpop.f32.mrb[48].mxu1 }
 0x8ae   :  { %v4364_v19 = vpop.f32.mrb[50].mxu0  ;;  %v12788_v20 = vpop.f32.mrb[49].mxu1 }
 0x8af   :  { %v12783_v0 = vpop.f32.mrb[51].mxu0 }
 0x8bd   :  { %v4583_v21 = vpop.f32.mrb[50].mxu1 }
 0x8be   :  { %v4510_v30 = vpop.f32.mrb[52].mxu0  ;;  %v12798_v24 = vpop.f32.mrb[51].mxu1 }
 0x8bf   :  { %v12793_v25 = vpop.f32.mrb[53].mxu0  ;;  %12821 = vmatprep.mubr.msk.f32.mxu0 %vm1029_vm2, %v4510_v30  ;;  %v5236_v24 = vld [vmem:[%s16056_s12 + $0x8] sm:$0xff] }
 0x8c0   :  { %12822 = vmatmul.mubr.msk.f32.vlgmr.msra.gmra.mrb[58].mxu0 %vm1029_vm2, %v4583_v21  ;;  %v5237_v25 = vld [vmem:[%s16056_s12 + $0x10] sm:$0xff] }
 0x8c1   :  { %v4729_v28 = vpop.f32.mrb[52].mxu1  ;;  %12825 = vmatpush3.msra.mxu0 %v2699_v33  ;;  %12826 = vmatprep.mubr.msk.f32.mxu0 %vm1029_vm2, %v4364_v19 }
 0x8c2   :  { %v4656_v23 = vpop.f32.mrb[54].mxu0  ;;  %v12808_v32 = vpop.f32.mrb[53].mxu1  ;;  %12829 = vmatprep.subr.mxu0 %v2701_v26 }
 0x8c3   :  { %v12803_v37 = vpop.f32.mrb[55].mxu0  ;;  %v5322_v32 = vld [vmem:[%s16057_s13] sm:$0xff] }
 0x8c4   :  { %v5323_v37 = vld [vmem:[%s16057_s13 + $0x8] sm:$0xff] }
 0x8c5   :  { %v4875_v29 = vpop.f32.mrb[54].mxu1 }
 0x8c6   :  { %v4802_v34 = vpop.f32.mrb[56].mxu0  ;;  %v12818_v22 = vpop.f32.mrb[55].mxu1 }
 0x8c7   :  { %v12813_v11 = vpop.f32.mrb[57].mxu0 }
 0x8c8   :  { %12827 = vmatmul.mubr.msk.f32.vlgmr.msra.gmra.mrb[58].mxu0 %vm1029_vm2, %v4437_v18 }
 0x8c9   :  { %12830 = vmatpush3.msra.mxu0 %v2701_v26  ;;  %12831 = vmatprep.mubr.msk.f32.mxu0 %vm1029_vm2, %v4656_v23 }
 0x8ca   :  { %12834 = vmatprep.subr.mxu0 %v2702_v38 }
 0x8d0   :  { %12832 = vmatmul.mubr.msk.f32.vlgmr.msra.gmra.mrb[58].mxu0 %vm1029_vm2, %v4729_v28  ;;  %v5238_v28 = vld [vmem:[%s16056_s12 + $0x18] sm:$0xff] }
 0x8d1   :  { %12835 = vmatpush3.msra.mxu0 %v2702_v38  ;;  %12836 = vmatprep.mubr.msk.f32.mxu0 %vm1029_vm2, %v4802_v34  ;;  %v13559_v23 = vpack.c.bf16 %v5238_v28, %v5237_v25 }
 0x8d8   :  { %12837 = vmatmul.mubr.msk.f32.vlgmr.msra.gmra.mrb[58].mxu0 %vm1029_vm2, %v4875_v29  ;;  %v13563_v29 = vpack.c.bf16 %v5323_v37, %v5322_v32 }
 0x9ab   :  { %v12838_v4 = vpop.f32.mrb[58].mxu0 }
 0x9ac   :  { %v5208_v40 = vadd.f32 %v12838_v4, %v14585_v17  ;;  %v5196_v41 = vpop.f32.mrb[59].mxu0 }
 0x9ad   :  { %v5207_v39 = vadd.f32 %v5196_v41, %v14583_v16  ;;  %v5235_v16 = vld [vmem:[%s16056_s12] sm:$0xff] }
 0x9ae   :  { %v5212_v42 = vsel %vm122_vm0, %v5208_v40, 0.0  ;;  %v13555_v26 = vpack.c.bf16 %v5236_v24, %v5235_v16 }
 0x9af   :  { %5213 = vadd.xlane.f32.xlu1 %v5212_v42  ;;  %v5209_v59 = vsel %vm122_vm0, %v5207_v39, 0.0  ;;  %v5325_v42 = vld [vmem:[%s16057_s13 + $0x18] sm:$0xff] }
 0x9b0   :  { %5210 = vadd.xlane.f32.xlu0 %v5209_v59  ;;  %13556 = vmatprep.subr.bf16.mxu1 %v13555_v26 }
 0x9b1   :  { %13558 = vmatpush3.bf16.msra.mxu1 %v13555_v26 }
 0x9b2   :  { %13560 = vmatprep.subr.bf16.mxu1 %v13559_v23 }
 0x9b5   :  { %13562 = vmatpush3.bf16.msra.mxu1 %v13559_v23 }
 0x9b6   :  { %13564 = vmatprep.subr.bf16.mxu1 %v13563_v29 }
 0xa3c   :  { %v5214_v60 = vpop.xlane.xlu1 %5213 }
 0xa3d   :  { %v5216_v15 = vmul.f32 0.03125, %v5214_v60  ;;  %v5211_v33 = vpop.xlane.xlu0 %5210 }
 0xa3e   :  { %v5215_v18 = vmul.f32 0.03125, %v5211_v33 }
 0xa3f   :  { %v5218_v19 = vsub.f32 %v5208_v40, %v5216_v15 }
 0xa40   :  { %v5217_v20 = vsub.f32 %v5207_v39, %v5215_v18  ;;  %v5324_v39 = vld [vmem:[%s16057_s13 + $0x10] sm:$0xff]  ;;  %v5326_v18 = vld [vmem:[%s16057_s13 + $0x20] sm:$0xff] }
 0xa41   :  { %v5220_v0 = vmul.f32 %v5218_v19, %v5218_v19  ;;  %v13567_v33 = vpack.c.bf16 %v5325_v42, %v5324_v39 }
 0xa42   :  { %v5219_v21 = vmul.f32 %v5217_v20, %v5217_v20 }
 0xa43   :  { %v5224_v30 = vsel %vm122_vm0, %v5220_v0, 0.0  ;;  %v5327_v0 = vld [vmem:[%s16057_s13 + $0x28] sm:$0xff] }
 0xa44   :  { %5225 = vadd.xlane.f32.xlu1 %v5224_v30  ;;  %v5221_v17 = vsel %vm122_vm0, %v5219_v21, 0.0  ;;  %v13571_v21 = vpack.c.bf16 %v5327_v0, %v5326_v18  ;;  %v11655_v0 = vld [vmem:[%s16048_s4 + $0xc8] sm:$0xff] }
 0xa45   :  { %5222 = vadd.xlane.f32.xlu0 %v5221_v17 }
 0xad1   :  { %v5226_v34 = vpop.xlane.xlu1 %5225 }
 0xad2   :  { %v5228_v22 = vmul.f32 0.03125, %v5226_v34  ;;  %v5223_v11 = vpop.xlane.xlu0 %5222 }
 0xad3   :  { %v5227_v38 = vmul.f32 0.03125, %v5223_v11 }
 0xad4   :  { %v5230_v4 = vadd.f32 1e-05, %v5228_v22 }
 0xad5   :  { %v5229_v40 = vadd.f32 1e-05, %v5227_v38 }
 0xad6   :  { %13901 = vrsqrt.f32 %v5230_v4 }
 0xad7   :  { %13903 = vrsqrt.f32 %v5229_v40 }
 0xae0   :  { %v13902_v41 = vpop.eup %13901 }
 0xae1   :  { %v13904_v59 = vpop.eup %13903  ;;  %v5234_v15 = vmul.f32 %v13902_v41, %v5218_v19  ;;  %v5328_v19 = vld [vmem:[%s16057_s13 + $0x30] sm:$0xff] }
 0xae2   :  { %v5233_v60 = vmul.f32 %v13904_v59, %v5217_v20  ;;  %v5329_v20 = vld [vmem:[%s16057_s13 + $0x38] sm:$0xff] }
 0xae3   :  { %v13575_v30 = vpack.c.bf16 %v5329_v20, %v5328_v19  ;;  %v11648_v19 = vld [vmem:[%s16048_s4 + $0x90] sm:$0xff]  ;;  %v11649_v20 = vld [vmem:[%s16048_s4 + $0x98] sm:$0xff] }
 0xae4   :  { %12847 = vmatprep.mubr.msk.f32.mxu1 %vm122_vm0, %v5233_v60 }
 0xae5   :  { %12848 = vmatmul.mubr.msk.f32.vlgmr.msra.gmra.mrb[56].mxu1 %vm122_vm0, %v5234_v15 }
 0xae6   :  { %13566 = vmatpush3.bf16.msra.mxu1 %v13563_v29 }
 0xae7   :  { %13568 = vmatprep.subr.bf16.mxu1 %v13567_v33 }
 0xaea   :  { %13570 = vmatpush3.bf16.msra.mxu1 %v13567_v33  ;;  %v11654_v33 = vld [vmem:[%s16048_s4 + $0xc0] sm:$0xff] }
 0xaeb   :  { %13572 = vmatprep.subr.bf16.mxu1 %v13571_v21 }
 0xaee   :  { %13574 = vmatpush3.bf16.msra.mxu1 %v13571_v21  ;;  %v13595_v21 = vpack.c.bf16 %v11655_v0, %v11654_v33  ;;  %v11665_v33 = vld [vmem:[%s16049_s5 + $0x98] sm:$0xff] }
 0xaef   :  { %13576 = vmatprep.subr.bf16.mxu1 %v13575_v30 }
 0xaf2   :  { %13578 = vmatpush3.bf16.msra.mxu1 %v13575_v30  ;;  %v11656_v30 = vld [vmem:[%s16048_s4 + $0xd0] sm:$0xff] }
 0xaf3   :  { %13596 = vmatprep.subr.bf16.mxu1 %v13595_v21 }
 0xbb8   :  { %v12849_v17 = vpop.f32.mrb[56].mxu1 }
 0xbb9   :  { %v5311_v16 = vpop.f32.mrb[57].mxu1  ;;  %v5321_v25 = vmax.f32 %v12849_v17, 0.0  ;;  %v13583_v17 = vpack.c.bf16 %v11649_v20, %v11648_v19 }
 0xbba   :  { %v5320_v24 = vmax.f32 %v5311_v16, 0.0  ;;  %v11657_v16 = vld [vmem:[%s16048_s4 + $0xd8] sm:$0xff] }
 0xbbc   :  { %12866 = vmatprep.mubr.msk.f32.mxu1 %vm5330_vm3, %v5320_v24  ;;  %v13599_v24 = vpack.c.bf16 %v11657_v16, %v11656_v30  ;;  %v11659_v30 = vld [vmem:[%s16048_s4 + $0xe8] sm:$0xff] }
 0xbbd   :  { %12867 = vmatmul.mubr.msk.f32.vlgmr.msra.gmra.mrb[58].mxu1 %vm5330_vm3, %v5321_v25  ;;  %v11650_v25 = vld [vmem:[%s16048_s4 + $0xa0] sm:$0xff] }
 0xbbe   :  { %13598 = vmatpush3.bf16.msra.mxu1 %v13595_v21  ;;  %v11658_v21 = vld [vmem:[%s16048_s4 + $0xe0] sm:$0xff] }
 0xbbf   :  { %13600 = vmatprep.subr.bf16.mxu1 %v13599_v24 }
 0xbc2   :  { %13602 = vmatpush3.bf16.msra.mxu1 %v13599_v24  ;;  %v11660_v24 = vld [vmem:[%s16048_s4 + $0xf0] sm:$0xff] }
 0xc90   :  { %v12868_v26 = vpop.f32.mrb[58].mxu1 }
 0xc91   :  { %v5409_v28 = vadd.f32 %v12868_v26, %v5234_v15  ;;  %v5403_v23 = vpop.f32.mrb[59].mxu1  ;;  %v11647_v15 = vld [vmem:[%s16048_s4 + $0x88] sm:$0xff] }
 0xc92   :  { %v5404_v32 = vadd.f32 %v5403_v23, %v5233_v60  ;;  %v11646_v60 = vld [vmem:[%s16048_s4 + $0x80] sm:$0xff]  ;;  %v11651_v26 = vld [vmem:[%s16048_s4 + $0xa8] sm:$0xff] }
 0xc93   :  { %v5415_v37 = vsel %vm122_vm0, %v5409_v28, 0.0  ;;  %v13579_v18 = vpack.c.bf16 %v11647_v15, %v11646_v60  ;;  %v13587_v23 = vpack.c.bf16 %v11651_v26, %v11650_v25  ;;  %v11653_v60 = vld [vmem:[%s16048_s4 + $0xb8] sm:$0xff]  ;;  %v11664_v15 = vld [vmem:[%s16049_s5 + $0x90] sm:$0xff] }
 0xc94   :  { %5416 = vadd.xlane.f32.xlu1 %v5415_v37  ;;  %v5412_v29 = vsel %vm122_vm0, %v5404_v32, 0.0  ;;  %v13615_v20 = vpack.c.bf16 %v11665_v33, %v11664_v15  ;;  %v11661_v25 = vld [vmem:[%s16048_s4 + $0xf8] sm:$0xff]  ;;  %v11672_v26 = vld [vmem:[%s16049_s5 + $0xd0] sm:$0xff]  ;;  %v11674_v15 = vld [vmem:[%s16049_s5 + $0xe0] sm:$0xff] }
 0xc95   :  { %5413 = vadd.xlane.f32.xlu0 %v5412_v29  ;;  %13580 = vmatprep.subr.bf16.mxu0 %v13579_v18  ;;  %v11675_v33 = vld [vmem:[%s16049_s5 + $0xe8] sm:$0xff] }
 0xc96   :  { %13582 = vmatpush3.bf16.msra.mxu0 %v13579_v18 }
 0xc97   :  { %13584 = vmatprep.subr.bf16.mxu0 %v13583_v17 }
 0xc9a   :  { %13586 = vmatpush3.bf16.msra.mxu0 %v13583_v17  ;;  %v13603_v17 = vpack.c.bf16 %v11659_v30, %v11658_v21  ;;  %v13635_v30 = vpack.c.bf16 %v11675_v33, %v11674_v15 }
 0xc9b   :  { %13588 = vmatprep.subr.bf16.mxu0 %v13587_v23 }
 0xd21   :  { %v5417_v34 = vpop.xlane.xlu1 %5416 }
 0xd22   :  { %v5419_v22 = vmul.f32 0.03125, %v5417_v34  ;;  %v5414_v11 = vpop.xlane.xlu0 %5413 }
 0xd23   :  { %v5418_v38 = vmul.f32 0.03125, %v5414_v11 }
 0xd24   :  { %v5421_v4 = vsub.f32 %v5409_v28, %v5419_v22  ;;  %v11662_v28 = vld [vmem:[%s16049_s5 + $0x80] sm:$0xff] }
 0xd25   :  { %v5420_v40 = vsub.f32 %v5404_v32, %v5418_v38  ;;  %v11663_v32 = vld [vmem:[%s16049_s5 + $0x88] sm:$0xff] }
 0xd26   :  { %v5423_v41 = vmul.f32 %v5421_v4, %v5421_v4  ;;  %v13611_v37 = vpack.c.bf16 %v11663_v32, %v11662_v28  ;;  %v11673_v28 = vld [vmem:[%s16049_s5 + $0xd8] sm:$0xff] }
 0xd27   :  { %v5422_v39 = vmul.f32 %v5420_v40, %v5420_v40  ;;  %v13631_v32 = vpack.c.bf16 %v11673_v28, %v11672_v26  ;;  %v11682_v26 = vld [vmem:[%s16050_s6 + $0xa0] sm:$0xff]  ;;  %v11683_v28 = vld [vmem:[%s16050_s6 + $0xa8] sm:$0xff] }
 0xd28   :  { %v5427_v42 = vsel %vm122_vm0, %v5423_v41, 0.0  ;;  %13612 = vmatprep.subr.bf16.mxu1 %v13611_v37 }
 0xd29   :  { %5428 = vadd.xlane.f32.xlu1 %v5427_v42  ;;  %v5424_v59 = vsel %vm122_vm0, %v5422_v39, 0.0  ;;  %v11652_v42 = vld [vmem:[%s16048_s4 + $0xb0] sm:$0xff] }
 0xd2a   :  { %5425 = vadd.xlane.f32.xlu0 %v5424_v59  ;;  %v13591_v19 = vpack.c.bf16 %v11653_v60, %v11652_v42  ;;  %v11680_v42 = vld [vmem:[%s16050_s6 + $0x90] sm:$0xff] }
 0xdb6   :  { %v5429_v29 = vpop.xlane.xlu1 %5428 }
 0xdb7   :  { %v5431_v34 = vmul.f32 0.03125, %v5429_v29  ;;  %v5426_v22 = vpop.xlane.xlu0 %5425  ;;  %v11667_v29 = vld [vmem:[%s16049_s5 + $0xa8] sm:$0xff] }
 0xdb8   :  { %v5430_v11 = vmul.f32 0.03125, %v5426_v22  ;;  %v11679_v22 = vld [vmem:[%s16050_s6 + $0x88] sm:$0xff] }
 0xdb9   :  { %v5433_v38 = vadd.f32 1e-05, %v5431_v34  ;;  %v11678_v34 = vld [vmem:[%s16050_s6 + $0x80] sm:$0xff] }
 0xdba   :  { %v5432_v41 = vadd.f32 1e-05, %v5430_v11 }
 0xdbb   :  { %13905 = vrsqrt.f32 %v5433_v38  ;;  %v13643_v38 = vpack.c.bf16 %v11679_v22, %v11678_v34  ;;  %v11690_v22 = vld [vmem:[%s16050_s6 + $0xe0] sm:$0xff] }
 0xdbc   :  { %13907 = vrsqrt.f32 %v5432_v41  ;;  %v11668_v41 = vld [vmem:[%s16049_s5 + $0xb0] sm:$0xff] }
 0xdc5   :  { %v13906_v39 = vpop.eup %13905 }
 0xdc6   :  { %v13908_v59 = vpop.eup %13907  ;;  %v15047_v0 = vmul.f32 %v13906_v39, %v5421_v4  ;;  %v11670_v4 = vld [vmem:[%s16049_s5 + $0xc0] sm:$0xff]  ;;  %v11669_v39 = vld [vmem:[%s16049_s5 + $0xb8] sm:$0xff] }
 0xdc7   :  { %v15045_v18 = vmul.f32 %v13908_v59, %v5420_v40  ;;  %v11671_v40 = vld [vmem:[%s16049_s5 + $0xc8] sm:$0xff]  ;;  %v11681_v59 = vld [vmem:[%s16050_s6 + $0x98] sm:$0xff]  ;;  %v13623_v60 = vpack.c.bf16 %v11669_v39, %v11668_v41  ;;  %v11692_v41 = vld [vmem:[%s16050_s6 + $0xf0] sm:$0xff] }
 0xdc8   :  { %v13627_v16 = vpack.c.bf16 %v11671_v40, %v11670_v4  ;;  %v13647_v21 = vpack.c.bf16 %v11681_v59, %v11680_v42  ;;  %v11676_v40 = vld [vmem:[%s16049_s5 + $0xf0] sm:$0xff]  ;;  %v11693_v39 = vld [vmem:[%s16050_s6 + $0xf8] sm:$0xff] }
 0xdc9   :  { %12877 = vmatprep.mubr.msk.f32.mxu0 %vm122_vm0, %v15045_v18  ;;  %12899 = vmatprep.mubr.msk.f32.mxu1 %vm122_vm0, %v15045_v18  ;;  %v13671_v42 = vpack.c.bf16 %v11693_v39, %v11692_v41 }
 0xdca   :  { %12878 = vmatmul.mubr.msk.f32.vlgmr.msra.gmra.mrb[60].mxu0 %vm122_vm0, %v15047_v0  ;;  %12900 = vmatmul.mubr.msk.f32.vlgmr.msra.gmra.mrb[60].mxu1 %vm122_vm0, %v15047_v0 }
 0xdcb   :  { %13590 = vmatpush3.bf16.msra.mxu0 %v13587_v23  ;;  %13614 = vmatpush3.bf16.msra.mxu1 %v13611_v37  ;;  %v13607_v23 = vpack.c.bf16 %v11661_v25, %v11660_v24  ;;  %v11666_v37 = vld [vmem:[%s16049_s5 + $0xa0] sm:$0xff]  ;;  %v11689_v24 = vld [vmem:[%s16050_s6 + $0xd8] sm:$0xff] }
 0xdcc   :  { %12888 = vmatprep.mubr.msk.f32.mxu0 %vm122_vm0, %v15045_v18  ;;  %12921 = vmatprep.mubr.msk.f32.mxu1 %vm122_vm0, %v15045_v18  ;;  %v13619_v11 = vpack.c.bf16 %v11667_v29, %v11666_v37  ;;  %v11684_v37 = vld [vmem:[%s16050_s6 + $0xb0] sm:$0xff]  ;;  %v11685_v29 = vld [vmem:[%s16050_s6 + $0xb8] sm:$0xff] }
 0xdcd   :  { %13592 = vmatprep.subr.bf16.mxu0 %v13591_v19  ;;  %13616 = vmatprep.subr.bf16.mxu1 %v13615_v20  ;;  %v13655_v34 = vpack.c.bf16 %v11685_v29, %v11684_v37 }
 0xdcf   :  { %13594 = vmatpush3.bf16.msra.mxu0 %v13591_v19  ;;  %13618 = vmatpush3.bf16.msra.mxu1 %v13615_v20  ;;  %v11686_v19 = vld [vmem:[%s16050_s6 + $0xc0] sm:$0xff]  ;;  %v11687_v20 = vld [vmem:[%s16050_s6 + $0xc8] sm:$0xff] }
 0xdd0   :  { %13604 = vmatprep.subr.bf16.mxu0 %v13603_v17  ;;  %13628 = vmatprep.subr.bf16.mxu1 %v13627_v16  ;;  %v13659_v4 = vpack.c.bf16 %v11687_v20, %v11686_v19 }
 0xdd2   :  { %12889 = vmatmul.mubr.msk.f32.vlgmr.msra.gmra.mrb[62].mxu0 %vm122_vm0, %v15047_v0  ;;  %12922 = vmatmul.mubr.msk.f32.vlgmr.msra.gmra.mrb[62].mxu1 %vm122_vm0, %v15047_v0 }
 0xdd3   :  { %13606 = vmatpush3.bf16.msra.mxu0 %v13603_v17  ;;  %12910 = vmatprep.mubr.msk.f32.mxu0 %vm122_vm0, %v15045_v18  ;;  %v11677_v17 = vld [vmem:[%s16049_s5 + $0xf8] sm:$0xff] }
 0xdd4   :  { %13630 = vmatpush3.bf16.msra.mxu1 %v13627_v16  ;;  %12943 = vmatprep.mubr.msk.f32.mxu1 %vm122_vm0, %v15045_v18  ;;  %v11688_v16 = vld [vmem:[%s16050_s6 + $0xd0] sm:$0xff]  ;;  %v13639_v25 = vpack.c.bf16 %v11677_v17, %v11676_v40 }
 0xdd5   :  { %13608 = vmatprep.subr.bf16.mxu0 %v13607_v23  ;;  %13632 = vmatprep.subr.bf16.mxu1 %v13631_v32 }
 0xdd7   :  { %13610 = vmatpush3.bf16.msra.mxu0 %v13607_v23  ;;  %v13663_v23 = vpack.c.bf16 %v11689_v24, %v11688_v16 }
 0xdd8   :  { %13634 = vmatpush3.bf16.msra.mxu1 %v13631_v32  ;;  %13620 = vmatprep.subr.bf16.mxu0 %v13619_v11  ;;  %v13651_v32 = vpack.c.bf16 %v11683_v28, %v11682_v26 }
 0xdd9   :  { %13644 = vmatprep.subr.bf16.mxu1 %v13643_v38 }
 0xdda   :  { %12911 = vmatmul.mubr.msk.f32.vlgmr.msra.gmra.mrb[64].mxu0 %vm122_vm0, %v15047_v0 }
 0xddb   :  { %12944 = vmatmul.mubr.msk.f32.vlgmr.msra.gmra.mrb[64].mxu1 %vm122_vm0, %v15047_v0  ;;  %13622 = vmatpush3.bf16.msra.mxu0 %v13619_v11  ;;  %v11691_v11 = vld [vmem:[%s16050_s6 + $0xe8] sm:$0xff]  ;;  %s14036_s6 = smov 48  }
 0xddc   :  { %12932 = vmatprep.mubr.msk.f32.mxu0 %vm122_vm0, %v15045_v18  ;;  %13646 = vmatpush3.bf16.msra.mxu1 %v13643_v38  ;;  %v13667_v38 = vpack.c.bf16 %v11691_v11, %v11690_v22 }
 0xddd   :  { %12965 = vmatprep.mubr.msk.f32.mxu1 %vm122_vm0, %v15045_v18  ;;  %13624 = vmatprep.subr.bf16.mxu0 %v13623_v60 }
 0xdde   :  { %13648 = vmatprep.subr.bf16.mxu1 %v13647_v21 }
 0xddf   :  { %13626 = vmatpush3.bf16.msra.mxu0 %v13623_v60 }
 0xde0   :  { %13650 = vmatpush3.bf16.msra.mxu1 %v13647_v21  ;;  %13636 = vmatprep.subr.bf16.mxu0 %v13635_v30 }
 0xde1   :  { %13660 = vmatprep.subr.bf16.mxu1 %v13659_v4 }
 0xde2   :  { %12933 = vmatmul.mubr.msk.f32.vlgmr.msra.gmra.mrb[66].mxu0 %vm122_vm0, %v15047_v0 }
 0xde3   :  { %12966 = vmatmul.mubr.msk.f32.vlgmr.msra.gmra.mrb[66].mxu1 %vm122_vm0, %v15047_v0  ;;  %13638 = vmatpush3.bf16.msra.mxu0 %v13635_v30 }
 0xde4   :  { %12954 = vmatprep.mubr.msk.f32.mxu0 %vm122_vm0, %v15045_v18  ;;  %13662 = vmatpush3.bf16.msra.mxu1 %v13659_v4 }
 0xde5   :  { %12987 = vmatprep.mubr.msk.f32.mxu1 %vm122_vm0, %v15045_v18  ;;  %13640 = vmatprep.subr.bf16.mxu0 %v13639_v25 }
 0xde6   :  { %13664 = vmatprep.subr.bf16.mxu1 %v13663_v23 }
 0xde7   :  { %13642 = vmatpush3.bf16.msra.mxu0 %v13639_v25 }
 0xde8   :  { %13666 = vmatpush3.bf16.msra.mxu1 %v13663_v23  ;;  %13652 = vmatprep.subr.bf16.mxu0 %v13651_v32 }
 0xde9   :  { %13001 = vmatprep.subr.mxu1 %v14027_v10 }
 0xdea   :  { %12955 = vmatmul.mubr.msk.f32.vlgmr.msra.gmra.mrb[68].mxu0 %vm122_vm0, %v15047_v0 }
 0xdeb   :  { %12988 = vmatmul.mubr.msk.f32.vlgmr.msra.gmra.mrb[68].mxu1 %vm122_vm0, %v15047_v0  ;;  %13654 = vmatpush3.bf16.msra.mxu0 %v13651_v32 }
 0xdec   :  { %12976 = vmatprep.mubr.msk.f32.mxu0 %vm122_vm0, %v15045_v18  ;;  %13656 = vmatprep.subr.bf16.mxu0 %v13655_v34 }
 0xded   :  { %13003 = vmatprep.mubr.msk.f32.mxu1 %vm14028_vm1, %v14027_v10 }
 0xdef   :  { %13658 = vmatpush3.bf16.msra.mxu0 %v13655_v34 }
 0xdf0   :  { %13668 = vmatprep.subr.bf16.mxu0 %v13667_v38 }
 0xdf2   :  { %12977 = vmatmul.mubr.msk.f32.vlgmr.msra.gmra.mrb[70].mxu0 %vm122_vm0, %v15047_v0 }
 0xdf3   :  { %13670 = vmatpush3.bf16.msra.mxu0 %v13667_v38  ;;  %12998 = vmatprep.mubr.msk.f32.mxu0 %vm122_vm0, %v15045_v18 }
 0xdf4   :  { %13672 = vmatprep.subr.bf16.mxu0 %v13671_v42 }
 0xdf7   :  { %13674 = vmatpush3.bf16.msra.mxu0 %v13671_v42 }
 0xdf8   :  { %13011 = vmatprep.subr.mxu0 %v14027_v10 }
 0xdfa   :  { %12999 = vmatmul.mubr.msk.f32.vlgmr.msra.gmra.mrb[72].mxu0 %vm122_vm0, %v15047_v0 }
 0xdfb   :  { %13013 = vmatprep.mubr.msk.f32.mxu0 %vm14028_vm1, %v14027_v10 }
 0xe9d   :  { %v12879_v59 = vpop.f32.mrb[60].mxu0  ;;  %v12901_v60 = vpop.f32.mrb[60].mxu1 }
 0xe9e   :  { %v5919_v15 = vpop.f32.mrb[61].mxu0  ;;  %v6069_v33 = vpop.f32.mrb[61].mxu1 }
 0xea5   :  { %v12890_v21 = vpop.f32.mrb[62].mxu0  ;;  %v12923_v19 = vpop.f32.mrb[62].mxu1 }
 0xea6   :  { %v5994_v20 = vpop.f32.mrb[63].mxu0  ;;  %v6219_v30 = vpop.f32.mrb[63].mxu1 }
 0xea7   :  { %13002 = vmatpush3.xpose.msk.msra.mxu1 %vm1029_vm2, %v6219_v30 }
 0xea8   :  { %13006 = vmatprep.subr.mxu1 %v14027_v10 }
 0xeaa   :  { %13004 = vmatmul.mubr.msk.f32.vlgmr.msra.gmra.mrb[70].mxu1 %vm1029_vm2, %v5919_v15 }
 0xeab   :  { %13007 = vmatpush3.xpose.msk.msra.mxu1 %vm1029_vm2, %v12923_v19  ;;  %13008 = vmatprep.mubr.msk.f32.mxu1 %vm14028_vm1, %v14027_v10 }
 0xeac   :  { %13016 = vmatprep.subr.mxu1 %v14027_v10 }
 0xead   :  { %v12912_v4 = vpop.f32.mrb[64].mxu0 }
 0xeae   :  { %v12945_v40 = vpop.f32.mrb[64].mxu1  ;;  %v6144_v17 = vpop.f32.mrb[65].mxu0  ;;  %13009 = vmatmul.mubr.msk.f32.vlgmr.msra.gmra.mrb[72].mxu1 %vm1029_vm2, %v12879_v59  ;;  %v13985_v59 = vld [vmem:[%s16046_s2] sm:$0xff] }
 0xeaf   :  { %v6369_v16 = vpop.f32.mrb[65].mxu1  ;;  %13018 = vmatprep.mubr.msk.f32.mxu1 %vm14028_vm1, %v14027_v10 }
 0xeb5   :  { %v12934_v24 = vpop.f32.mrb[66].mxu0 }
 0xeb6   :  { %v12967_v25 = vpop.f32.mrb[66].mxu1  ;;  %v6294_v26 = vpop.f32.mrb[67].mxu0  ;;  %13017 = vmatpush3.xpose.msk.msra.mxu1 %vm1029_vm2, %v12934_v24 }
 0xeb7   :  { %v6519_v28 = vpop.f32.mrb[67].mxu1  ;;  %13012 = vmatpush3.xpose.msk.msra.mxu0 %vm1029_vm2, %v6294_v26  ;;  %13026 = vmatprep.subr.mxu1 %v14027_v10 }
 0xeb8   :  { %13021 = vmatprep.subr.mxu0 %v14027_v10 }
 0xeb9   :  { %13019 = vmatmul.mubr.msk.f32.vlgmr.msra.gmra.mrb[74].mxu1 %vm1029_vm2, %v12890_v21 }
 0xeba   :  { %13014 = vmatmul.mubr.msk.f32.vlgmr.msra.gmra.mrb[74].mxu0 %vm1029_vm2, %v5994_v20  ;;  %13027 = vmatpush3.xpose.msk.msra.mxu1 %vm1029_vm2, %v12945_v40  ;;  %v13986_v20 = vld [vmem:[%s16046_s2 + $0x8] sm:$0xff] }
 0xebb   :  { %13022 = vmatpush3.xpose.msk.msra.mxu0 %vm1029_vm2, %v6369_v16  ;;  %13028 = vmatprep.mubr.msk.f32.mxu1 %vm14028_vm1, %v14027_v10 }
 0xebc   :  { %13023 = vmatprep.mubr.msk.f32.mxu0 %vm14028_vm1, %v14027_v10  ;;  %13036 = vmatprep.subr.mxu1 %v14027_v10 }
 0xebd   :  { %v12956_v23 = vpop.f32.mrb[68].mxu0  ;;  %13029 = vmatmul.mubr.msk.f32.vlgmr.msra.gmra.mrb[76].mxu1 %vm1029_vm2, %v12901_v60  ;;  %13031 = vmatprep.subr.mxu0 %v14027_v10 }
 0xebe   :  { %v15224_v32 = vpop.f32.mrb[68].mxu1  ;;  %v6444_v37 = vpop.f32.mrb[69].mxu0  ;;  %13024 = vmatmul.mubr.msk.f32.vlgmr.msra.gmra.mrb[76].mxu0 %vm1029_vm2, %v6069_v33  ;;  %13037 = vmatpush3.xpose.msk.msra.mxu1 %vm1029_vm2, %v12956_v23  ;;  %v13987_v23 = vld [vmem:[%s16046_s2 + $0x18] sm:$0xff] }
 0xebf   :  { %v15228_v29 = vpop.f32.mrb[69].mxu1  ;;  %13032 = vmatpush3.xpose.msk.msra.mxu0 %vm1029_vm2, %v6444_v37  ;;  %13038 = vmatprep.mubr.msk.f32.mxu1 %vm14028_vm1, %v14027_v10 }
 0xec0   :  { %13033 = vmatprep.mubr.msk.f32.mxu0 %vm14028_vm1, %v14027_v10  ;;  %13046 = vmatprep.subr.mxu1 %v14027_v10 }
 0xec1   :  { %13039 = vmatmul.mubr.msk.f32.vlgmr.msra.gmra.mrb[78].mxu1 %vm1029_vm2, %v12912_v4  ;;  %13041 = vmatprep.subr.mxu0 %v14027_v10 }
 0xec2   :  { %13034 = vmatmul.mubr.msk.f32.vlgmr.msra.gmra.mrb[78].mxu0 %vm1029_vm2, %v6144_v17  ;;  %13047 = vmatpush3.msra.mxu1 %v12967_v25 }
 0xec3   :  { %13042 = vmatpush3.msra.mxu0 %v6519_v28  ;;  %13043 = vmatprep.mubr.msk.f32.mxu0 %vm14028_vm1, %v14027_v10 }
 0xec4   :  { %13051 = vmatprep.subr.mxu0 %v14027_v10  ;;  %13048 = vmatprep.mubr.msk.f32.mxu1 %vm14028_vm1, %v14027_v10 }
 0xec5   :  { %v15244_v34 = vpop.f32.mrb[70].mxu0  ;;  %13056 = vmatprep.subr.mxu1 %v14027_v10 }
 0xec6   :  { %v15247_v22 = vpop.f32.mrb[71].mxu0 }
 0xecd   :  { %v15249_v11 = vpop.f32.mrb[72].mxu0 }
 0xece   :  { %v15251_v38 = vpop.f32.mrb[73].mxu0 }
 0xf7d   :  { %v6825_v41 = vpop.f32.mrb[70].mxu1 }
 0xf7e   :  { %v7361_v39 = vmul.f32 0.35355338, %v6825_v41  ;;  %v13005_v42 = vpop.f32.mrb[71].mxu1 }
 0xf80   :  { %v7369_v60 = vadd.f32 %v13985_v59, %v7361_v39  ;;  %v13988_v39 = vld [vmem:[%s16046_s2 + $0x10] sm:$0xff] }
 0xf81   :  { %v6901_v15 = vpop.f32.mrb[72].mxu1 }
 0xf82   :  { %v7377_v33 = vmul.f32 1.442695, %v7369_v60  ;;  %v7362_v21 = vmul.f32 0.35355338, %v6901_v15  ;;  %v13010_v19 = vpop.f32.mrb[73].mxu1 }
 0xf84   :  { %13909 = vpow2.f32 %v7377_v33  ;;  %v7370_v30 = vadd.f32 %v13986_v20, %v7362_v21 }
 0xf86   :  { %v7379_v4 = vmul.f32 1.442695, %v7370_v30 }
 0xf88   :  { %13911 = vpow2.f32 %v7379_v4 }
 0xf8c   :  { %v7053_v40 = vpop.f32.mrb[74].mxu1 }
 0xf8d   :  { %v7364_v17 = vmul.f32 0.35355338, %v7053_v40  ;;  %v6977_v16 = vpop.f32.mrb[74].mxu0  ;;  %v13020_v24 = vpop.f32.mrb[75].mxu1  ;;  %v13989_v40 = vld [vmem:[%s16046_s2 + $0x28] sm:$0xff] }
 0xf8e   :  { %v15259_v25 = vpop.eup %13909  ;;  %v7363_v26 = vmul.f32 0.35355338, %v6977_v16  ;;  %v13015_v28 = vpop.f32.mrb[75].mxu0  ;;  %v13990_v24 = vld [vmem:[%s16046_s2 + $0x20] sm:$0xff] }
 0xf8f   :  { %v7372_v37 = vadd.f32 %v13987_v23, %v7364_v17  ;;  %v7393_v41 = vsel %vm1029_vm2, %v15259_v25, 0.0 }
 0xf90   :  { %v7371_v42 = vadd.f32 %v13988_v39, %v7363_v26  ;;  %7394 = vadd.xlane.f32.xlu0 %v7393_v41  ;;  %v7205_v59 = vpop.f32.mrb[76].mxu1 }
 0xf91   :  { %v7383_v60 = vmul.f32 1.442695, %v7372_v37  ;;  %v7366_v15 = vmul.f32 0.35355338, %v7205_v59  ;;  %v7129_v33 = vpop.f32.mrb[76].mxu0  ;;  %v13030_v21 = vpop.f32.mrb[77].mxu1 }
 0xf92   :  { %v13912_v19 = vpop.eup %13911  ;;  %v7381_v20 = vmul.f32 1.442695, %v7371_v42  ;;  %v7365_v30 = vmul.f32 0.35355338, %v7129_v33  ;;  %v13025_v4 = vpop.f32.mrb[77].mxu0  ;;  %v13992_v21 = vld [vmem:[%s16046_s2 + $0x30] sm:$0xff] }
 0xf93   :  { %13913 = vpow2.f32 %v7383_v60  ;;  %v7374_v17 = vadd.f32 %v13989_v40, %v7366_v15  ;;  %v7396_v16 = vsel %vm1029_vm2, %v13912_v19, 0.0  ;;  %v13991_v15 = vld [vmem:[%s16046_s2 + $0x38] sm:$0xff] }
 0xf94   :  { %13915 = vpow2.f32 %v7381_v20  ;;  %v7373_v26 = vadd.f32 %v13990_v24, %v7365_v30  ;;  %7397 = vadd.xlane.f32.xlu1 %v7396_v16  ;;  %v7357_v28 = vpop.f32.mrb[78].mxu1 }
 0xf95   :  { %v7387_v23 = vmul.f32 1.442695, %v7374_v17  ;;  %v7368_v37 = vmul.f32 0.35355338, %v7357_v28  ;;  %v7281_v41 = vpop.f32.mrb[78].mxu0  ;;  %v13040_v39 = vpop.f32.mrb[79].mxu1 }
 0xf96   :  { %v7385_v42 = vmul.f32 1.442695, %v7373_v26  ;;  %v7367_v59 = vmul.f32 0.35355338, %v7281_v41  ;;  %v13035_v60 = vpop.f32.mrb[79].mxu0 }
 0xf97   :  { %13917 = vpow2.f32 %v7387_v23  ;;  %v7376_v33 = vadd.f32 %v13991_v15, %v7368_v37 }
 0xf98   :  { %13919 = vpow2.f32 %v7385_v42  ;;  %v7375_v20 = vadd.f32 %v13992_v21, %v7367_v59 }
 0xf99   :  { %v7391_v30 = vmul.f32 1.442695, %v7376_v33 }
 0xf9a   :  { %v7389_v4 = vmul.f32 1.442695, %v7375_v20 }
 0xf9b   :  { %13921 = vpow2.f32 %v7391_v30 }
 0xf9c   :  { %13923 = vpow2.f32 %v7389_v4 }
 0xf9d   :  { %v13914_v40 = vpop.eup %13913 }
 0xf9e   :  { %v13916_v17 = vpop.eup %13915  ;;  %v7402_v16 = vsel %vm1029_vm2, %v13914_v40, 0.0 }
 0xf9f   :  { %7403 = vadd.xlane.f32.xlu1 %v7402_v16  ;;  %v7399_v24 = vsel %vm1029_vm2, %v13916_v17, 0.0 }
 0xfa0   :  { %7400 = vadd.xlane.f32.xlu0 %v7399_v24 }
 0xfa1   :  { %v13918_v26 = vpop.eup %13917 }
 0xfa2   :  { %v13920_v28 = vpop.eup %13919  ;;  %v7408_v23 = vsel %vm1029_vm2, %v13918_v26, 0.0 }
 0xfa3   :  { %7409 = vadd.xlane.f32.xlu1 %v7408_v23  ;;  %v7405_v37 = vsel %vm1029_vm2, %v13920_v28, 0.0 }
 0xfa4   :  { %7406 = vadd.xlane.f32.xlu0 %v7405_v37 }
 0xfa5   :  { %v15286_v41 = vpop.eup %13921 }
 0xfa6   :  { %v15288_v39 = vpop.eup %13923  ;;  %v7414_v42 = vsel %vm1029_vm2, %v15286_v41, 0.0 }
 0xfa7   :  { %7415 = vadd.xlane.f32.xlu1 %v7414_v42  ;;  %v7411_v59 = vsel %vm1029_vm2, %v15288_v39, 0.0 }
 0xfa8   :  { %7412 = vadd.xlane.f32.xlu0 %v7411_v59 }
0x101d   :  { %v7395_v60 = vpop.xlane.xlu0 %7394 }
0x101e   :  { %13925 = vrcp.f32 %v7395_v60 }
0x1021   :  { %v7398_v15 = vpop.xlane.xlu1 %7397 }
0x1022   :  { %13927 = vrcp.f32 %v7398_v15 }
0x1028   :  { %v13926_v33 = vpop.eup %13925 }
0x1029   :  { %v7418_v21 = vmul.f32 %v13926_v33, %v15259_v25 }
0x102b   :  { %13044 = vmatmul.mubr.msk.f32.vlgmr.msra.gmra.mrb[80].mxu0 %vm1029_vm2, %v7418_v21 }
0x102c   :  { %v13928_v20 = vpop.eup %13927  ;;  %13052 = vmatpush3.msra.mxu0 %v15247_v22  ;;  %v7404_v30 = vpop.xlane.xlu1 %7403  ;;  %13053 = vmatprep.mubr.msk.f32.mxu0 %vm14028_vm1, %v14027_v10 }
0x102d   :  { %v7420_v4 = vmul.f32 %v13928_v20, %v13912_v19  ;;  %13929 = vrcp.f32 %v7404_v30  ;;  %v7401_v16 = vpop.xlane.xlu0 %7400  ;;  %13061 = vmatprep.subr.mxu0 %v14027_v10 }
0x102e   :  { %13931 = vrcp.f32 %v7401_v16 }
0x102f   :  { %13049 = vmatmul.mubr.msk.f32.vlgmr.msra.gmra.mrb[80].mxu1 %vm1029_vm2, %v7420_v4 }
0x1030   :  { %13057 = vmatpush3.msra.mxu1 %v15244_v34  ;;  %v7410_v25 = vpop.xlane.xlu1 %7409  ;;  %13058 = vmatprep.mubr.msk.f32.mxu1 %vm14028_vm1, %v14027_v10 }
0x1031   :  { %13933 = vrcp.f32 %v7410_v25  ;;  %v7407_v22 = vpop.xlane.xlu0 %7406  ;;  %13066 = vmatprep.subr.mxu1 %v14027_v10 }
0x1032   :  { %13935 = vrcp.f32 %v7407_v22 }
0x1034   :  { %v7416_v24 = vpop.xlane.xlu1 %7415 }
0x1035   :  { %13937 = vrcp.f32 %v7416_v24  ;;  %v7413_v19 = vpop.xlane.xlu0 %7412 }
0x1036   :  { %13939 = vrcp.f32 %v7413_v19 }
0x1037   :  { %v13930_v23 = vpop.eup %13929 }
0x1038   :  { %v13932_v37 = vpop.eup %13931  ;;  %v7424_v42 = vmul.f32 %v13930_v23, %v13914_v40 }
0x1039   :  { %v7422_v59 = vmul.f32 %v13932_v37, %v13916_v17 }
0x103a   :  { %13059 = vmatmul.mubr.msk.f32.vlgmr.msra.gmra.mrb[82].mxu1 %vm1029_vm2, %v7424_v42  ;;  %v11175_v34 = vcombine.low %v7420_v4, %v7424_v42  ;;  %v11176_v60 = vcombine.high %v7420_v4, %v7424_v42 }
0x103b   :  { %v13934_v15 = vpop.eup %13933  ;;  %13067 = vmatpush3.msra.mxu1 %v15224_v32  ;;  %13054 = vmatmul.mubr.msk.f32.vlgmr.msra.gmra.mrb[82].mxu0 %vm1029_vm2, %v7422_v59  ;;  %v11159_v33 = vcombine.low %v7418_v21, %v7422_v59  ;;  %v11160_v20 = vcombine.high %v7418_v21, %v7422_v59 }
0x103c   :  { %v13936_v30 = vpop.eup %13935  ;;  %v7428_v16 = vmul.f32 %v13934_v15, %v13918_v26  ;;  %13062 = vmatpush3.msra.mxu0 %v15228_v29  ;;  %13068 = vmatprep.mubr.msk.f32.mxu1 %vm14028_vm1, %v14027_v10  ;;  %v11183_v40 = vrot.slane %v11175_v34, %v14438_v3  ;;  %v11190_v17 = vrot.slane %v11176_v60, %v14438_v3 }
0x103d   :  { %v7426_v25 = vmul.f32 %v13936_v30, %v13920_v28  ;;  %13076 = vmatprep.subr.mxu1 %v14027_v10  ;;  %13063 = vmatprep.mubr.msk.f32.mxu0 %vm14028_vm1, %v14027_v10  ;;  %v11167_v32 = vrot.slane %v11159_v33, %v14438_v3  ;;  %v11174_v21 = vrot.slane %v11160_v20, %v14438_v3 }
0x103e   :  { %13069 = vmatmul.mubr.msk.f32.vlgmr.msra.gmra.mrb[84].mxu1 %vm1029_vm2, %v7428_v16  ;;  %13071 = vmatprep.subr.mxu0 %v14027_v10 }
0x103f   :  { %v13938_v29 = vpop.eup %13937  ;;  %13077 = vmatpush3.msra.mxu1 %v15249_v11  ;;  %13064 = vmatmul.mubr.msk.f32.vlgmr.msra.gmra.mrb[84].mxu0 %vm1029_vm2, %v7426_v25  ;;  %v11223_v26 = vcombine.low %v11167_v32, %v11183_v40  ;;  %v11224_v28 = vcombine.high %v11167_v32, %v11183_v40  ;;  %v11239_v4 = vcombine.low %v11174_v21, %v11190_v17 }
0x1040   :  { %v13940_v22 = vpop.eup %13939  ;;  %v7432_v24 = vmul.f32 %v13938_v29, %v15286_v41  ;;  %13072 = vmatpush3.msra.mxu0 %v15251_v38  ;;  %13078 = vmatprep.mubr.msk.f32.mxu1 %vm14028_vm1, %v14027_v10  ;;  %v11240_v19 = vcombine.high %v11174_v21, %v11190_v17 }
0x1041   :  { %v7430_v23 = vmul.f32 %v13940_v22, %v15288_v39  ;;  %13073 = vmatprep.mubr.msk.f32.mxu0 %vm14028_vm1, %v14027_v10  ;;  %v15336_v30 = vrot.slane %v11223_v26, %v14463_v31  ;;  %v15342_v40 = vrot.slane %v11239_v4, %v14463_v31 }
0x1042   :  { %13079 = vmatmul.mubr.msk.f32.vlgmr.msra.gmra.mrb[86].mxu1 %vm1029_vm2, %v7432_v24  ;;  %v11207_v11 = vcombine.low %v7428_v16, %v7432_v24  ;;  %v11208_v37 = vcombine.high %v7428_v16, %v7432_v24  ;;  %v15339_v16 = vrot.slane %v11224_v28, %v14463_v31  ;;  %v15357_v29 = vrot.slane %v11240_v19, %v14463_v31 }
0x1043   :  { %13074 = vmatmul.mubr.msk.f32.vlgmr.msra.gmra.mrb[86].mxu0 %vm1029_vm2, %v7430_v23  ;;  %v11191_v42 = vcombine.low %v7426_v25, %v7430_v23  ;;  %v11192_v59 = vcombine.high %v7426_v25, %v7430_v23 }
0x1044   :  { %v11215_v41 = vrot.slane %v11207_v11, %v14438_v3  ;;  %v11222_v38 = vrot.slane %v11208_v37, %v14438_v3  ;;  %v11695_v37 = vld [vmem:[%s16051_s7 + $0x28] sm:$0xff] }
0x1045   :  { %v11199_v34 = vrot.slane %v11191_v42, %v14438_v3  ;;  %v11206_v60 = vrot.slane %v11192_v59, %v14438_v3  ;;  %13081 = vmatprep.subr.mxu0 %v11695_v37  ;;  %v11694_v42 = vld [vmem:[%s16051_s7 + $0x20] sm:$0xff] }
0x1046   :  { %13082 = vmatpush3.msra.mxu0 %v11695_v37 }
0x1047   :  { %v11255_v39 = vcombine.low %v11199_v34, %v11215_v41  ;;  %v11256_v15 = vcombine.high %v11199_v34, %v11215_v41  ;;  %v11271_v33 = vcombine.low %v11206_v60, %v11222_v38  ;;  %v11272_v20 = vcombine.high %v11206_v60, %v11222_v38  ;;  %13086 = vmatprep.subr.mxu0 %v11694_v42 }
0x1049   :  { %v15345_v17 = vrot.slane %v11255_v39, %v14463_v31  ;;  %v15348_v25 = vrot.slane %v11256_v15, %v14463_v31  ;;  %v15351_v32 = vrot.slane %v11271_v33, %v14463_v31  ;;  %v15354_v21 = vrot.slane %v11272_v20, %v14463_v31  ;;  %v11696_v20 = vld [vmem:[%s16051_s7 + $0x30] sm:$0xff] }
0x104b   :  { %v11288_v26 = vcombine.high %v15336_v30, %v15345_v17  ;;  %v16064_v5 = vcombine.low %v15342_v40, %v15351_v32 }
0x10fe   :  { %v7502_v59 = vpop.f32.mrb[80].mxu0 }
0x10ff   :  { %v13045_v41 = vpop.f32.mrb[81].mxu0 }
0x1102   :  { %v7575_v38 = vpop.f32.mrb[80].mxu1 }
0x1103   :  { %v13050_v34 = vpop.f32.mrb[81].mxu1 }
0x110d   :  { %v7721_v60 = vpop.f32.mrb[82].mxu1 }
0x110e   :  { %v7648_v39 = vpop.f32.mrb[82].mxu0  ;;  %v13060_v15 = vpop.f32.mrb[83].mxu1 }
0x110f   :  { %v13055_v33 = vpop.f32.mrb[83].mxu0  ;;  %13083 = vmatprep.mubr.msk.f32.mxu0 %vm1029_vm2, %v7648_v39  ;;  %v11697_v39 = vld [vmem:[%s16051_s7 + $0x38] sm:$0xff] }
0x1110   :  { %13084 = vmatmul.mubr.msk.f32.vlgmr.msra.gmra.mrb[88].mxu0 %vm1029_vm2, %v7721_v60 }
0x1111   :  { %v7867_v37 = vpop.f32.mrb[84].mxu1  ;;  %13087 = vmatpush3.msra.mxu0 %v11694_v42  ;;  %13088 = vmatprep.mubr.msk.f32.mxu0 %vm1029_vm2, %v7502_v59 }
0x1112   :  { %v7794_v58 = vpop.f32.mrb[84].mxu0  ;;  %v13070_v41 = vpop.f32.mrb[85].mxu1  ;;  %13091 = vmatprep.subr.mxu0 %v11696_v20 }
0x1113   :  { %v13065_v34 = vpop.f32.mrb[85].mxu0 }
0x1115   :  { %v8013_v11 = vpop.f32.mrb[86].mxu1 }
0x1116   :  { %v7940_v13 = vpop.f32.mrb[86].mxu0  ;;  %v13080_v15 = vpop.f32.mrb[87].mxu1 }
0x1117   :  { %v13075_v33 = vpop.f32.mrb[87].mxu0 }
0x1118   :  { %13089 = vmatmul.mubr.msk.f32.vlgmr.msra.gmra.mrb[88].mxu0 %vm1029_vm2, %v7575_v38 }
0x1119   :  { %13092 = vmatpush3.msra.mxu0 %v11696_v20  ;;  %13093 = vmatprep.mubr.msk.f32.mxu0 %vm1029_vm2, %v7794_v58 }
0x111a   :  { %13096 = vmatprep.subr.mxu0 %v11697_v39 }
0x1120   :  { %13094 = vmatmul.mubr.msk.f32.vlgmr.msra.gmra.mrb[88].mxu0 %vm1029_vm2, %v7867_v37 }
0x1121   :  { %13097 = vmatpush3.msra.mxu0 %v11697_v39  ;;  %13098 = vmatprep.mubr.msk.f32.mxu0 %vm1029_vm2, %v7940_v13 }
0x1128   :  { %13099 = vmatmul.mubr.msk.f32.vlgmr.msra.gmra.mrb[88].mxu0 %vm1029_vm2, %v8013_v11 }
0x11fb   :  { %v13100_v42 = vpop.f32.mrb[88].mxu0 }
0x11fc   :  { %v8346_v59 = vadd.f32 %v13100_v42, %v15047_v0  ;;  %v8334_v60 = vpop.f32.mrb[89].mxu0  ;;  %v11755_v42 = vld [vmem:[%s16052_s8 + $0x88] sm:$0xff] }
0x11fd   :  { %v8345_v41 = vadd.f32 %v8334_v60, %v15045_v18  ;;  %v11754_v18 = vld [vmem:[%s16052_s8 + $0x80] sm:$0xff] }
0x11fe   :  { %v8350_v34 = vsel %vm122_vm0, %v8346_v59, 0.0  ;;  %v13675_v60 = vpack.c.bf16 %v11755_v42, %v11754_v18  ;;  %v11771_v42 = vld [vmem:[%s16053_s9 + $0x88] sm:$0xff] }
0x11ff   :  { %8351 = vadd.xlane.f32.xlu1 %v8350_v34  ;;  %v8347_v38 = vsel %vm122_vm0, %v8345_v41, 0.0  ;;  %v11757_v34 = vld [vmem:[%s16052_s8 + $0x98] sm:$0xff] }
0x1200   :  { %8348 = vadd.xlane.f32.xlu0 %v8347_v38  ;;  %13676 = vmatprep.subr.bf16.mxu1 %v13675_v60 }
0x1201   :  { %13678 = vmatpush3.bf16.msra.mxu1 %v13675_v60 }
0x128c   :  { %v8352_v58 = vpop.xlane.xlu1 %8351 }
0x128d   :  { %v8354_v20 = vmul.f32 0.03125, %v8352_v58  ;;  %v8349_v37 = vpop.xlane.xlu0 %8348 }
0x128e   :  { %v8353_v15 = vmul.f32 0.03125, %v8349_v37  ;;  %v11765_v37 = vld [vmem:[%s16052_s8 + $0xd8] sm:$0xff] }
0x128f   :  { %v8356_v33 = vsub.f32 %v8346_v59, %v8354_v20  ;;  %v11762_v59 = vld [vmem:[%s16052_s8 + $0xc0] sm:$0xff]  ;;  %v11764_v20 = vld [vmem:[%s16052_s8 + $0xd0] sm:$0xff] }
0x1290   :  { %v8355_v13 = vsub.f32 %v8345_v41, %v8353_v15  ;;  %v11756_v41 = vld [vmem:[%s16052_s8 + $0x90] sm:$0xff]  ;;  %v13695_v15 = vpack.c.bf16 %v11765_v37, %v11764_v20 }
0x1291   :  { %v8358_v39 = vmul.f32 %v8356_v33, %v8356_v33  ;;  %v13679_v58 = vpack.c.bf16 %v11757_v34, %v11756_v41  ;;  %v11760_v37 = vld [vmem:[%s16052_s8 + $0xb0] sm:$0xff] }
0x1292   :  { %v8357_v11 = vmul.f32 %v8355_v13, %v8355_v13 }
0x1293   :  { %v8362_v57 = vsel %vm122_vm0, %v8358_v39, 0.0  ;;  %13680 = vmatprep.subr.bf16.mxu1 %v13679_v58  ;;  %v11758_v39 = vld [vmem:[%s16052_s8 + $0xa0] sm:$0xff] }
0x1294   :  { %8363 = vadd.xlane.f32.xlu1 %v8362_v57  ;;  %v8359_v0 = vsel %vm122_vm0, %v8357_v11, 0.0  ;;  %v11763_v57 = vld [vmem:[%s16052_s8 + $0xc8] sm:$0xff]  ;;  %13682 = vmatpush3.bf16.msra.mxu1 %v13679_v58 }
0x1295   :  { %8360 = vadd.xlane.f32.xlu0 %v8359_v0  ;;  %v13691_v38 = vpack.c.bf16 %v11763_v57, %v11762_v59  ;;  %v11759_v11 = vld [vmem:[%s16052_s8 + $0xa8] sm:$0xff]  ;;  %v11770_v0 = vld [vmem:[%s16053_s9 + $0x80] sm:$0xff] }
0x1296   :  { %v13683_v18 = vpack.c.bf16 %v11759_v11, %v11758_v39  ;;  %v13707_v59 = vpack.c.bf16 %v11771_v42, %v11770_v0  ;;  %v11772_v11 = vld [vmem:[%s16053_s9 + $0x90] sm:$0xff]  ;;  %v11773_v0 = vld [vmem:[%s16053_s9 + $0x98] sm:$0xff] }
0x1297   :  { %13692 = vmatprep.subr.bf16.mxu0 %v13691_v38 }
0x1298   :  { %13694 = vmatpush3.bf16.msra.mxu0 %v13691_v38  ;;  %13684 = vmatprep.subr.bf16.mxu1 %v13683_v18 }
0x1299   :  { %13696 = vmatprep.subr.bf16.mxu0 %v13695_v15 }
0x129c   :  { %13698 = vmatpush3.bf16.msra.mxu0 %v13695_v15  ;;  %v11761_v15 = vld [vmem:[%s16052_s8 + $0xb8] sm:$0xff] }
0x129d   :  { %13708 = vmatprep.subr.bf16.mxu0 %v13707_v59 }
0x1321   :  { %v8364_v60 = vpop.xlane.xlu1 %8363 }
0x1322   :  { %v8366_v57 = vmul.f32 0.03125, %v8364_v60  ;;  %v8361_v41 = vpop.xlane.xlu0 %8360 }
0x1323   :  { %v8365_v34 = vmul.f32 0.03125, %v8361_v41  ;;  %v11766_v41 = vld [vmem:[%s16052_s8 + $0xe0] sm:$0xff] }
0x1324   :  { %v8368_v38 = vadd.f32 1e-05, %v8366_v57  ;;  %v13687_v57 = vpack.c.bf16 %v11761_v15, %v11760_v37  ;;  %v15478_v37 = vld [vmem:[%s16045_s1] sm:$0xff]  ;;  %v11780_v15 = vld [vmem:[%s16053_s9 + $0xd0] sm:$0xff] }
0x1325   :  { %v8367_v58 = vadd.f32 1e-05, %v8365_v34  ;;  %v13711_v34 = vpack.c.bf16 %v11773_v0, %v11772_v11  ;;  %v11774_v0 = vld [vmem:[%s16053_s9 + $0xa0] sm:$0xff] }
0x1326   :  { %13941 = vrsqrt.f32 %v8368_v38  ;;  %v11767_v38 = vld [vmem:[%s16052_s8 + $0xe8] sm:$0xff] }
0x1327   :  { %13943 = vrsqrt.f32 %v8367_v58  ;;  %v13699_v58 = vpack.c.bf16 %v11767_v38, %v11766_v41  ;;  %v11775_v41 = vld [vmem:[%s16053_s9 + $0xa8] sm:$0xff] }
0x1330   :  { %v13942_v20 = vpop.eup %13941 }
0x1331   :  { %v13944_v39 = vpop.eup %13943  ;;  %v15451_v60 = vmul.f32 %v13942_v20, %v8356_v33  ;;  %v11778_v33 = vld [vmem:[%s16053_s9 + $0xc0] sm:$0xff] }
0x1332   :  { %v15449_v42 = vmul.f32 %v13944_v39, %v8355_v13  ;;  %v11779_v13 = vld [vmem:[%s16053_s9 + $0xc8] sm:$0xff]  ;;  %v11781_v39 = vld [vmem:[%s16053_s9 + $0xd8] sm:$0xff] }
0x1333   :  { %v13723_v20 = vpack.c.bf16 %v11779_v13, %v11778_v33  ;;  %v13727_v38 = vpack.c.bf16 %v11781_v39, %v11780_v15  ;;  %v11787_v33 = vld [vmem:[%s16054_s10 + $0x88] sm:$0xff]  ;;  %v13715_v13 = vpack.c.bf16 %v11775_v41, %v11774_v0  ;;  %v11782_v0 = vld [vmem:[%s16053_s9 + $0xe0] sm:$0xff] }
0x1334   :  { %13109 = vmatprep.mubr.msk.f32.mxu1 %vm122_vm0, %v15449_v42  ;;  %13131 = vmatprep.mubr.msk.f32.mxu0 %vm122_vm0, %v15449_v42  ;;  %v11783_v41 = vld [vmem:[%s16053_s9 + $0xe8] sm:$0xff] }
0x1335   :  { %13110 = vmatmul.mubr.msk.f32.vlgmr.msra.gmra.mrb[88].mxu1 %vm122_vm0, %v15451_v60  ;;  %13132 = vmatmul.mubr.msk.f32.vlgmr.msra.gmra.mrb[90].mxu0 %vm122_vm0, %v15451_v60 }
0x1336   :  { %13686 = vmatpush3.bf16.msra.mxu1 %v13683_v18  ;;  %13710 = vmatpush3.bf16.msra.mxu0 %v13707_v59  ;;  %v11768_v18 = vld [vmem:[%s16052_s8 + $0xf0] sm:$0xff]  ;;  %v11769_v59 = vld [vmem:[%s16052_s8 + $0xf8] sm:$0xff] }
0x1337   :  { %13120 = vmatprep.mubr.msk.f32.mxu1 %vm122_vm0, %v15449_v42  ;;  %13688 = vmatprep.subr.bf16.mxu1 %v13687_v57  ;;  %v13703_v11 = vpack.c.bf16 %v11769_v59, %v11768_v18  ;;  %v11776_v18 = vld [vmem:[%s16053_s9 + $0xb0] sm:$0xff]  ;;  %v11777_v59 = vld [vmem:[%s16053_s9 + $0xb8] sm:$0xff] }
0x1338   :  { %13712 = vmatprep.subr.bf16.mxu0 %v13711_v34  ;;  %13153 = vmatprep.mubr.msk.f32.mxu0 %vm122_vm0, %v15478_v37  ;;  %v13719_v39 = vpack.c.bf16 %v11777_v59, %v11776_v18  ;;  %v11785_v18 = vld [vmem:[%s16053_s9 + $0xf8] sm:$0xff] }
0x133a   :  { %13690 = vmatpush3.bf16.msra.mxu1 %v13687_v57  ;;  %13714 = vmatpush3.bf16.msra.mxu0 %v13711_v34  ;;  %v15505_v57 = vld [vmem:[%s16045_s1 + $0x8] sm:$0xff]  ;;  %v11786_v34 = vld [vmem:[%s16054_s10 + $0x80] sm:$0xff]  ;;  %s14034_s1 = smov 32  }
0x133b   :  { %13700 = vmatprep.subr.bf16.mxu1 %v13699_v58  ;;  %13724 = vmatprep.subr.bf16.mxu0 %v13723_v20  ;;  %v13739_v15 = vpack.c.bf16 %v11787_v33, %v11786_v34  ;;  %v11795_v34 = vld [vmem:[%s16054_s10 + $0xc8] sm:$0xff]  ;;  %v13731_v33 = vpack.c.bf16 %v11783_v41, %v11782_v0 }
0x133c   :  { %v11791_v41 = vld [vmem:[%s16054_s10 + $0xa8] sm:$0xff] }
0x133d   :  { %13121 = vmatmul.mubr.msk.f32.vlgmr.msra.gmra.mrb[90].mxu1 %vm122_vm0, %v15451_v60  ;;  %13154 = vmatmul.mubr.msk.f32.vlgmr.msra.gmra.mrb[92].mxu0 %vm122_vm0, %v15505_v57 }
0x133e   :  { %13702 = vmatpush3.bf16.msra.mxu1 %v13699_v58  ;;  %13142 = vmatprep.mubr.msk.f32.mxu1 %vm122_vm0, %v15449_v42  ;;  %v11788_v58 = vld [vmem:[%s16054_s10 + $0x90] sm:$0xff] }
0x133f   :  { %13704 = vmatprep.subr.bf16.mxu1 %v13703_v11  ;;  %13726 = vmatpush3.bf16.msra.mxu0 %v13723_v20  ;;  %v11789_v20 = vld [vmem:[%s16054_s10 + $0x98] sm:$0xff] }
0x1340   :  { %13728 = vmatprep.subr.bf16.mxu0 %v13727_v38  ;;  %13175 = vmatprep.mubr.msk.f32.mxu0 %vm122_vm0, %v15478_v37 }
0x1342   :  { %13706 = vmatpush3.bf16.msra.mxu1 %v13703_v11  ;;  %v13743_v11 = vpack.c.bf16 %v11789_v20, %v11788_v58  ;;  %v11796_v58 = vld [vmem:[%s16054_s10 + $0xd0] sm:$0xff]  ;;  %v11797_v20 = vld [vmem:[%s16054_s10 + $0xd8] sm:$0xff] }
0x1343   :  { %13716 = vmatprep.subr.bf16.mxu1 %v13715_v13  ;;  %13730 = vmatpush3.bf16.msra.mxu0 %v13727_v38  ;;  %v11794_v38 = vld [vmem:[%s16054_s10 + $0xc0] sm:$0xff] }
0x1344   :  { %13740 = vmatprep.subr.bf16.mxu0 %v13739_v15  ;;  %v13755_v59 = vpack.c.bf16 %v11795_v34, %v11794_v38  ;;  %v11792_v34 = vld [vmem:[%s16054_s10 + $0xb0] sm:$0xff] }
0x1345   :  { %13143 = vmatmul.mubr.msk.f32.vlgmr.msra.gmra.mrb[92].mxu1 %vm122_vm0, %v15451_v60 }
0x1346   :  { %13718 = vmatpush3.bf16.msra.mxu1 %v13715_v13  ;;  %13164 = vmatprep.mubr.msk.f32.mxu1 %vm122_vm0, %v15478_v37  ;;  %v11784_v13 = vld [vmem:[%s16053_s9 + $0xf0] sm:$0xff] }
0x1347   :  { %13720 = vmatprep.subr.bf16.mxu1 %v13719_v39  ;;  %13176 = vmatmul.mubr.msk.f32.vlgmr.msra.gmra.mrb[94].mxu0 %vm122_vm0, %v15505_v57  ;;  %v13735_v0 = vpack.c.bf16 %v11785_v18, %v11784_v13  ;;  %v11798_v13 = vld [vmem:[%s16054_s10 + $0xe0] sm:$0xff]  ;;  %v11799_v18 = vld [vmem:[%s16054_s10 + $0xe8] sm:$0xff] }
0x1348   :  { %13742 = vmatpush3.bf16.msra.mxu0 %v13739_v15  ;;  %13197 = vmatprep.mubr.msk.f32.mxu0 %vm122_vm0, %v15478_v37  ;;  %v11790_v15 = vld [vmem:[%s16054_s10 + $0xa0] sm:$0xff] }
0x1349   :  { %13744 = vmatprep.subr.bf16.mxu0 %v13743_v11  ;;  %v13747_v38 = vpack.c.bf16 %v11791_v41, %v11790_v15 }
0x134a   :  { %13722 = vmatpush3.bf16.msra.mxu1 %v13719_v39  ;;  %v13759_v39 = vpack.c.bf16 %v11797_v20, %v11796_v58  ;;  %v11800_v58 = vld [vmem:[%s16054_s10 + $0xf0] sm:$0xff]  ;;  %v11801_v20 = vld [vmem:[%s16054_s10 + $0xf8] sm:$0xff] }
0x134b   :  { %13732 = vmatprep.subr.bf16.mxu1 %v13731_v33 }
0x134c   :  { %13746 = vmatpush3.bf16.msra.mxu0 %v13743_v11  ;;  %v11793_v11 = vld [vmem:[%s16054_s10 + $0xb8] sm:$0xff] }
0x134d   :  { %13165 = vmatmul.mubr.msk.f32.vlgmr.msra.gmra.mrb[94].mxu1 %vm122_vm0, %v15505_v57  ;;  %13756 = vmatprep.subr.bf16.mxu0 %v13755_v59 }
0x134e   :  { %13734 = vmatpush3.bf16.msra.mxu1 %v13731_v33  ;;  %13186 = vmatprep.mubr.msk.f32.mxu1 %vm122_vm0, %v15478_v37  ;;  %v13751_v33 = vpack.c.bf16 %v11793_v11, %v11792_v34 }
0x134f   :  { %13736 = vmatprep.subr.bf16.mxu1 %v13735_v0  ;;  %13198 = vmatmul.mubr.msk.f32.vlgmr.msra.gmra.mrb[96].mxu0 %vm122_vm0, %v15505_v57 }
0x1350   :  { %13758 = vmatpush3.bf16.msra.mxu0 %v13755_v59  ;;  %13219 = vmatprep.mubr.msk.f32.mxu0 %vm122_vm0, %v15478_v37  ;;  %v13763_v59 = vpack.c.bf16 %v11799_v18, %v11798_v13 }
0x1351   :  { %13760 = vmatprep.subr.bf16.mxu0 %v13759_v39 }
0x1352   :  { %13738 = vmatpush3.bf16.msra.mxu1 %v13735_v0  ;;  %v13767_v0 = vpack.c.bf16 %v11801_v20, %v11800_v58 }
0x1353   :  { %13748 = vmatprep.subr.bf16.mxu1 %v13747_v38 }
0x1354   :  { %13762 = vmatpush3.bf16.msra.mxu0 %v13759_v39 }
0x1355   :  { %13187 = vmatmul.mubr.msk.f32.vlgmr.msra.gmra.mrb[96].mxu1 %vm122_vm0, %v15505_v57  ;;  %13233 = vmatprep.subr.mxu0 %v14027_v10 }
0x1356   :  { %13750 = vmatpush3.bf16.msra.mxu1 %v13747_v38  ;;  %13208 = vmatprep.mubr.msk.f32.mxu1 %vm122_vm0, %v15478_v37 }
0x1357   :  { %13752 = vmatprep.subr.bf16.mxu1 %v13751_v33  ;;  %13220 = vmatmul.mubr.msk.f32.vlgmr.msra.gmra.mrb[98].mxu0 %vm122_vm0, %v15505_v57 }
0x1358   :  { %13235 = vmatprep.mubr.msk.f32.mxu0 %vm14028_vm1, %v14027_v10 }
0x135a   :  { %13754 = vmatpush3.bf16.msra.mxu1 %v13751_v33 }
0x135b   :  { %13764 = vmatprep.subr.bf16.mxu1 %v13763_v59 }
0x135d   :  { %13209 = vmatmul.mubr.msk.f32.vlgmr.msra.gmra.mrb[98].mxu1 %vm122_vm0, %v15505_v57 }
0x135e   :  { %13766 = vmatpush3.bf16.msra.mxu1 %v13763_v59  ;;  %13230 = vmatprep.mubr.msk.f32.mxu1 %vm122_vm0, %v15478_v37 }
0x135f   :  { %13768 = vmatprep.subr.bf16.mxu1 %v13767_v0 }
0x1362   :  { %13770 = vmatpush3.bf16.msra.mxu1 %v13767_v0 }
0x1363   :  { %13238 = vmatprep.subr.mxu1 %v14027_v10 }
0x1365   :  { %13231 = vmatmul.mubr.msk.f32.vlgmr.msra.gmra.mrb[100].mxu1 %vm122_vm0, %v15505_v57 }
0x1366   :  { %13240 = vmatprep.mubr.msk.f32.mxu1 %vm14028_vm1, %v14027_v10 }
0x1408   :  { %v13111_v15 = vpop.f32.mrb[88].mxu1  ;;  %v13133_v41 = vpop.f32.mrb[90].mxu0 }
0x1409   :  { %v8501_v39 = vpop.f32.mrb[89].mxu1  ;;  %v8651_v38 = vpop.f32.mrb[91].mxu0 }
0x1410   :  { %v13122_v34 = vpop.f32.mrb[90].mxu1  ;;  %v13155_v11 = vpop.f32.mrb[92].mxu0 }
0x1411   :  { %v8576_v33 = vpop.f32.mrb[91].mxu1  ;;  %v8801_v13 = vpop.f32.mrb[93].mxu0  ;;  %13239 = vmatpush3.xpose.msk.msra.mxu1 %vm1029_vm2, %v13155_v11 }
0x1412   :  { %13234 = vmatpush3.xpose.msk.msra.mxu0 %vm1029_vm2, %v8801_v13  ;;  %13248 = vmatprep.subr.mxu1 %v14027_v10 }
0x1413   :  { %13243 = vmatprep.subr.mxu0 %v14027_v10 }
0x1414   :  { %13241 = vmatmul.mubr.msk.f32.vlgmr.msra.gmra.mrb[102].mxu1 %vm1029_vm2, %v13111_v15 }
0x1415   :  { %13236 = vmatmul.mubr.msk.f32.vlgmr.msra.gmra.mrb[100].mxu0 %vm1029_vm2, %v8501_v39  ;;  %13250 = vmatprep.mubr.msk.f32.mxu1 %vm14028_vm1, %v14027_v10 }
0x1416   :  { %13245 = vmatprep.mubr.msk.f32.mxu0 %vm14028_vm1, %v14027_v10 }
0x1418   :  { %v13144_v37 = vpop.f32.mrb[92].mxu1 }
0x1419   :  { %v8726_v57 = vpop.f32.mrb[93].mxu1 }
0x141a   :  { %v13177_v18 = vpop.f32.mrb[94].mxu0 }
0x141b   :  { %v8951_v59 = vpop.f32.mrb[95].mxu0 }
0x1420   :  { %v13166_v58 = vpop.f32.mrb[94].mxu1 }
0x1421   :  { %v8876_v20 = vpop.f32.mrb[95].mxu1  ;;  %13249 = vmatpush3.xpose.msk.msra.mxu1 %vm1029_vm2, %v13166_v58 }
0x1422   :  { %13244 = vmatpush3.xpose.msk.msra.mxu0 %vm1029_vm2, %v8876_v20  ;;  %13258 = vmatprep.subr.mxu1 %v14027_v10  ;;  %v13199_v0 = vpop.f32.mrb[96].mxu0 }
0x1423   :  { %13253 = vmatprep.subr.mxu0 %v14027_v10  ;;  %v9101_v15 = vpop.f32.mrb[97].mxu0 }
0x1424   :  { %13251 = vmatmul.mubr.msk.f32.vlgmr.msra.gmra.mrb[104].mxu1 %vm1029_vm2, %v13122_v34 }
0x1425   :  { %13246 = vmatmul.mubr.msk.f32.vlgmr.msra.gmra.mrb[102].mxu0 %vm1029_vm2, %v8576_v33  ;;  %13259 = vmatpush3.xpose.msk.msra.mxu1 %vm1029_vm2, %v13177_v18 }
0x1426   :  { %13254 = vmatpush3.xpose.msk.msra.mxu0 %vm1029_vm2, %v8951_v59  ;;  %13260 = vmatprep.mubr.msk.f32.mxu1 %vm14028_vm1, %v14027_v10 }
0x1427   :  { %13255 = vmatprep.mubr.msk.f32.mxu0 %vm14028_vm1, %v14027_v10  ;;  %13268 = vmatprep.subr.mxu1 %v14027_v10 }
0x1428   :  { %v13188_v39 = vpop.f32.mrb[96].mxu1  ;;  %13261 = vmatmul.mubr.msk.f32.vlgmr.msra.gmra.mrb[106].mxu1 %vm1029_vm2, %v13133_v41  ;;  %13263 = vmatprep.subr.mxu0 %v14027_v10 }
0x1429   :  { %v9026_v34 = vpop.f32.mrb[97].mxu1  ;;  %13256 = vmatmul.mubr.msk.f32.vlgmr.msra.gmra.mrb[104].mxu0 %vm1029_vm2, %v8651_v38  ;;  %13269 = vmatpush3.xpose.msk.msra.mxu1 %vm1029_vm2, %v13188_v39 }
0x142a   :  { %13264 = vmatpush3.xpose.msk.msra.mxu0 %vm1029_vm2, %v9026_v34  ;;  %13270 = vmatprep.mubr.msk.f32.mxu1 %vm14028_vm1, %v14027_v10  ;;  %v15643_v11 = vpop.f32.mrb[98].mxu0  ;;  %v13996_v34 = vld [vmem:[%s16047_s3] sm:$0xff] }
0x142b   :  { %13265 = vmatprep.mubr.msk.f32.mxu0 %vm14028_vm1, %v14027_v10  ;;  %13273 = vmatprep.subr.mxu0 %v14027_v10  ;;  %v15648_v41 = vpop.f32.mrb[99].mxu0 }
0x142c   :  { %13271 = vmatmul.mubr.msk.f32.vlgmr.msra.gmra.mrb[108].mxu1 %vm1029_vm2, %v13144_v37  ;;  %13278 = vmatprep.subr.mxu1 %v14027_v10 }
0x142d   :  { %13266 = vmatmul.mubr.msk.f32.vlgmr.msra.gmra.mrb[106].mxu0 %vm1029_vm2, %v8726_v57  ;;  %13279 = vmatpush3.msra.mxu1 %v13199_v0 }
0x142e   :  { %13274 = vmatpush3.msra.mxu0 %v9101_v15  ;;  %13280 = vmatprep.mubr.msk.f32.mxu1 %vm14028_vm1, %v14027_v10  ;;  %v13995_v15 = vld [vmem:[%s16047_s3 + $0x8] sm:$0xff] }
0x142f   :  { %13288 = vmatprep.subr.mxu1 %v14027_v10  ;;  %13275 = vmatprep.mubr.msk.f32.mxu0 %vm14028_vm1, %v14027_v10 }
0x1430   :  { %v15658_v38 = vpop.f32.mrb[98].mxu1  ;;  %13283 = vmatprep.subr.mxu0 %v14027_v10 }
0x1431   :  { %v15661_v33 = vpop.f32.mrb[99].mxu1 }
0x1438   :  { %v15663_v13 = vpop.f32.mrb[100].mxu1 }
0x1439   :  { %v15665_v37 = vpop.f32.mrb[101].mxu1 }
0x14e7   :  { %v9483_v57 = vpop.f32.mrb[102].mxu1 }
0x14e8   :  { %v9944_v18 = vmul.f32 0.35355338, %v9483_v57  ;;  %v9407_v59 = vpop.f32.mrb[100].mxu0  ;;  %v13242_v58 = vpop.f32.mrb[103].mxu1 }
0x14e9   :  { %v9943_v20 = vmul.f32 0.35355338, %v9407_v59  ;;  %v13237_v0 = vpop.f32.mrb[101].mxu0 }
0x14ea   :  { %v9952_v39 = vadd.f32 %v13995_v15, %v9944_v18 }
0x14eb   :  { %v9951_v56 = vadd.f32 %v13996_v34, %v9943_v20  ;;  %v13997_v20 = vld [vmem:[%s16047_s3 + $0x18] sm:$0xff] }
0x14ec   :  { %v9961_v19 = vmul.f32 1.442695, %v9952_v39 }
0x14ed   :  { %v9959_v55 = vmul.f32 1.442695, %v9951_v56 }
0x14ee   :  { %13945 = vpow2.f32 %v9961_v19 }
0x14ef   :  { %13947 = vpow2.f32 %v9959_v55 }
0x14f7   :  { %v9635_v23 = vpop.f32.mrb[104].mxu1 }
0x14f8   :  { %v15673_v57 = vpop.eup %13945  ;;  %v9946_v58 = vmul.f32 0.35355338, %v9635_v23  ;;  %v9559_v59 = vpop.f32.mrb[102].mxu0  ;;  %v13998_v23 = vld [vmem:[%s16047_s3 + $0x10] sm:$0xff] }
0x14f9   :  { %v13252_v0 = vpop.f32.mrb[105].mxu1  ;;  %v15675_v54 = vpop.eup %13947  ;;  %v9945_v24 = vmul.f32 0.35355338, %v9559_v59  ;;  %v9978_v18 = vsel %vm1029_vm2, %v15673_v57, 0.0 }
0x14fa   :  { %v13247_v53 = vpop.f32.mrb[103].mxu0  ;;  %v9954_v56 = vadd.f32 %v13997_v20, %v9946_v58  ;;  %9979 = vadd.xlane.f32.xlu1 %v9978_v18  ;;  %v9975_v55 = vsel %vm1029_vm2, %v15675_v54, 0.0  ;;  %v13999_v58 = vld [vmem:[%s16047_s3 + $0x28] sm:$0xff] }
0x14fb   :  { %v9953_v19 = vadd.f32 %v13998_v23, %v9945_v24  ;;  %9976 = vadd.xlane.f32.xlu0 %v9975_v55  ;;  %v9787_v15 = vpop.f32.mrb[106].mxu1  ;;  %v14000_v24 = vld [vmem:[%s16047_s3 + $0x20] sm:$0xff] }
0x14fc   :  { %v9965_v53 = vmul.f32 1.442695, %v9954_v56  ;;  %v9948_v39 = vmul.f32 0.35355338, %v9787_v15  ;;  %v9711_v34 = vpop.f32.mrb[104].mxu0  ;;  %v13262_v59 = vpop.f32.mrb[107].mxu1 }
0x14fd   :  { %v9963_v0 = vmul.f32 1.442695, %v9953_v19  ;;  %v9947_v22 = vmul.f32 0.35355338, %v9711_v34  ;;  %v13257_v52 = vpop.f32.mrb[105].mxu0 }
0x14fe   :  { %13949 = vpow2.f32 %v9965_v53  ;;  %v9956_v18 = vadd.f32 %v13999_v58, %v9948_v39  ;;  %v14001_v53 = vld [vmem:[%s16047_s3 + $0x38] sm:$0xff] }
0x14ff   :  { %13951 = vpow2.f32 %v9963_v0  ;;  %v9955_v20 = vadd.f32 %v14000_v24, %v9947_v22  ;;  %v9939_v55 = vpop.f32.mrb[108].mxu1  ;;  %v14002_v0 = vld [vmem:[%s16047_s3 + $0x30] sm:$0xff] }
0x1500   :  { %v9969_v56 = vmul.f32 1.442695, %v9956_v18  ;;  %v9950_v23 = vmul.f32 0.35355338, %v9939_v55  ;;  %v9863_v15 = vpop.f32.mrb[106].mxu0  ;;  %v13272_v59 = vpop.f32.mrb[109].mxu1 }
0x1501   :  { %v9967_v19 = vmul.f32 1.442695, %v9955_v20  ;;  %v9949_v34 = vmul.f32 0.35355338, %v9863_v15  ;;  %v13267_v52 = vpop.f32.mrb[107].mxu0 }
0x1502   :  { %13953 = vpow2.f32 %v9969_v56  ;;  %v9958_v39 = vadd.f32 %v14001_v53, %v9950_v23 }
0x1503   :  { %13955 = vpow2.f32 %v9967_v19  ;;  %v9957_v22 = vadd.f32 %v14002_v0, %v9949_v34 }
0x1504   :  { %v9973_v58 = vmul.f32 1.442695, %v9958_v39 }
0x1505   :  { %v9971_v18 = vmul.f32 1.442695, %v9957_v22 }
0x1506   :  { %13957 = vpow2.f32 %v9973_v58 }
0x1507   :  { %13959 = vpow2.f32 %v9971_v18 }
0x1508   :  { %v13950_v24 = vpop.eup %13949 }
0x1509   :  { %v13952_v20 = vpop.eup %13951  ;;  %v9984_v55 = vsel %vm1029_vm2, %v13950_v24, 0.0 }
0x150a   :  { %9985 = vadd.xlane.f32.xlu1 %v9984_v55  ;;  %v9981_v56 = vsel %vm1029_vm2, %v13952_v20, 0.0 }
0x150b   :  { %9982 = vadd.xlane.f32.xlu0 %v9981_v56 }
0x150c   :  { %v13954_v15 = vpop.eup %13953 }
0x150d   :  { %v13956_v23 = vpop.eup %13955  ;;  %v9990_v59 = vsel %vm1029_vm2, %v13954_v15, 0.0 }
0x150e   :  { %9991 = vadd.xlane.f32.xlu1 %v9990_v59  ;;  %v9987_v19 = vsel %vm1029_vm2, %v13956_v23, 0.0 }
0x150f   :  { %9988 = vadd.xlane.f32.xlu0 %v9987_v19 }
0x1510   :  { %v15703_v34 = vpop.eup %13957 }
0x1511   :  { %v15705_v52 = vpop.eup %13959  ;;  %v9996_v53 = vsel %vm1029_vm2, %v15703_v34, 0.0 }
0x1512   :  { %9997 = vadd.xlane.f32.xlu1 %v9996_v53  ;;  %v9993_v39 = vsel %vm1029_vm2, %v15705_v52, 0.0 }
0x1513   :  { %9994 = vadd.xlane.f32.xlu0 %v9993_v39 }
0x1587   :  { %v9980_v0 = vpop.xlane.xlu1 %9979 }
0x1588   :  { %13961 = vrcp.f32 %v9980_v0  ;;  %v9977_v22 = vpop.xlane.xlu0 %9976 }
0x1589   :  { %13963 = vrcp.f32 %v9977_v22 }
0x1592   :  { %v13962_v58 = vpop.eup %13961 }
0x1593   :  { %v13964_v18 = vpop.eup %13963  ;;  %v10002_v55 = vmul.f32 %v13962_v58, %v15673_v57 }
0x1594   :  { %v10000_v56 = vmul.f32 %v13964_v18, %v15675_v54 }
0x1595   :  { %13281 = vmatmul.mubr.msk.f32.vlgmr.msra.gmra.mrb[110].mxu1 %vm1029_vm2, %v10002_v55 }
0x1596   :  { %13289 = vmatpush3.msra.mxu1 %v15658_v38  ;;  %13276 = vmatmul.mubr.msk.f32.vlgmr.msra.gmra.mrb[108].mxu0 %vm1029_vm2, %v10000_v56 }
0x1597   :  { %13284 = vmatpush3.msra.mxu0 %v15661_v33  ;;  %v9986_v59 = vpop.xlane.xlu1 %9985  ;;  %13290 = vmatprep.mubr.msk.f32.mxu1 %vm14028_vm1, %v14027_v10 }
0x1598   :  { %13965 = vrcp.f32 %v9986_v59  ;;  %v9983_v19 = vpop.xlane.xlu0 %9982  ;;  %13298 = vmatprep.subr.mxu1 %v14027_v10  ;;  %13285 = vmatprep.mubr.msk.f32.mxu0 %vm14028_vm1, %v14027_v10 }
0x1599   :  { %13967 = vrcp.f32 %v9983_v19  ;;  %13293 = vmatprep.subr.mxu0 %v14027_v10 }
0x159b   :  { %v9992_v54 = vpop.xlane.xlu1 %9991 }
0x159c   :  { %13969 = vrcp.f32 %v9992_v54  ;;  %v9989_v38 = vpop.xlane.xlu0 %9988 }
0x159d   :  { %13971 = vrcp.f32 %v9989_v38 }
0x159f   :  { %v9998_v57 = vpop.xlane.xlu1 %9997 }
0x15a0   :  { %13973 = vrcp.f32 %v9998_v57  ;;  %v9995_v33 = vpop.xlane.xlu0 %9994 }
0x15a1   :  { %13975 = vrcp.f32 %v9995_v33 }
0x15a2   :  { %v13966_v53 = vpop.eup %13965 }
0x15a3   :  { %v13968_v39 = vpop.eup %13967  ;;  %v10006_v0 = vmul.f32 %v13966_v53, %v13950_v24 }
0x15a4   :  { %v10004_v22 = vmul.f32 %v13968_v39, %v13952_v20 }
0x15a5   :  { %13291 = vmatmul.mubr.msk.f32.vlgmr.msra.gmra.mrb[112].mxu1 %vm1029_vm2, %v10006_v0  ;;  %v11346_v58 = vcombine.low %v10002_v55, %v10006_v0  ;;  %v11347_v18 = vcombine.high %v10002_v55, %v10006_v0 }
0x15a6   :  { %v13970_v59 = vpop.eup %13969  ;;  %13299 = vmatpush3.msra.mxu1 %v15643_v11  ;;  %13286 = vmatmul.mubr.msk.f32.vlgmr.msra.gmra.mrb[110].mxu0 %vm1029_vm2, %v10004_v22  ;;  %v11330_v19 = vcombine.low %v10000_v56, %v10004_v22  ;;  %v11331_v54 = vcombine.high %v10000_v56, %v10004_v22 }
0x15a7   :  { %v13972_v38 = vpop.eup %13971  ;;  %v10010_v4 = vmul.f32 %v13970_v59, %v13954_v15  ;;  %13294 = vmatpush3.msra.mxu0 %v15648_v41  ;;  %13300 = vmatprep.mubr.msk.f32.mxu1 %vm14028_vm1, %v14027_v10  ;;  %v11354_v24 = vrot.slane %v11346_v58, %v14438_v3  ;;  %v11361_v20 = vrot.slane %v11347_v18, %v14438_v3 }
0x15a8   :  { %v10008_v57 = vmul.f32 %v13972_v38, %v13956_v23  ;;  %13308 = vmatprep.subr.mxu1 %v14027_v10  ;;  %13295 = vmatprep.mubr.msk.f32.mxu0 %vm14028_vm1, %v14027_v10  ;;  %v11338_v11 = vrot.slane %v11330_v19, %v14438_v3  ;;  %v11345_v55 = vrot.slane %v11331_v54, %v14438_v3 }
0x15a9   :  { %13301 = vmatmul.mubr.msk.f32.vlgmr.msra.gmra.mrb[114].mxu1 %vm1029_vm2, %v10010_v4  ;;  %13303 = vmatprep.subr.mxu0 %v14027_v10 }
0x15aa   :  { %v13974_v41 = vpop.eup %13973  ;;  %13309 = vmatpush3.msra.mxu1 %v15663_v13  ;;  %13296 = vmatmul.mubr.msk.f32.vlgmr.msra.gmra.mrb[112].mxu0 %vm1029_vm2, %v10008_v57  ;;  %v11394_v15 = vcombine.low %v11338_v11, %v11354_v24  ;;  %v11395_v23 = vcombine.high %v11338_v11, %v11354_v24  ;;  %v11410_v56 = vcombine.low %v11345_v55, %v11361_v20 }
0x15ab   :  { %v13976_v33 = vpop.eup %13975  ;;  %v10014_v53 = vmul.f32 %v13974_v41, %v15703_v34  ;;  %13304 = vmatpush3.msra.mxu0 %v15665_v37  ;;  %13310 = vmatprep.mubr.msk.f32.mxu1 %vm14028_vm1, %v14027_v10  ;;  %v11411_v39 = vcombine.high %v11345_v55, %v11361_v20 }
0x15ac   :  { %v10012_v0 = vmul.f32 %v13976_v33, %v15705_v52  ;;  %13305 = vmatprep.mubr.msk.f32.mxu0 %vm14028_vm1, %v14027_v10  ;;  %v15754_v24 = vrot.slane %v11394_v15, %v14463_v31  ;;  %v15760_v20 = vrot.slane %v11410_v56, %v14463_v31 }
0x15ad   :  { %13311 = vmatmul.mubr.msk.f32.vlgmr.msra.gmra.mrb[116].mxu1 %vm1029_vm2, %v10014_v53  ;;  %v11378_v13 = vcombine.low %v10010_v4, %v10014_v53  ;;  %v11379_v22 = vcombine.high %v10010_v4, %v10014_v53  ;;  %v15757_v4 = vrot.slane %v11395_v23, %v14463_v31  ;;  %v15775_v41 = vrot.slane %v11411_v39, %v14463_v31 }
0x15ae   :  { %13306 = vmatmul.mubr.msk.f32.vlgmr.msra.gmra.mrb[114].mxu0 %vm1029_vm2, %v10012_v0  ;;  %v11362_v58 = vcombine.low %v10008_v57, %v10012_v0  ;;  %v11363_v18 = vcombine.high %v10008_v57, %v10012_v0 }
0x15af   :  { %v11386_v34 = vrot.slane %v11378_v13, %v14438_v3  ;;  %v11393_v37 = vrot.slane %v11379_v22, %v14438_v3  ;;  %v11803_v13 = vld [vmem:[%s16055_s11 + $0x28] sm:$0xff]  ;;  %v11802_v22 = vld [vmem:[%s16055_s11 + $0x20] sm:$0xff] }
0x15b0   :  { %v11370_v59 = vrot.slane %v11362_v58, %v14438_v3  ;;  %v11377_v19 = vrot.slane %v11363_v18, %v14438_v3  ;;  %13313 = vmatprep.subr.mxu0 %v11803_v13 }
0x15b1   :  { %13314 = vmatpush3.msra.mxu0 %v11803_v13 }
0x15b2   :  { %v11426_v52 = vcombine.low %v11370_v59, %v11386_v34  ;;  %v11427_v54 = vcombine.high %v11370_v59, %v11386_v34  ;;  %v11442_v38 = vcombine.low %v11377_v19, %v11393_v37  ;;  %v11443_v10 = vcombine.high %v11377_v19, %v11393_v37  ;;  %13318 = vmatprep.subr.mxu0 %v11802_v22 }
0x15b4   :  { %v15763_v57 = vrot.slane %v11426_v52, %v14463_v31  ;;  %v15766_v11 = vrot.slane %v11427_v54, %v14463_v31  ;;  %v15769_v3 = vrot.slane %v11442_v38, %v14463_v31  ;;  %v15772_v55 = vrot.slane %v11443_v10, %v14463_v31  ;;  %v11804_v38 = vld [vmem:[%s16055_s11 + $0x30] sm:$0xff] }
0x15b6   :  { %v11459_v15 = vcombine.high %v15754_v24, %v15763_v57  ;;  %v11460_v23 = vcombine.low %v15757_v4, %v15766_v11  ;;  %v11461_v56 = vcombine.high %v15757_v4, %v15766_v11  ;;  %v11462_v33 = vcombine.low %v15760_v20, %v15769_v3  ;;  %v11870_v11 = vld [vmem:[%s16057_s13 + $0x50] sm:$0xff] }
0x15b7   :  { %v11463_v53 = vcombine.high %v15760_v20, %v15769_v3  ;;  %v11464_v0 = vcombine.low %v15775_v41, %v15772_v55  ;;  %v11465_v39 = vcombine.high %v15775_v41, %v15772_v55  ;;  %v11871_v3 = vld [vmem:[%s16057_s13 + $0x58] sm:$0xff]  ;;  %v16062_v55 = vcombine.high %v15339_v16, %v15348_v25 }
0x1668   :  { %v10157_v58 = vpop.f32.mrb[110].mxu1 }
0x1669   :  { %v10084_v18 = vpop.f32.mrb[108].mxu0  ;;  %v13282_v34 = vpop.f32.mrb[111].mxu1 }
0x166a   :  { %v13277_v37 = vpop.f32.mrb[109].mxu0 }
0x1678   :  { %v10303_v59 = vpop.f32.mrb[112].mxu1 }
0x1679   :  { %v10230_v19 = vpop.f32.mrb[110].mxu0  ;;  %v13292_v52 = vpop.f32.mrb[113].mxu1 }
0x167a   :  { %v13287_v54 = vpop.f32.mrb[111].mxu0  ;;  %13315 = vmatprep.mubr.msk.f32.mxu0 %vm1029_vm2, %v10230_v19  ;;  %v11805_v19 = vld [vmem:[%s16055_s11 + $0x38] sm:$0xff]  ;;  %s14031_s11 = smov 8  }
0x167b   :  { %13316 = vmatmul.mubr.msk.f32.vlgmr.msra.gmra.mrb[116].mxu0 %vm1029_vm2, %v10303_v59 }
0x167c   :  { %v10449_v10 = vpop.f32.mrb[114].mxu1  ;;  %13319 = vmatpush3.msra.mxu0 %v11802_v22  ;;  %13320 = vmatprep.mubr.msk.f32.mxu0 %vm1029_vm2, %v10084_v18 }
0x167d   :  { %v10376_v13 = vpop.f32.mrb[112].mxu0  ;;  %v13302_v31 = vpop.f32.mrb[115].mxu1  ;;  %13323 = vmatprep.subr.mxu0 %v11804_v38 }
0x167e   :  { %v13297_v34 = vpop.f32.mrb[113].mxu0 }
0x1680   :  { %v10595_v37 = vpop.f32.mrb[116].mxu1 }
0x1681   :  { %v10522_v51 = vpop.f32.mrb[114].mxu0  ;;  %v13312_v52 = vpop.f32.mrb[117].mxu1 }
0x1682   :  { %v13307_v54 = vpop.f32.mrb[115].mxu0 }
0x1683   :  { %13321 = vmatmul.mubr.msk.f32.vlgmr.msra.gmra.mrb[116].mxu0 %vm1029_vm2, %v10157_v58 }
0x1684   :  { %13324 = vmatpush3.msra.mxu0 %v11804_v38  ;;  %13325 = vmatprep.mubr.msk.f32.mxu0 %vm1029_vm2, %v10376_v13 }
0x1685   :  { %13328 = vmatprep.subr.mxu0 %v11805_v19 }
0x168b   :  { %13326 = vmatmul.mubr.msk.f32.vlgmr.msra.gmra.mrb[116].mxu0 %vm1029_vm2, %v10449_v10 }
0x168c   :  { %13329 = vmatpush3.msra.mxu0 %v11805_v19  ;;  %13330 = vmatprep.mubr.msk.f32.mxu0 %vm1029_vm2, %v10522_v51 }
0x1693   :  { %13331 = vmatmul.mubr.msk.f32.vlgmr.msra.gmra.mrb[116].mxu0 %vm1029_vm2, %v10595_v37 }
0x1766   :  { %v13332_v31 = vpop.f32.mrb[116].mxu0 }
0x1767   :  { %v10928_v22 = vadd.f32 %v13332_v31, %v15451_v60  ;;  %v10916_v18 = vpop.f32.mrb[117].mxu0 }
0x1768   :  { %v10927_v59 = vadd.f32 %v10916_v18, %v15449_v42  ;;  %v11863_v42 = vld [vmem:[%s16056_s12 + $0x28] sm:$0xff] }
0x1769   :  { %v10932_v34 = vsel %vm122_vm0, %v10928_v22, 0.0 }
0x176a   :  { %10933 = vadd.xlane.f32.xlu1 %v10932_v34  ;;  %v10929_v58 = vsel %vm122_vm0, %v10927_v59, 0.0  ;;  %v11875_v34 = vld [vmem:[%s16057_s13 + $0x78] sm:$0xff] }
0x176b   :  { %10930 = vadd.xlane.f32.xlu0 %v10929_v58 }
0x17f7   :  { %v10934_v38 = vpop.xlane.xlu1 %10933 }
0x17f8   :  { %v10936_v13 = vmul.f32 0.03125, %v10934_v38  ;;  %v10931_v10 = vpop.xlane.xlu0 %10930 }
0x17f9   :  { %v10935_v52 = vmul.f32 0.03125, %v10931_v10 }
0x17fa   :  { %v10938_v54 = vsub.f32 %v10928_v22, %v10936_v13  ;;  %v11873_v22 = vld [vmem:[%s16057_s13 + $0x68] sm:$0xff] }
0x17fb   :  { %v10937_v51 = vsub.f32 %v10927_v59, %v10935_v52  ;;  %v11874_v59 = vld [vmem:[%s16057_s13 + $0x70] sm:$0xff] }
0x17fc   :  { %v10940_v19 = vmul.f32 %v10938_v54, %v10938_v54  ;;  %v13791_v58 = vpack.c.bf16 %v11875_v34, %v11874_v59  ;;  %v16073_v59 = vcombine.low %v15754_v24, %v15763_v57 }
0x17fd   :  { %v10939_v37 = vmul.f32 %v10937_v51, %v10937_v51 }
0x17fe   :  { %v10944_v28 = vsel %vm122_vm0, %v10940_v19, 0.0 }
0x17ff   :  { %10945 = vadd.xlane.f32.xlu1 %v10944_v28  ;;  %v10941_v60 = vsel %vm122_vm0, %v10939_v37, 0.0  ;;  %v11862_v28 = vld [vmem:[%s16056_s12 + $0x20] sm:$0xff] }
0x1800   :  { %10942 = vadd.xlane.f32.xlu0 %v10941_v60 }
0x1810   :  { %11467 = vrot.lane.b32.xlu1 %v11459_v15, %s14031_s11  ;;  %v13771_v15 = vpack.c.bf16 %v11863_v42, %v11862_v28  ;;  %v16060_v42 = vcombine.low %v15339_v16, %v15348_v25  ;;  %v16066_v16 = vcombine.high %v15342_v40, %v15351_v32  ;;  %v16067_v25 = vcombine.low %v14476_v45, %v14485_v48 }
0x1811   :  { %v16071_v40 = vcombine.low %v14491_v50, %v14488_v49  ;;  %v16072_v32 = vcombine.high %v14491_v50, %v14488_v49 }
0x1812   :  { %13772 = vmatprep.subr.bf16.mxu1 %v13771_v15 }
0x1813   :  { %13774 = vmatpush3.bf16.msra.mxu1 %v13771_v15  ;;  %v16061_v15 = vcombine.high %v14470_v43, %v14479_v46 }
0x1814   :  { %5755 = vrot.lane.b32.xlu1 %v5744_v6, %s14032_s25  ;;  %v11864_v6 = vld [vmem:[%s16056_s12 + $0x30] sm:$0xff] }
0x1816   :  { %5751 = vrot.lane.b32.xlu0 %v5743_v7, %s14031_s11  ;;  %v11865_v7 = vld [vmem:[%s16056_s12 + $0x38] sm:$0xff]  ;;  %s14035_s12 = smov 40  }
0x1817   :  { %v13775_v31 = vpack.c.bf16 %v11865_v7, %v11864_v6 }
0x1818   :  { %11471 = vrot.lane.b32.xlu1 %v11460_v23, %s14032_s25 }
0x1819   :  { %13776 = vmatprep.subr.bf16.mxu1 %v13775_v31 }
0x181a   :  { %5759 = vrot.lane.b32.xlu0 %v5745_v8, %s14033_s28  ;;  %13778 = vmatpush3.bf16.msra.mxu1 %v13775_v31 }
0x181b   :  { %13780 = vmatprep.subr.bf16.mxu1 %v13779_v36 }
0x181c   :  { %11475 = vrot.lane.b32.xlu1 %v11461_v56, %s14033_s28 }
0x181e   :  { %5763 = vrot.lane.b32.xlu0 %v5746_v35, %s14034_s1 }
0x1820   :  { %11479 = vrot.lane.b32.xlu1 %v11462_v33, %s14034_s1 }
0x1822   :  { %5767 = vrot.lane.b32.xlu0 %v5747_v9, %s14035_s12 }
0x1824   :  { %11483 = vrot.lane.b32.xlu1 %v11463_v53, %s14035_s12  ;;  %v13783_v53 = vpack.c.bf16 %v11871_v3, %v11870_v11 }
0x1826   :  { %5771 = vrot.lane.b32.xlu0 %v5748_v12, %s14036_s6 }
0x1828   :  { %11487 = vrot.lane.b32.xlu1 %v11464_v0, %s14036_s6  ;;  %v11872_v0 = vld [vmem:[%s16057_s13 + $0x60] sm:$0xff]  ;;  %s14037_s13 = smov 56  }
0x1829   :  { %v13787_v18 = vpack.c.bf16 %v11873_v22, %v11872_v0 }
0x188c   :  { %v10946_v27 = vpop.xlane.xlu1 %10945 }
0x188d   :  { %v10948_v8 = vmul.f32 0.03125, %v10946_v27  ;;  %v10943_v35 = vpop.xlane.xlu0 %10942 }
0x188e   :  { %v10947_v9 = vmul.f32 0.03125, %v10943_v35 }
0x188f   :  { %v10950_v12 = vadd.f32 1e-05, %v10948_v8 }
0x1890   :  { %v10949_v4 = vadd.f32 1e-05, %v10947_v9  ;;  %v11468_v41 = vpop.permute.xlu1 %11467 }
0x1891   :  { %13977 = vrsqrt.f32 %v10950_v12  ;;  %v5752_v7 = vpop.permute.xlu0 %5751  ;;  %v11494_v34 = vsel %vm1029_vm2, %v16073_v59, %v11468_v41 }
0x1892   :  { %13979 = vrsqrt.f32 %v10949_v4 }
0x189b   :  { %v13978_v20 = vpop.eup %13977 }
0x189c   :  { %v13980_v23 = vpop.eup %13979  ;;  %v10954_v33 = vmul.f32 %v13978_v20, %v10938_v54 }
0x189d   :  { %v10953_v56 = vmul.f32 %v13980_v23, %v10937_v51 }
0x189f   :  { %13341 = vmatprep.mubr.msk.f32.mxu1 %vm122_vm0, %v10953_v56 }
0x18a0   :  { %13342 = vmatmul.mubr.msk.f32.vlgmr.msra.gmra.mrb[118].mxu1 %vm122_vm0, %v10954_v33 }
0x18a1   :  { %13782 = vmatpush3.bf16.msra.mxu1 %v13779_v36 }
0x18a2   :  { %13784 = vmatprep.subr.bf16.mxu1 %v13783_v53 }
0x18a5   :  { %13786 = vmatpush3.bf16.msra.mxu1 %v13783_v53 }
0x18a6   :  { %13788 = vmatprep.subr.bf16.mxu1 %v13787_v18 }
0x18a9   :  { %13790 = vmatpush3.bf16.msra.mxu1 %v13787_v18 }
0x18aa   :  { %13792 = vmatprep.subr.bf16.mxu1 %v13791_v58 }
0x18ad   :  { %13794 = vmatpush3.bf16.msra.mxu1 %v13791_v58 }
0x1973   :  { %v13343_v38 = vpop.f32.mrb[118].mxu1 }
0x1974   :  { %v11032_v13 = vpop.f32.mrb[119].mxu1  ;;  %v11042_v52 = vmax.f32 %v13343_v38, 0.0 }
0x1975   :  { %v11041_v10 = vmax.f32 %v11032_v13, 0.0 }
0x1977   :  { %13360 = vmatprep.mubr.msk.f32.mxu1 %vm5330_vm3, %v11041_v10 }
0x1978   :  { %13361 = vmatmul.mubr.msk.f32.vlgmr.msra.gmra.mrb[120].mxu1 %vm5330_vm3, %v11042_v52 }
0x1a4b   :  { %v13362_v54 = vpop.f32.mrb[120].mxu1 }
0x1a4c   :  { %v11130_v51 = vadd.f32 %v13362_v54, %v10954_v33  ;;  %v11124_v19 = vpop.f32.mrb[121].mxu1  ;;  %v16074_v54 = vcombine.low %v14891_v62, %v14900_v1  ;;  %v16075_v62 = vcombine.low %v15336_v30, %v15345_v17 }
0x1a4d   :  { %v11125_v37 = vadd.f32 %v11124_v19, %v10953_v56 }
0x1a4e   :  { %v11136_v60 = vsel %vm122_vm0, %v11130_v51, 0.0 }
0x1a4f   :  { %11137 = vadd.xlane.f32.xlu1 %v11136_v60  ;;  %v11133_v28 = vsel %vm122_vm0, %v11125_v37, 0.0 }
0x1a50   :  { %11134 = vadd.xlane.f32.xlu0 %v11133_v28 }
0x1a60   :  { %11491 = vrot.lane.b32.xlu1 %v11465_v39, %s14037_s13  ;;  %v5756_v39 = vpop.permute.xlu1 %5755 }
0x1a64   :  { %11296 = vrot.lane.b32.xlu1 %v11288_v26, %s14031_s11  ;;  %v16068_v26 = vcombine.low %v15357_v29, %v15354_v21  ;;  %v11472_v6 = vpop.permute.xlu1 %11471 }
0x1a65   :  { %v11495_v58 = vsel %vm5603_vm4, %v11494_v34, %v11472_v6 }
0x1a66   :  { %5775 = vrot.lane.b32.xlu0 %v5749_v14, %s14037_s13  ;;  %v16065_v14 = vcombine.high %v14473_v44, %v14482_v47  ;;  %v16069_v44 = vcombine.high %v14476_v45, %v14485_v48  ;;  %v16070_v47 = vcombine.high %v15357_v29, %v15354_v21  ;;  %v5760_v45 = vpop.permute.xlu0 %5759 }
0x1a68   :  { %11300 = vrot.lane.b32.xlu1 %v16060_v42, %s14032_s25  ;;  %v11476_v31 = vpop.permute.xlu1 %11475 }
0x1a69   :  { %v11496_v38 = vsel %vm5605_vm5, %v11495_v58, %v11476_v31 }
0x1a6a   :  { %5575 = vrot.lane.b32.xlu0 %v16061_v15, %s14031_s11  ;;  %v5764_v61 = vpop.permute.xlu0 %5763 }
0x1a6c   :  { %11304 = vrot.lane.b32.xlu1 %v16062_v55, %s14033_s28  ;;  %v11480_v48 = vpop.permute.xlu1 %11479 }
0x1a6d   :  { %v11497_v10 = vsel %vm122_vm0, %v11496_v38, %v11480_v48 }
0x1a6e   :  { %5579 = vrot.lane.b32.xlu0 %v16063_v2, %s14032_s25  ;;  %v5768_v21 = vpop.permute.xlu0 %5767  ;;  %s14038_s25 = smov 64   ;;  %v16076_v2 = vcombine.low %v14470_v43, %v14479_v46 }
0x1a70   :  { %11308 = vrot.lane.b32.xlu1 %v16064_v5, %s14034_s1  ;;  %v11484_v63 = vpop.permute.xlu1 %11483 }
0x1a71   :  { %v11498_v24 = vsel %vm5608_vm6, %v11497_v10, %v11484_v63 }
0x1a72   :  { %5583 = vrot.lane.b32.xlu0 %v16065_v14, %s14033_s28  ;;  %v5772_v36 = vpop.permute.xlu0 %5771 }
0x1a74   :  { %11312 = vrot.lane.b32.xlu1 %v16066_v16, %s14035_s12  ;;  %v11488_v29 = vpop.permute.xlu1 %11487 }
0x1a75   :  { %v11499_v19 = vsel %vm5610_vm8, %v11498_v24, %v11488_v29 }
0x1a76   :  { %5587 = vrot.lane.b32.xlu0 %v16067_v25, %s14034_s1 }
0x1a78   :  { %11316 = vrot.lane.b32.xlu1 %v16068_v26, %s14036_s6 }
0x1a7a   :  { %5591 = vrot.lane.b32.xlu0 %v16069_v44, %s14035_s12 }
0x1a7c   :  { %11320 = vrot.lane.b32.xlu1 %v16070_v47, %s14037_s13 }
0x1a7e   :  { %5595 = vrot.lane.b32.xlu0 %v16071_v40, %s14036_s6 }
0x1a82   :  { %5599 = vrot.lane.b32.xlu0 %v16072_v32, %s14037_s13 }
0x1adc   :  { %v11138_v27 = vpop.xlane.xlu1 %11137 }
0x1add   :  { %v11140_v8 = vmul.f32 0.03125, %v11138_v27  ;;  %v11135_v35 = vpop.xlane.xlu0 %11134 }
0x1ade   :  { %v11139_v9 = vmul.f32 0.03125, %v11135_v35 }
0x1adf   :  { %v15969_v12 = vsub.f32 %v11130_v51, %v11140_v8  ;;  %v5778_v51 = vsel %vm1029_vm2, %v16074_v54, %v5752_v7 }
0x1ae0   :  { %v15971_v49 = vsub.f32 %v11125_v37, %v11139_v9  ;;  %v11492_v50 = vpop.permute.xlu1 %11491  ;;  %v5779_v57 = vsel %vm5603_vm4, %v5778_v51, %v5756_v39 }
0x1ae1   :  { %v5776_v4 = vpop.permute.xlu0 %5775  ;;  %v11144_v20 = vmul.f32 %v15969_v12, %v15969_v12  ;;  %v11500_v60 = vsel %vm5612_vm7, %v11499_v19, %v11492_v50  ;;  %v5780_v42 = vsel %vm5605_vm5, %v5779_v57, %v5760_v45 }
0x1ae2   :  { %v11143_v11 = vmul.f32 %v15971_v49, %v15971_v49  ;;  %v5781_v15 = vsel %vm122_vm0, %v5780_v42, %v5764_v61 }
0x1ae3   :  { %v11148_v3 = vsel %vm122_vm0, %v11144_v20, 0.0  ;;  %v5782_v55 = vsel %vm5608_vm6, %v5781_v15, %v5768_v21 }
0x1ae4   :  { %11149 = vadd.xlane.f32.xlu1 %v11148_v3  ;;  %v11297_v23 = vpop.permute.xlu1 %11296  ;;  %v11145_v56 = vsel %vm122_vm0, %v11143_v11, 0.0  ;;  %v5783_v25 = vsel %vm5610_vm8, %v5782_v55, %v5772_v36 }
0x1ae5   :  { %11146 = vadd.xlane.f32.xlu0 %v11145_v56  ;;  %v5576_v33 = vpop.permute.xlu0 %5575  ;;  %v11323_v1 = vsel %vm1029_vm2, %v16075_v62, %v11297_v23  ;;  %v5784_v40 = vsel %vm5612_vm7, %v5783_v25, %v5776_v4 }
0x1ae6   :  { %v5602_v5 = vsel %vm1029_vm2, %v16076_v2, %v5576_v33 }
0x1ae8   :  { %v11301_v53 = vpop.permute.xlu1 %11300 }
0x1ae9   :  { %v5580_v0 = vpop.permute.xlu0 %5579  ;;  %v11324_v14 = vsel %vm5603_vm4, %v11323_v1, %v11301_v53 }
0x1aea   :  { %v5604_v26 = vsel %vm5603_vm4, %v5602_v5, %v5580_v0 }
0x1aec   :  { %v11305_v22 = vpop.permute.xlu1 %11304 }
0x1aed   :  { %v5584_v18 = vpop.permute.xlu0 %5583  ;;  %v11325_v44 = vsel %vm5605_vm5, %v11324_v14, %v11305_v22 }
0x1aee   :  { %v5606_v30 = vsel %vm5605_vm5, %v5604_v26, %v5584_v18 }
0x1af0   :  { %v11309_v13 = vpop.permute.xlu1 %11308 }
0x1af1   :  { %v5588_v52 = vpop.permute.xlu0 %5587  ;;  %v11326_v17 = vsel %vm122_vm0, %v11325_v44, %v11309_v13 }
0x1af2   :  { %v5607_v43 = vsel %vm122_vm0, %v5606_v30, %v5588_v52 }
0x1af4   :  { %v11313_v37 = vpop.permute.xlu1 %11312 }
0x1af5   :  { %11502 = vrot.lane.b32.xlu1 %v11500_v60, %s14038_s25  ;;  %v5592_v28 = vpop.permute.xlu0 %5591  ;;  %v11327_v46 = vsel %vm5608_vm6, %v11326_v17, %v11313_v37 }
0x1af6   :  { %v5609_v32 = vsel %vm5608_vm6, %v5607_v43, %v5592_v28 }
0x1af8   :  { %v11317_v16 = vpop.permute.xlu1 %11316 }
0x1af9   :  { %v5596_v47 = vpop.permute.xlu0 %5595  ;;  %v11328_v41 = vsel %vm5610_vm8, %v11327_v46, %v11317_v16 }
0x1afa   :  { %v5611_v6 = vsel %vm5610_vm8, %v5609_v32, %v5596_v47 }
0x1afb   :  { %5786 = vrot.lane.b32.xlu0 %v5784_v40, %s14038_s25 }
0x1afc   :  { %v11321_v39 = vpop.permute.xlu1 %11320 }
0x1afd   :  { %v11329_v7 = vsel %vm5612_vm7, %v11328_v41, %v11321_v39  ;;  %v5600_v31 = vpop.permute.xlu0 %5599 }
0x1afe   :  { %v5613_v45 = vsel %vm5612_vm7, %v5611_v6, %v5600_v31 }
0x1b71   :  { %v11150_v48 = vpop.xlane.xlu1 %11149 }
0x1b72   :  { %v11152_v61 = vmul.f32 0.03125, %v11150_v48  ;;  %v11147_v63 = vpop.xlane.xlu0 %11146 }
0x1b73   :  { %v11151_v21 = vmul.f32 0.03125, %v11147_v63 }
0x1b74   :  { %v11154_v29 = vadd.f32 1e-05, %v11152_v61 }
0x1b75   :  { %v11153_v36 = vadd.f32 1e-05, %v11151_v21  ;;  %v11503_v27 = vpop.permute.xlu1 %11502 }
0x1b76   :  { %13981 = vrsqrt.f32 %v11154_v29  ;;  %v11505_v8 = vsel %vm5330_vm3, %v11329_v7, %v11503_v27  ;;  %v5787_v35 = vpop.permute.xlu0 %5786 }
0x1b77   :  { %13983 = vrsqrt.f32 %v11153_v36  ;;  %11878 = vst [vmem:[%s16059_s15 + $0x8] sm:$0xff] %v11505_v8  ;;  %v5789_v9 = vsel %vm5330_vm3, %v5613_v45, %v5787_v35 }
0x1b78   :  { %5790 = vst [vmem:[%s16059_s15] sm:$0xff] %v5789_v9 }
0x1b80   :  { %v13982_v50 = vpop.eup %13981 }
0x1b81   :  { %v13984_v4 = vpop.eup %13983  ;;  %v11158_v20 = vmul.f32 %v13982_v50, %v15969_v12 }
0x1b82   :  { %v11157_v11 = vmul.f32 %v13984_v4, %v15971_v49 }
0x1b83   :  { %11509 = vst.msk [vmem:[#allocation2 + $0x8] sm:$0xff] %vm122_vm0, %v11158_v20 }
0x1b84   :  { %11508 = vst.msk [vmem:[#allocation2] sm:$0xff] %vm122_vm0, %v11157_v11 }
0x1b85   :  { %14014 = shalt.err (!%p14011_p4)
}
0x1b86   :  { %s14015_s12 = scalar_lea.hbm %s16058_s14, 256 }
0x1b87   :  { %p14016_p5 = scmp.ne.s32.totalorder %s16058_s14, %s14015_s12  ;;  %p14019_p6 = scmp.lt.u32.totalorder %s14015_s12, %s16058_s14 }
0x1b89   :  { %p14021_p7 = pnand %p14019_p6, %p14016_p5 }
0x1b8b   :  { %14024 = shalt.err (!%p14021_p7)
}
0x1b8c   :  { %s14040_s18 = smov 128  }
0x1b8d   :  { %11521 = dma.vmem_to_hbm [thread:$0]  %s11516_s0, 256, %s16058_s14, [#allocation3], %s14040_s18, %s14040_s18, %s14031_s11  }
0x1b8e   :  { %14025 = dma.done.wait [#allocation3], 256  }
0x1b8f   :  { %14026 = vsyncadd [#allocation3], 4294967040 }
0x1b90   :  { %11529 = vsyncpa [#allocation3], 1 }

</bundles_post_ra>
